<compile_context>
chip_gen: v7x
topology: tpu7x:2x2x1
jax: 0.10.0
libtpu: 0.0.40
codegen_flags: <defaults>
</compile_context>

<pallas_src>
import math

import numpy as np

import jax
import jax.numpy as jnp
from jax.experimental import pallas as pl
from jax.experimental.pallas import tpu as pltpu


# 5*5*24 = 600 conv1 features per pooling-window offset, padded to a lane
# multiple (128) so the in-kernel pool reduces over lane-aligned slices.
_POOL_GROUP = 640


# ------------------------- fused forward kernel -----------------------------

def _sharing_fwd_kernel(xd_ref, w1_ref, b1_ref, w2_ref, b2_ref,
                        wf1_ref, bf1_ref, wf2a_ref, wf2b_ref, bf2_ref,
                        wf3_ref, bf3_ref,
                        out_ref, x1_ref, x2_ref,
                        y_s):
    B = x1_ref.shape[0]
    G = w1_ref.shape[1] // 4          # lane-aligned pooling-group width (640)

    # conv1 as one dense (Toeplitz) matmul over the raw (2B, 196) images.
    # Output columns are grouped by 2x2-pool-window offset (4 groups of G).
    c1 = jnp.dot(xd_ref[...], w1_ref[...],
                 preferred_element_type=jnp.float32) + b1_ref[...]

    # tanh(max_pool2d(conv1, 2, 2)) : max of four lane-aligned column groups.
    pooled = jnp.tanh(jnp.maximum(jnp.maximum(c1[:, 0:G], c1[:, G:2 * G]),
                                  jnp.maximum(c1[:, 2 * G:3 * G],
                                              c1[:, 3 * G:4 * G])))

    # conv2 (+bias, tanh) as a dense matmul; output columns already in torch
    # NCHW flatten order (oc, oh, ow) so fc1 applies directly.
    c2 = jnp.tanh(jnp.dot(pooled, w2_ref[...],
                          preferred_element_type=jnp.float32) + b2_ref[...])

    # fc1 + tanh -> per-digit class scores; rows = [digit-0 batch | digit-1].
    y = jnp.tanh(jnp.dot(c2, wf1_ref[...],
                         preferred_element_type=jnp.float32) + bf1_ref[...])
    y_s[...] = y

    x1 = y_s[0:B, :]
    x2 = y_s[B:2 * B, :]
    x1_ref[...] = x1.astype(x1_ref.dtype)
    x2_ref[...] = x2.astype(x2_ref.dtype)

    # Comparator: fc2(concat(x1, x2)) == x1 @ Wa + x2 @ Wb, tanh, then fc3.
    h = jnp.tanh(jnp.dot(x1, wf2a_ref[...], preferred_element_type=jnp.float32)
                 + jnp.dot(x2, wf2b_ref[...], preferred_element_type=jnp.float32)
                 + bf2_ref[...])
    out_ref[...] = (jnp.dot(h, wf3_ref[...], preferred_element_type=jnp.float32)
                    + bf3_ref[...]).astype(out_ref.dtype)


def _fused_sharing_call(xd, kp):
    two_b = xd.shape[0]
    B = two_b // 2
    args = (xd,
            kp["conv1_W"], kp["conv1_b"],
            kp["conv2_W"], kp["conv2_b"],
            kp["fc1_W"], kp["fc1_b"],
            kp["fc2a_W"], kp["fc2b_W"], kp["fc2_b"],
            kp["fc3_W"], kp["fc3_b"])
    in_specs = [pl.BlockSpec(a.shape, lambda: (0, 0)) for a in args]
    out_shape = (jax.ShapeDtypeStruct((B, 2), jnp.float32),
                 jax.ShapeDtypeStruct((B, 10), jnp.float32),
                 jax.ShapeDtypeStruct((B, 10), jnp.float32))
    out_specs = (pl.BlockSpec((B, 2), lambda: (0, 0)),
                 pl.BlockSpec((B, 10), lambda: (0, 0)),
                 pl.BlockSpec((B, 10), lambda: (0, 0)))
    return pl.pallas_call(
        _sharing_fwd_kernel,
        out_shape=out_shape,
        in_specs=in_specs,
        out_specs=out_specs,
        scratch_shapes=[pltpu.VMEM((two_b, 10), jnp.float32)],
    )(*args)


def sharing_forward(kp, x):
    """Sharing.forward. x: (B, 2, 14, 14) -> (out (B,2), x1 (B,10), x2 (B,10))."""
    B = x.shape[0]
    # Batch both shared-weight branches: rows [digit-0 batch | digit-1 batch].
    xd = jnp.transpose(x, (1, 0, 2, 3)).reshape(2 * B, 14 * 14)
    out, x1, x2 = _fused_sharing_call(xd, kp)
    return out, x1, x2

# TODO(synk): the PyTorch `train` method (SGD + CrossEntropyLoss loop) is
# host-side training glue and is intentionally not translated to a kernel.


# ------------- one-time (outside-jit) weight layout preparation --------------

def _build_conv1_matrix(conv1_w, conv1_b):
    """conv1 (1->24, 5x5) as a dense (196, 4*G) Toeplitz matrix.

    Output column = s*G + (ph*5+pw)*24 + oc, where s = dh*2+dw is the offset
    inside the 2x2 pooling window and (oh, ow) = (2ph+dh, 2pw+dw).
    Columns [600, G) of each group are zero padding (kept zero through pool).
    """
    w = np.asarray(conv1_w, np.float32)                # (24, 1, 5, 5)
    b = np.asarray(conv1_b, np.float32)                # (24,)
    W = np.zeros((14 * 14, 4 * _POOL_GROUP), np.float32)
    bias = np.zeros((4 * _POOL_GROUP,), np.float32)
    for dh in range(2):
        for dw in range(2):
            g = (dh * 2 + dw) * _POOL_GROUP
            for ph in range(5):
                for pw in range(5):
                    oh, ow = 2 * ph + dh, 2 * pw + dw
                    col = g + (ph * 5 + pw) * 24
                    bias[col:col + 24] = b
                    for kh in range(5):
                        for kw in range(5):
                            row = (oh + kh) * 14 + (ow + kw)
                            W[row, col:col + 24] = w[:, 0, kh, kw]
    return jnp.asarray(W), jnp.asarray(bias)[None, :]


def _build_conv2_matrix(conv2_w, conv2_b):
    """conv2 (24->48, 3x3) as a dense (G, 432) Toeplitz matrix.

    Input row = (ph*5+pw)*24 + ic  (pooled NHWC order, rows >= 600 are zero).
    Output col = oc*9 + oh*3 + ow  (torch NCHW flatten order for fc1).
    """
    w = np.asarray(conv2_w, np.float32)                # (48, 24, 3, 3)
    W = np.zeros((_POOL_GROUP, 48 * 3 * 3), np.float32)
    for oh in range(3):
        for ow in range(3):
            for kh in range(3):
                for kw in range(3):
                    ph, pw = oh + kh, ow + kw
                    rs = (ph * 5 + pw) * 24
                    W[rs:rs + 24, (oh * 3 + ow)::9] = w[:, :, kh, kw].T
    bias = np.repeat(np.asarray(conv2_b, np.float32), 9)
    return jnp.asarray(W), jnp.asarray(bias)[None, :]


def prepare_params(params):
    """Hoist all weight layout transforms out of the jitted forward."""
    conv1_W, conv1_b = _build_conv1_matrix(params["conv1_w"], params["conv1_b"])
    conv2_W, conv2_b = _build_conv2_matrix(params["conv2_w"], params["conv2_b"])
    fc2_w = np.asarray(params["fc2_w"], np.float32)    # (H, 20)
    return {
        "conv1_W": conv1_W, "conv1_b": conv1_b,
        "conv2_W": conv2_W, "conv2_b": conv2_b,
        "fc1_W": jnp.asarray(np.asarray(params["fc1_w"], np.float32).T),
        "fc1_b": jnp.asarray(np.asarray(params["fc1_b"], np.float32))[None, :],
        "fc2a_W": jnp.asarray(np.ascontiguousarray(fc2_w[:, :10].T)),
        "fc2b_W": jnp.asarray(np.ascontiguousarray(fc2_w[:, 10:].T)),
        "fc2_b": jnp.asarray(np.asarray(params["fc2_b"], np.float32))[None, :],
        "fc3_W": jnp.asarray(np.asarray(params["fc3_w"], np.float32).T),
        "fc3_b": jnp.asarray(np.asarray(params["fc3_b"], np.float32))[None, :],
    }


# --------------------------- parameter init ----------------------------------

def _uniform(key, shape, bound):
    return jax.random.uniform(key, shape, jnp.float32, -bound, bound)


def init_params(key, nb_hidden):
    ks = jax.random.split(key, 10)

    def conv_init(kw, kb, oc, ic, ksz):
        bound = 1.0 / math.sqrt(ic * ksz * ksz)
        return _uniform(kw, (oc, ic, ksz, ksz), bound), _uniform(kb, (oc,), bound)

    def fc_init(kw, kb, outf, inf):
        bound = 1.0 / math.sqrt(inf)
        return _uniform(kw, (outf, inf), bound), _uniform(kb, (outf,), bound)

    p = {}
    p["conv1_w"], p["conv1_b"] = conv_init(ks[0], ks[1], 24, 1, 5)
    p["conv2_w"], p["conv2_b"] = conv_init(ks[2], ks[3], 48, 24, 3)
    p["fc1_w"], p["fc1_b"] = fc_init(ks[4], ks[5], 10, 48 * 3 * 3)
    p["fc2_w"], p["fc2_b"] = fc_init(ks[6], ks[7], nb_hidden, 2 * 10)
    p["fc3_w"], p["fc3_b"] = fc_init(ks[8], ks[9], 2, nb_hidden)
    return p


# --------------------- plain-JAX reference (for checking) --------------------

def _im2col(x_nchw, k):
    B, C, H, W = x_nchw.shape
    OH, OW = H - k + 1, W - k + 1
    cols = []
    for dh in range(k):
        for dw in range(k):
            cols.append(x_nchw[:, :, dh:dh + OH, dw:dw + OW])
    p = jnp.stack(cols, axis=0).reshape(k, k, B, C, OH, OW)
    p = p.transpose(2, 4, 5, 3, 0, 1)
    return p.reshape(B * OH * OW, C * k * k)


def _ref_classify(params, xi):
    B = xi.shape[0]
    p1 = _im2col(xi, 5)
    c1 = p1 @ params["conv1_w"].reshape(24, -1).T + params["conv1_b"]
    c1 = c1.reshape(B, 10, 10, 24)
    pooled = jnp.tanh(jnp.max(c1.reshape(B, 5, 2, 5, 2, 24), axis=(2, 4)))
    p2 = _im2col(pooled.transpose(0, 3, 1, 2), 3)
    c2 = jnp.tanh(p2 @ params["conv2_w"].reshape(48, -1).T + params["conv2_b"])
    c2 = c2.reshape(B, 3, 3, 48).transpose(0, 3, 1, 2).reshape(B, 48 * 9)
    return jnp.tanh(c2 @ params["fc1_w"].T + params["fc1_b"])


def reference_forward(params, x):
    x1 = _ref_classify(params, x[:, 0:1])
    x2 = _ref_classify(params, x[:, 1:2])
    h = jnp.tanh(jnp.concatenate([x1, x2], axis=1) @ params["fc2_w"].T
                 + params["fc2_b"])
    out = h @ params["fc3_w"].T + params["fc3_b"]
    return out, x1, x2


# ----------------------------------- main ------------------------------------

if __name__ == "__main__":
    nb_hidden = 32
    batch = 2

    key = jax.random.PRNGKey(0)
    k_in, k_par = jax.random.split(key)
    x = jax.random.normal(k_in, (batch, 2, 14, 14), dtype=jnp.float32)
    params = init_params(k_par, nb_hidden)
    kparams = prepare_params(params)          # layout transforms hoisted, once

    fwd = jax.jit(sharing_forward)
    out, x1, x2 = fwd(kparams, x)
    jax.block_until_ready((out, x1, x2))

    assert out.shape == (batch, 2)
    assert x1.shape == (batch, 10)
    assert x2.shape == (batch, 10)

    # correctness check against a plain-JAX transcription of the torch module
    ref_out, ref_x1, ref_x2 = jax.jit(reference_forward)(params, x)
    np.testing.assert_allclose(np.asarray(x1), np.asarray(ref_x1), rtol=2e-2, atol=2e-2)
    np.testing.assert_allclose(np.asarray(x2), np.asarray(ref_x2), rtol=2e-2, atol=2e-2)
    np.testing.assert_allclose(np.asarray(out), np.asarray(ref_out), rtol=2e-2, atol=2e-2)

    print("KERNEL_OK")
</pallas_src>

<mosaic_0001>
module attributes {stable_mosaic.version = 11 : i64} {
  func.func @_sharing_fwd_kernel(%arg0: memref<4x196xf32, #tpu.memory_space<vmem>>, %arg1: memref<196x2560xf32, #tpu.memory_space<vmem>>, %arg2: memref<1x2560xf32, #tpu.memory_space<vmem>>, %arg3: memref<640x432xf32, #tpu.memory_space<vmem>>, %arg4: memref<1x432xf32, #tpu.memory_space<vmem>>, %arg5: memref<432x10xf32, #tpu.memory_space<vmem>>, %arg6: memref<1x10xf32, #tpu.memory_space<vmem>>, %arg7: memref<10x32xf32, #tpu.memory_space<vmem>>, %arg8: memref<10x32xf32, #tpu.memory_space<vmem>>, %arg9: memref<1x32xf32, #tpu.memory_space<vmem>>, %arg10: memref<32x2xf32, #tpu.memory_space<vmem>>, %arg11: memref<1x2xf32, #tpu.memory_space<vmem>>, %arg12: memref<2x2xf32, #tpu.memory_space<vmem>>, %arg13: memref<2x10xf32, #tpu.memory_space<vmem>>, %arg14: memref<2x10xf32, #tpu.memory_space<vmem>>, %arg15: memref<4x10xf32, #tpu.memory_space<vmem>>) attributes {dimension_semantics = [], scalar_prefetch = 0 : i64, scratch_operands = 1 : i64, tpu.core_type = #tpu.core_type<tc>} {
    %c0 = arith.constant 0 : index
    %c0_0 = arith.constant 0 : index
    %0 = vector.load %arg0[%c0, %c0_0] : memref<4x196xf32, #tpu.memory_space<vmem>>, vector<4x196xf32>
    %c0_1 = arith.constant 0 : index
    %c0_2 = arith.constant 0 : index
    %1 = vector.load %arg1[%c0_1, %c0_2] : memref<196x2560xf32, #tpu.memory_space<vmem>>, vector<196x2560xf32>
    %cst = arith.constant dense<0.000000e+00> : vector<4x2560xf32>
    %2 = tpu.matmul %0, %1, %cst {dimension_numbers = #tpu.dot_dimension_numbers<[1], [0], [0], [1], [0, 0, 1, 1], [], []>} : vector<4x196xf32>, vector<196x2560xf32>, vector<4x2560xf32> -> vector<4x2560xf32>
    %c0_3 = arith.constant 0 : index
    %c0_4 = arith.constant 0 : index
    %3 = vector.load %arg2[%c0_3, %c0_4] : memref<1x2560xf32, #tpu.memory_space<vmem>>, vector<1x2560xf32>
    %4 = vector.broadcast %3 : vector<1x2560xf32> to vector<4x2560xf32>
    %5 = arith.addf %2, %4 : vector<4x2560xf32>
    %6 = vector.extract_strided_slice %5 {offsets = [0, 0], sizes = [4, 640], strides = [1, 1]} : vector<4x2560xf32> to vector<4x640xf32>
    %7 = vector.extract_strided_slice %5 {offsets = [0, 640], sizes = [4, 640], strides = [1, 1]} : vector<4x2560xf32> to vector<4x640xf32>
    %8 = arith.maximumf %6, %7 : vector<4x640xf32>
    %9 = vector.extract_strided_slice %5 {offsets = [0, 1280], sizes = [4, 640], strides = [1, 1]} : vector<4x2560xf32> to vector<4x640xf32>
    %10 = vector.extract_strided_slice %5 {offsets = [0, 1920], sizes = [4, 640], strides = [1, 1]} : vector<4x2560xf32> to vector<4x640xf32>
    %11 = arith.maximumf %9, %10 : vector<4x640xf32>
    %12 = arith.maximumf %8, %11 : vector<4x640xf32>
    %13 = math.tanh %12 : vector<4x640xf32>
    %c0_5 = arith.constant 0 : index
    %c0_6 = arith.constant 0 : index
    %14 = vector.load %arg3[%c0_5, %c0_6] : memref<640x432xf32, #tpu.memory_space<vmem>>, vector<640x432xf32>
    %cst_7 = arith.constant dense<0.000000e+00> : vector<4x432xf32>
    %15 = tpu.matmul %13, %14, %cst_7 {dimension_numbers = #tpu.dot_dimension_numbers<[1], [0], [0], [1], [0, 0, 1, 1], [], []>} : vector<4x640xf32>, vector<640x432xf32>, vector<4x432xf32> -> vector<4x432xf32>
    %c0_8 = arith.constant 0 : index
    %c0_9 = arith.constant 0 : index
    %16 = vector.load %arg4[%c0_8, %c0_9] : memref<1x432xf32, #tpu.memory_space<vmem>>, vector<1x432xf32>
    %17 = vector.broadcast %16 : vector<1x432xf32> to vector<4x432xf32>
    %18 = arith.addf %15, %17 : vector<4x432xf32>
    %19 = math.tanh %18 : vector<4x432xf32>
    %c0_10 = arith.constant 0 : index
    %c0_11 = arith.constant 0 : index
    %20 = vector.load %arg5[%c0_10, %c0_11] : memref<432x10xf32, #tpu.memory_space<vmem>>, vector<432x10xf32>
    %cst_12 = arith.constant dense<0.000000e+00> : vector<4x10xf32>
    %21 = tpu.matmul %19, %20, %cst_12 {dimension_numbers = #tpu.dot_dimension_numbers<[1], [0], [0], [1], [0, 0, 1, 1], [], []>} : vector<4x432xf32>, vector<432x10xf32>, vector<4x10xf32> -> vector<4x10xf32>
    %c0_13 = arith.constant 0 : index
    %c0_14 = arith.constant 0 : index
    %22 = vector.load %arg6[%c0_13, %c0_14] : memref<1x10xf32, #tpu.memory_space<vmem>>, vector<1x10xf32>
    %23 = vector.broadcast %22 : vector<1x10xf32> to vector<4x10xf32>
    %24 = arith.addf %21, %23 : vector<4x10xf32>
    %25 = math.tanh %24 : vector<4x10xf32>
    %c0_15 = arith.constant 0 : index
    %c0_16 = arith.constant 0 : index
    %26 = vector.load %arg15[%c0_15, %c0_16] : memref<4x10xf32, #tpu.memory_space<vmem>>, vector<4x10xf32>
    tpu.vector_store %arg15[%c0_15, %c0_16], %25 {strides = array<i32>} : memref<4x10xf32, #tpu.memory_space<vmem>>, vector<4x10xf32>,
    %c0_17 = arith.constant 0 : index
    %c0_18 = arith.constant 0 : index
    %27 = vector.load %arg15[%c0_17, %c0_18] : memref<4x10xf32, #tpu.memory_space<vmem>>, vector<2x10xf32>
    %c2 = arith.constant 2 : index
    %c0_19 = arith.constant 0 : index
    %28 = vector.load %arg15[%c2, %c0_19] : memref<4x10xf32, #tpu.memory_space<vmem>>, vector<2x10xf32>
    %c0_20 = arith.constant 0 : index
    %c0_21 = arith.constant 0 : index
    %29 = vector.load %arg13[%c0_20, %c0_21] : memref<2x10xf32, #tpu.memory_space<vmem>>, vector<2x10xf32>
    tpu.vector_store %arg13[%c0_20, %c0_21], %27 {strides = array<i32>} : memref<2x10xf32, #tpu.memory_space<vmem>>, vector<2x10xf32>,
    %c0_22 = arith.constant 0 : index
    %c0_23 = arith.constant 0 : index
    %30 = vector.load %arg14[%c0_22, %c0_23] : memref<2x10xf32, #tpu.memory_space<vmem>>, vector<2x10xf32>
    tpu.vector_store %arg14[%c0_22, %c0_23], %28 {strides = array<i32>} : memref<2x10xf32, #tpu.memory_space<vmem>>, vector<2x10xf32>,
    %c0_24 = arith.constant 0 : index
    %c0_25 = arith.constant 0 : index
    %31 = vector.load %arg7[%c0_24, %c0_25] : memref<10x32xf32, #tpu.memory_space<vmem>>, vector<10x32xf32>
    %cst_26 = arith.constant dense<0.000000e+00> : vector<2x32xf32>
    %32 = tpu.matmul %27, %31, %cst_26 {dimension_numbers = #tpu.dot_dimension_numbers<[1], [0], [0], [1], [0, 0, 1, 1], [], []>} : vector<2x10xf32>, vector<10x32xf32>, vector<2x32xf32> -> vector<2x32xf32>
    %c0_27 = arith.constant 0 : index
    %c0_28 = arith.constant 0 : index
    %33 = vector.load %arg8[%c0_27, %c0_28] : memref<10x32xf32, #tpu.memory_space<vmem>>, vector<10x32xf32>
    %cst_29 = arith.constant dense<0.000000e+00> : vector<2x32xf32>
    %34 = tpu.matmul %28, %33, %cst_29 {dimension_numbers = #tpu.dot_dimension_numbers<[1], [0], [0], [1], [0, 0, 1, 1], [], []>} : vector<2x10xf32>, vector<10x32xf32>, vector<2x32xf32> -> vector<2x32xf32>
    %35 = arith.addf %32, %34 : vector<2x32xf32>
    %c0_30 = arith.constant 0 : index
    %c0_31 = arith.constant 0 : index
    %36 = vector.load %arg9[%c0_30, %c0_31] : memref<1x32xf32, #tpu.memory_space<vmem>>, vector<1x32xf32>
    %37 = vector.broadcast %36 : vector<1x32xf32> to vector<2x32xf32>
    %38 = arith.addf %35, %37 : vector<2x32xf32>
    %39 = math.tanh %38 : vector<2x32xf32>
    %c0_32 = arith.constant 0 : index
    %c0_33 = arith.constant 0 : index
    %40 = vector.load %arg10[%c0_32, %c0_33] : memref<32x2xf32, #tpu.memory_space<vmem>>, vector<32x2xf32>
    %cst_34 = arith.constant dense<0.000000e+00> : vector<2x2xf32>
    %41 = tpu.matmul %39, %40, %cst_34 {dimension_numbers = #tpu.dot_dimension_numbers<[1], [0], [0], [1], [0, 0, 1, 1], [], []>} : vector<2x32xf32>, vector<32x2xf32>, vector<2x2xf32> -> vector<2x2xf32>
    %c0_35 = arith.constant 0 : index
    %c0_36 = arith.constant 0 : index
    %42 = vector.load %arg11[%c0_35, %c0_36] : memref<1x2xf32, #tpu.memory_space<vmem>>, vector<1x2xf32>
    %43 = vector.broadcast %42 : vector<1x2xf32> to vector<2x2xf32>
    %44 = arith.addf %41, %43 : vector<2x2xf32>
    %c0_37 = arith.constant 0 : index
    %c0_38 = arith.constant 0 : index
    %45 = vector.load %arg12[%c0_37, %c0_38] : memref<2x2xf32, #tpu.memory_space<vmem>>, vector<2x2xf32>
    tpu.vector_store %arg12[%c0_37, %c0_38], %44 {strides = array<i32>} : memref<2x2xf32, #tpu.memory_space<vmem>>, vector<2x2xf32>,
    return
  }
}

</mosaic_0001>

<bundles_post_ra>
// kernel: sharing_forward.1
= control target key start
LH: loop header
LB: loop body
LE: loop exit
PB: predicated region body
PF: predicated region fallthrough
CT: control target
= control target key end

     0   :  { %20 = vsyncpa [#allocation4], 0  ;;  %vm655_vm0 = vcmask 556032   ;;  %vm658_vm1 = vcmask 1043456   ;;  %s6825_s0 = inlined_call_operand.vmem [shape: f32[4,196], index: 0, kind: input, shape index: {}]   ;;  %s6826_s1 = inlined_call_operand.vmem [shape: f32[196,2560], index: 1, kind: input, shape index: {}]   ;;  %s6827_s2 = inlined_call_operand.vmem [shape: f32[1,2560], index: 2, kind: input, shape index: {}]   ;;  %s6828_s3 = inlined_call_operand.vmem [shape: f32[640,432], index: 3, kind: input, shape index: {}]   ;;  %s6829_s4 = inlined_call_operand.vmem [shape: f32[1,432], index: 4, kind: input, shape index: {}]   ;;  %s6830_s5 = inlined_call_operand.vmem [shape: f32[432,10], index: 5, kind: input, shape index: {}]   ;;  %s6831_s6 = inlined_call_operand.vmem [shape: f32[1,10], index: 6, kind: input, shape index: {}]   ;;  %s6832_s7 = inlined_call_operand.vmem [shape: f32[10,32], index: 7, kind: input, shape index: {}]   ;;  %s6833_s8 = inlined_call_operand.vmem [shape: f32[10,32], index: 8, kind: input, shape index: {}]   ;;  %s6834_s9 = inlined_call_operand.vmem [shape: f32[1,32], index: 9, kind: input, shape index: {}]   ;;  %s6835_s10 = inlined_call_operand.vmem [shape: f32[32,2], index: 10, kind: input, shape index: {}]   ;;  %s6836_s11 = inlined_call_operand.vmem [shape: f32[1,2], index: 11, kind: input, shape index: {}]   ;;  %s6837_s12 = inlined_call_operand.hbm [shape: f32[2,2], index: 12, kind: output, shape index: {0}]   ;;  %s6838_s13 = inlined_call_operand.hbm [shape: f32[2,10], index: 13, kind: output, shape index: {1}]   ;;  %s6839_s14 = inlined_call_operand.hbm [shape: f32[2,10], index: 14, kind: output, shape index: {2}]  }
   0x1   :  { %v48_v0 = vld [vmem:[%s6826_s1 + $0x8] sm:$0xff]  ;;  %v50_v2 = vld [vmem:[%s6826_s1 + $0x18] sm:$0xff]  ;;  %v47_v5 = vld [vmem:[%s6826_s1] sm:$0xff] }
   0x2   :  { %v68_v1 = vld [vmem:[%s6826_s1 + $0xa8] sm:$0xff]  ;;  %v70_v4 = vld [vmem:[%s6826_s1 + $0xb8] sm:$0xff]  ;;  %v67_v6 = vld [vmem:[%s6826_s1 + $0xa0] sm:$0xff] }
   0x3   :  { %v2839_v3 = vpack.c.bf16 %v68_v1, %v48_v0  ;;  %v2887_v7 = vpack.c.bf16 %v70_v4, %v50_v2  ;;  %v2841_v8 = vpack.c.bf16 %v67_v6, %v47_v5  ;;  %v49_v9 = vld [vmem:[%s6826_s1 + $0x10] sm:$0xff]  ;;  %v88_v11 = vld [vmem:[%s6826_s1 + $0x148] sm:$0xff]  ;;  %v90_v14 = vld [vmem:[%s6826_s1 + $0x158] sm:$0xff] }
   0x4   :  { %v69_v10 = vld [vmem:[%s6826_s1 + $0xb0] sm:$0xff]  ;;  %v108_v13 = vld [vmem:[%s6826_s1 + $0x1e8] sm:$0xff]  ;;  %v110_v15 = vld [vmem:[%s6826_s1 + $0x1f8] sm:$0xff] }
   0x5   :  { %2840 = vmatprep.subr.bf16.mxu0 %v2839_v3  ;;  %v2889_v12 = vpack.c.bf16 %v69_v10, %v49_v9  ;;  %2888 = vmatprep.subr.bf16.mxu1 %v2887_v7  ;;  %v2843_v16 = vpack.c.bf16 %v108_v13, %v88_v11  ;;  %v2891_v17 = vpack.c.bf16 %v110_v15, %v90_v14  ;;  %v87_v18 = vld [vmem:[%s6826_s1 + $0x140] sm:$0xff]  ;;  %v89_v20 = vld [vmem:[%s6826_s1 + $0x150] sm:$0xff]  ;;  %v128_v23 = vld [vmem:[%s6826_s1 + $0x288] sm:$0xff] }
   0x6   :  { %2842 = vmatpush1.bf16.msra.mxu0 %v2841_v8  ;;  %v107_v19 = vld [vmem:[%s6826_s1 + $0x1e0] sm:$0xff]  ;;  %v109_v22 = vld [vmem:[%s6826_s1 + $0x1f0] sm:$0xff]  ;;  %v148_v24 = vld [vmem:[%s6826_s1 + $0x328] sm:$0xff] }
   0x7   :  { %2890 = vmatpush1.bf16.msra.mxu1 %v2889_v12  ;;  %v2845_v21 = vpack.c.bf16 %v107_v19, %v87_v18  ;;  %2844 = vmatprep.subr.bf16.mxu0 %v2843_v16  ;;  %v2893_v25 = vpack.c.bf16 %v109_v22, %v89_v20  ;;  %v2847_v26 = vpack.c.bf16 %v148_v24, %v128_v23  ;;  %v130_v27 = vld [vmem:[%s6826_s1 + $0x298] sm:$0xff]  ;;  %v127_v29 = vld [vmem:[%s6826_s1 + $0x280] sm:$0xff]  ;;  %v129_v32 = vld [vmem:[%s6826_s1 + $0x290] sm:$0xff] }
   0x8   :  { %2892 = vmatprep.subr.bf16.mxu1 %v2891_v17  ;;  %v150_v28 = vld [vmem:[%s6826_s1 + $0x338] sm:$0xff]  ;;  %v147_v31 = vld [vmem:[%s6826_s1 + $0x320] sm:$0xff]  ;;  %v149_v33 = vld [vmem:[%s6826_s1 + $0x330] sm:$0xff] }
   0x9   :  { %v2895_v30 = vpack.c.bf16 %v150_v28, %v130_v27  ;;  %v2849_v34 = vpack.c.bf16 %v147_v31, %v127_v29  ;;  %v168_v35 = vld [vmem:[%s6826_s1 + $0x3c8] sm:$0xff]  ;;  %v170_v37 = vld [vmem:[%s6826_s1 + $0x3d8] sm:$0xff]  ;;  %v2897_v38 = vpack.c.bf16 %v149_v33, %v129_v32  ;;  %v167_v41 = vld [vmem:[%s6826_s1 + $0x3c0] sm:$0xff] }
   0xa   :  { %2846 = vmatpush1.bf16.msra.mxu0 %v2845_v21  ;;  %v188_v36 = vld [vmem:[%s6826_s1 + $0x468] sm:$0xff]  ;;  %v190_v40 = vld [vmem:[%s6826_s1 + $0x478] sm:$0xff]  ;;  %v187_v42 = vld [vmem:[%s6826_s1 + $0x460] sm:$0xff] }
   0xb   :  { %2894 = vmatpush1.bf16.msra.mxu1 %v2893_v25  ;;  %2848 = vmatprep.subr.bf16.mxu0 %v2847_v26  ;;  %v2851_v39 = vpack.c.bf16 %v188_v36, %v168_v35  ;;  %v2899_v43 = vpack.c.bf16 %v190_v40, %v170_v37  ;;  %v169_v44 = vld [vmem:[%s6826_s1 + $0x3d0] sm:$0xff]  ;;  %v208_v46 = vld [vmem:[%s6826_s1 + $0x508] sm:$0xff]  ;;  %v210_v48 = vld [vmem:[%s6826_s1 + $0x518] sm:$0xff]  ;;  %v2853_v50 = vpack.c.bf16 %v187_v42, %v167_v41 }
   0xc   :  { %2896 = vmatprep.subr.bf16.mxu1 %v2895_v30  ;;  %v189_v45 = vld [vmem:[%s6826_s1 + $0x470] sm:$0xff]  ;;  %v228_v47 = vld [vmem:[%s6826_s1 + $0x5a8] sm:$0xff]  ;;  %v230_v49 = vld [vmem:[%s6826_s1 + $0x5b8] sm:$0xff] }
   0xd   :  { %v2901_v51 = vpack.c.bf16 %v189_v45, %v169_v44  ;;  %v2855_v52 = vpack.c.bf16 %v228_v47, %v208_v46  ;;  %v207_v53 = vld [vmem:[%s6826_s1 + $0x500] sm:$0xff]  ;;  %v209_v55 = vld [vmem:[%s6826_s1 + $0x510] sm:$0xff]  ;;  %v2903_v56 = vpack.c.bf16 %v230_v49, %v210_v48  ;;  %v248_v58 = vld [vmem:[%s6826_s1 + $0x648] sm:$0xff] }
   0xe   :  { %2850 = vmatpush1.bf16.msra.mxu0 %v2849_v34  ;;  %v227_v54 = vld [vmem:[%s6826_s1 + $0x5a0] sm:$0xff]  ;;  %v229_v57 = vld [vmem:[%s6826_s1 + $0x5b0] sm:$0xff]  ;;  %v268_v59 = vld [vmem:[%s6826_s1 + $0x6e8] sm:$0xff] }
   0xf   :  { %2898 = vmatpush1.bf16.msra.mxu1 %v2897_v38  ;;  %2852 = vmatprep.subr.bf16.mxu0 %v2851_v39  ;;  %v250_v60 = vld [vmem:[%s6826_s1 + $0x658] sm:$0xff]  ;;  %v2857_v62 = vpack.c.bf16 %v227_v54, %v207_v53  ;;  %v2905_v63 = vpack.c.bf16 %v229_v57, %v209_v55  ;;  %v2859_v0 = vpack.c.bf16 %v268_v59, %v248_v58  ;;  %v247_v1 = vld [vmem:[%s6826_s1 + $0x640] sm:$0xff]  ;;  %v249_v3 = vld [vmem:[%s6826_s1 + $0x650] sm:$0xff] }
  0x10   :  { %2900 = vmatprep.subr.bf16.mxu1 %v2899_v43  ;;  %v270_v61 = vld [vmem:[%s6826_s1 + $0x6f8] sm:$0xff]  ;;  %v267_v2 = vld [vmem:[%s6826_s1 + $0x6e0] sm:$0xff]  ;;  %v269_v5 = vld [vmem:[%s6826_s1 + $0x6f0] sm:$0xff] }
  0x11   :  { %v2907_v4 = vpack.c.bf16 %v270_v61, %v250_v60  ;;  %v288_v6 = vld [vmem:[%s6826_s1 + $0x788] sm:$0xff]  ;;  %v290_v8 = vld [vmem:[%s6826_s1 + $0x798] sm:$0xff]  ;;  %v2861_v10 = vpack.c.bf16 %v267_v2, %v247_v1  ;;  %v2909_v11 = vpack.c.bf16 %v269_v5, %v249_v3  ;;  %v287_v13 = vld [vmem:[%s6826_s1 + $0x780] sm:$0xff] }
  0x12   :  { %2854 = vmatpush1.bf16.msra.mxu0 %v2853_v50  ;;  %v308_v7 = vld [vmem:[%s6826_s1 + $0x828] sm:$0xff]  ;;  %v310_v9 = vld [vmem:[%s6826_s1 + $0x838] sm:$0xff]  ;;  %v307_v14 = vld [vmem:[%s6826_s1 + $0x820] sm:$0xff] }
  0x13   :  { %2902 = vmatpush1.bf16.msra.mxu1 %v2901_v51  ;;  %2856 = vmatprep.subr.bf16.mxu0 %v2855_v52  ;;  %v2863_v12 = vpack.c.bf16 %v308_v7, %v288_v6  ;;  %v289_v15 = vld [vmem:[%s6826_s1 + $0x790] sm:$0xff]  ;;  %v2911_v16 = vpack.c.bf16 %v310_v9, %v290_v8  ;;  %v328_v18 = vld [vmem:[%s6826_s1 + $0x8c8] sm:$0xff]  ;;  %v330_v20 = vld [vmem:[%s6826_s1 + $0x8d8] sm:$0xff]  ;;  %v2865_v22 = vpack.c.bf16 %v307_v14, %v287_v13 }
  0x14   :  { %2904 = vmatprep.subr.bf16.mxu1 %v2903_v56  ;;  %v309_v17 = vld [vmem:[%s6826_s1 + $0x830] sm:$0xff]  ;;  %v348_v19 = vld [vmem:[%s6826_s1 + $0x968] sm:$0xff]  ;;  %v350_v21 = vld [vmem:[%s6826_s1 + $0x978] sm:$0xff] }
  0x15   :  { %v2913_v23 = vpack.c.bf16 %v309_v17, %v289_v15  ;;  %v2867_v24 = vpack.c.bf16 %v348_v19, %v328_v18  ;;  %v327_v25 = vld [vmem:[%s6826_s1 + $0x8c0] sm:$0xff]  ;;  %v329_v27 = vld [vmem:[%s6826_s1 + $0x8d0] sm:$0xff]  ;;  %v2915_v28 = vpack.c.bf16 %v350_v21, %v330_v20  ;;  %v368_v30 = vld [vmem:[%s6826_s1 + $0xa08] sm:$0xff] }
  0x16   :  { %2858 = vmatpush1.bf16.msra.mxu0 %v2857_v62  ;;  %v347_v26 = vld [vmem:[%s6826_s1 + $0x960] sm:$0xff]  ;;  %v349_v29 = vld [vmem:[%s6826_s1 + $0x970] sm:$0xff]  ;;  %v388_v31 = vld [vmem:[%s6826_s1 + $0xaa8] sm:$0xff] }
  0x17   :  { %2906 = vmatpush1.bf16.msra.mxu1 %v2905_v63  ;;  %2860 = vmatprep.subr.bf16.mxu0 %v2859_v0  ;;  %v370_v32 = vld [vmem:[%s6826_s1 + $0xa18] sm:$0xff]  ;;  %v2869_v34 = vpack.c.bf16 %v347_v26, %v327_v25  ;;  %v2917_v35 = vpack.c.bf16 %v349_v29, %v329_v27  ;;  %v2871_v36 = vpack.c.bf16 %v388_v31, %v368_v30  ;;  %v367_v37 = vld [vmem:[%s6826_s1 + $0xa00] sm:$0xff]  ;;  %v369_v39 = vld [vmem:[%s6826_s1 + $0xa10] sm:$0xff] }
  0x18   :  { %2908 = vmatprep.subr.bf16.mxu1 %v2907_v4  ;;  %v390_v33 = vld [vmem:[%s6826_s1 + $0xab8] sm:$0xff]  ;;  %v387_v38 = vld [vmem:[%s6826_s1 + $0xaa0] sm:$0xff]  ;;  %v389_v41 = vld [vmem:[%s6826_s1 + $0xab0] sm:$0xff] }
  0x19   :  { %v2919_v40 = vpack.c.bf16 %v390_v33, %v370_v32  ;;  %v408_v42 = vld [vmem:[%s6826_s1 + $0xb48] sm:$0xff]  ;;  %v410_v44 = vld [vmem:[%s6826_s1 + $0xb58] sm:$0xff]  ;;  %v2873_v46 = vpack.c.bf16 %v387_v38, %v367_v37  ;;  %v407_v47 = vld [vmem:[%s6826_s1 + $0xb40] sm:$0xff]  ;;  %v2921_v48 = vpack.c.bf16 %v389_v41, %v369_v39 }
  0x1a   :  { %2862 = vmatpush1.bf16.msra.mxu0 %v2861_v10  ;;  %v428_v43 = vld [vmem:[%s6826_s1 + $0xbe8] sm:$0xff]  ;;  %v430_v45 = vld [vmem:[%s6826_s1 + $0xbf8] sm:$0xff]  ;;  %v427_v50 = vld [vmem:[%s6826_s1 + $0xbe0] sm:$0xff] }
  0x1b   :  { %2910 = vmatpush1.bf16.msra.mxu1 %v2909_v11  ;;  %2864 = vmatprep.subr.bf16.mxu0 %v2863_v12  ;;  %v2875_v49 = vpack.c.bf16 %v428_v43, %v408_v42  ;;  %v409_v51 = vld [vmem:[%s6826_s1 + $0xb50] sm:$0xff]  ;;  %v4154_v52 = vld [vmem:[%s6825_s0] sm:$0xff]  ;;  %v2923_v53 = vpack.c.bf16 %v430_v45, %v410_v44  ;;  %v448_v55 = vld [vmem:[%s6826_s1 + $0xc88] sm:$0xff]  ;;  %v2877_v60 = vpack.c.bf16 %v427_v50, %v407_v47 }
  0x1c   :  { %2912 = vmatprep.subr.bf16.mxu1 %v2911_v16  ;;  %v429_v54 = vld [vmem:[%s6826_s1 + $0xbf0] sm:$0xff]  ;;  %v468_v56 = vld [vmem:[%s6826_s1 + $0xd28] sm:$0xff]  ;;  %v4167_v57 = vcombine.high %v4154_v52, %v4154_v52  ;;  %v450_v58 = vld [vmem:[%s6826_s1 + $0xc98] sm:$0xff] }
  0x1d   :  { %v470_v59 = vld [vmem:[%s6826_s1 + $0xd38] sm:$0xff]  ;;  %v2925_v61 = vpack.c.bf16 %v429_v54, %v409_v51  ;;  %v2879_v62 = vpack.c.bf16 %v468_v56, %v448_v55  ;;  %v447_v63 = vld [vmem:[%s6826_s1 + $0xc80] sm:$0xff]  ;;  %v449_v1 = vld [vmem:[%s6826_s1 + $0xc90] sm:$0xff] }
  0x1e   :  { %2866 = vmatpush1.bf16.msra.mxu0 %v2865_v22  ;;  %2731 = vmatprep.mubr.msk.f32.mxu0 %vm655_vm0, %v4167_v57  ;;  %v467_v0 = vld [vmem:[%s6826_s1 + $0xd20] sm:$0xff]  ;;  %v2927_v2 = vpack.c.bf16 %v470_v59, %v450_v58  ;;  %v469_v3 = vld [vmem:[%s6826_s1 + $0xd30] sm:$0xff]  ;;  %v488_v4 = vld [vmem:[%s6826_s1 + $0xdc8] sm:$0xff] }
  0x1f   :  { %2914 = vmatpush1.bf16.msra.mxu1 %v2913_v23  ;;  %2868 = vmatprep.subr.bf16.mxu0 %v2867_v24  ;;  %v508_v5 = vld [vmem:[%s6826_s1 + $0xe68] sm:$0xff]  ;;  %v490_v6 = vld [vmem:[%s6826_s1 + $0xdd8] sm:$0xff]  ;;  %v2881_v8 = vpack.c.bf16 %v467_v0, %v447_v63  ;;  %v2929_v9 = vpack.c.bf16 %v469_v3, %v449_v1  ;;  %v487_v11 = vld [vmem:[%s6826_s1 + $0xdc0] sm:$0xff] }
  0x20   :  { %2916 = vmatprep.subr.bf16.mxu1 %v2915_v28  ;;  %2734 = vmatprep.mubr.msk.f32.mxu1 %vm655_vm0, %v4167_v57  ;;  %v510_v7 = vld [vmem:[%s6826_s1 + $0xe78] sm:$0xff]  ;;  %v2883_v10 = vpack.c.bf16 %v508_v5, %v488_v4  ;;  %v507_v12 = vld [vmem:[%s6826_s1 + $0xe60] sm:$0xff]  ;;  %v489_v14 = vld [vmem:[%s6826_s1 + $0xdd0] sm:$0xff] }
  0x21   :  { %v2931_v13 = vpack.c.bf16 %v510_v7, %v490_v6  ;;  %v509_v15 = vld [vmem:[%s6826_s1 + $0xe70] sm:$0xff]  ;;  %v2885_v16 = vpack.c.bf16 %v507_v12, %v487_v11  ;;  %v528_v18 = vld [vmem:[%s6826_s1 + $0xf08] sm:$0xf]  ;;  %v530_v19 = vld [vmem:[%s6826_s1 + $0xf18] sm:$0xf] }
  0x22   :  { %2870 = vmatpush1.bf16.msra.mxu0 %v2869_v34  ;;  %v2933_v17 = vpack.c.bf16 %v509_v15, %v489_v14  ;;  %v52_v20 = vld [vmem:[%s6826_s1 + $0x28] sm:$0xff]  ;;  %v527_v21 = vld [vmem:[%s6826_s1 + $0xf00] sm:$0xf]  ;;  %v54_v23 = vld [vmem:[%s6826_s1 + $0x38] sm:$0xff] }
  0x23   :  { %2918 = vmatpush1.bf16.msra.mxu1 %v2917_v35  ;;  %2872 = vmatprep.subr.bf16.mxu0 %v2871_v36  ;;  %v72_v22 = vld [vmem:[%s6826_s1 + $0xc8] sm:$0xff]  ;;  %v74_v24 = vld [vmem:[%s6826_s1 + $0xd8] sm:$0xff]  ;;  %v51_v25 = vld [vmem:[%s6826_s1 + $0x20] sm:$0xff] }
  0x24   :  { %2920 = vmatprep.subr.bf16.mxu1 %v2919_v40  ;;  %v71_v26 = vld [vmem:[%s6826_s1 + $0xc0] sm:$0xff]  ;;  %v53_v27 = vld [vmem:[%s6826_s1 + $0x30] sm:$0xff]  ;;  %v92_v29 = vld [vmem:[%s6826_s1 + $0x168] sm:$0xff]  ;;  %v2935_v32 = vpack.c.bf16 %v72_v22, %v52_v20  ;;  %v2983_v33 = vpack.c.bf16 %v74_v24, %v54_v23 }
  0x25   :  { %v73_v28 = vld [vmem:[%s6826_s1 + $0xd0] sm:$0xff]  ;;  %v112_v30 = vld [vmem:[%s6826_s1 + $0x208] sm:$0xff]  ;;  %v94_v34 = vld [vmem:[%s6826_s1 + $0x178] sm:$0xff]  ;;  %v2937_v36 = vpack.c.bf16 %v71_v26, %v51_v25 }
  0x26   :  { %2874 = vmatpush1.bf16.msra.mxu0 %v2873_v46  ;;  %v529_v31 = vld [vmem:[%s6826_s1 + $0xf10] sm:$0xf]  ;;  %v114_v35 = vld [vmem:[%s6826_s1 + $0x218] sm:$0xff]  ;;  %v2985_v37 = vpack.c.bf16 %v73_v28, %v53_v27  ;;  %v2939_v38 = vpack.c.bf16 %v112_v30, %v92_v29  ;;  %v91_v39 = vld [vmem:[%s6826_s1 + $0x160] sm:$0xff] }
  0x27   :  { %2922 = vmatpush1.bf16.msra.mxu1 %v2921_v48  ;;  %2876 = vmatprep.subr.bf16.mxu0 %v2875_v49  ;;  %v111_v40 = vld [vmem:[%s6826_s1 + $0x200] sm:$0xff]  ;;  %v93_v41 = vld [vmem:[%s6826_s1 + $0x170] sm:$0xff]  ;;  %v2987_v42 = vpack.c.bf16 %v114_v35, %v94_v34  ;;  %v132_v44 = vld [vmem:[%s6826_s1 + $0x2a8] sm:$0xff] }
  0x28   :  { %2924 = vmatprep.subr.bf16.mxu1 %v2923_v53  ;;  %v113_v43 = vld [vmem:[%s6826_s1 + $0x210] sm:$0xff]  ;;  %v152_v45 = vld [vmem:[%s6826_s1 + $0x348] sm:$0xff]  ;;  %v134_v46 = vld [vmem:[%s6826_s1 + $0x2b8] sm:$0xff]  ;;  %v2941_v48 = vpack.c.bf16 %v111_v40, %v91_v39 }
  0x29   :  { %v154_v47 = vld [vmem:[%s6826_s1 + $0x358] sm:$0xff]  ;;  %v2989_v49 = vpack.c.bf16 %v113_v43, %v93_v41  ;;  %v2943_v50 = vpack.c.bf16 %v152_v45, %v132_v44  ;;  %v131_v51 = vld [vmem:[%s6826_s1 + $0x2a0] sm:$0xff]  ;;  %v133_v54 = vld [vmem:[%s6826_s1 + $0x2b0] sm:$0xff] }
  0x2a   :  { %2878 = vmatpush1.bf16.msra.mxu0 %v2877_v60  ;;  %v151_v53 = vld [vmem:[%s6826_s1 + $0x340] sm:$0xff]  ;;  %v2991_v55 = vpack.c.bf16 %v154_v47, %v134_v46  ;;  %v153_v56 = vld [vmem:[%s6826_s1 + $0x350] sm:$0xff]  ;;  %v172_v58 = vld [vmem:[%s6826_s1 + $0x3e8] sm:$0xff] }
  0x2b   :  { %2926 = vmatpush1.bf16.msra.mxu1 %v2925_v61  ;;  %2880 = vmatprep.subr.bf16.mxu0 %v2879_v62  ;;  %v192_v59 = vld [vmem:[%s6826_s1 + $0x488] sm:$0xff]  ;;  %v174_v60 = vld [vmem:[%s6826_s1 + $0x3f8] sm:$0xff]  ;;  %v2945_v62 = vpack.c.bf16 %v151_v53, %v131_v51  ;;  %v2993_v63 = vpack.c.bf16 %v153_v56, %v133_v54  ;;  %v171_v1 = vld [vmem:[%s6826_s1 + $0x3e0] sm:$0xff] }
  0x2c   :  { %2928 = vmatprep.subr.bf16.mxu1 %v2927_v2  ;;  %v194_v61 = vld [vmem:[%s6826_s1 + $0x498] sm:$0xff]  ;;  %v2947_v0 = vpack.c.bf16 %v192_v59, %v172_v58  ;;  %v191_v2 = vld [vmem:[%s6826_s1 + $0x480] sm:$0xff]  ;;  %v173_v3 = vld [vmem:[%s6826_s1 + $0x3f0] sm:$0xff] }
  0x2d   :  { %v2995_v4 = vpack.c.bf16 %v194_v61, %v174_v60  ;;  %v193_v5 = vld [vmem:[%s6826_s1 + $0x490] sm:$0xff]  ;;  %v212_v6 = vld [vmem:[%s6826_s1 + $0x528] sm:$0xff]  ;;  %v231_v14 = vld [vmem:[%s6826_s1 + $0x5c0] sm:$0xff] }
  0x2e   :  { %2882 = vmatpush1.bf16.msra.mxu0 %v2881_v8  ;;  %v232_v7 = vld [vmem:[%s6826_s1 + $0x5c8] sm:$0xff]  ;;  %v214_v8 = vld [vmem:[%s6826_s1 + $0x538] sm:$0xff]  ;;  %v2997_v11 = vpack.c.bf16 %v193_v5, %v173_v3  ;;  %v213_v15 = vld [vmem:[%s6826_s1 + $0x530] sm:$0xff] }
  0x2f   :  { %2930 = vmatpush1.bf16.msra.mxu1 %v2929_v9  ;;  %2884 = vmatprep.subr.bf16.mxu0 %v2883_v10  ;;  %v234_v9 = vld [vmem:[%s6826_s1 + $0x5d8] sm:$0xff]  ;;  %v2949_v10 = vpack.c.bf16 %v191_v2, %v171_v1  ;;  %v2951_v12 = vpack.c.bf16 %v232_v7, %v212_v6  ;;  %v251_v25 = vld [vmem:[%s6826_s1 + $0x660] sm:$0xff]  ;;  %v253_v27 = vld [vmem:[%s6826_s1 + $0x670] sm:$0xff] }
  0x30   :  { %2932 = vmatprep.subr.bf16.mxu1 %v2931_v13  ;;  %v211_v13 = vld [vmem:[%s6826_s1 + $0x520] sm:$0xff]  ;;  %v254_v20 = vld [vmem:[%s6826_s1 + $0x678] sm:$0xff]  ;;  %v273_v29 = vld [vmem:[%s6826_s1 + $0x710] sm:$0xff] }
  0x31   :  { %v2953_v22 = vpack.c.bf16 %v231_v14, %v211_v13  ;;  %v271_v26 = vld [vmem:[%s6826_s1 + $0x700] sm:$0xff]  ;;  %v292_v30 = vld [vmem:[%s6826_s1 + $0x7a8] sm:$0xff]  ;;  %v3005_v35 = vpack.c.bf16 %v273_v29, %v253_v27  ;;  %v293_v39 = vld [vmem:[%s6826_s1 + $0x7b0] sm:$0xff] }
  0x32   :  { %2886 = vmatpush1.bf16.msra.mxu0 %v2885_v16  ;;  %v2999_v16 = vpack.c.bf16 %v234_v9, %v214_v8  ;;  %v2957_v34 = vpack.c.bf16 %v271_v26, %v251_v25  ;;  %v313_v41 = vld [vmem:[%s6826_s1 + $0x850] sm:$0xff]  ;;  %v352_v43 = vld [vmem:[%s6826_s1 + $0x988] sm:$0xff]  ;;  %v334_v44 = vld [vmem:[%s6826_s1 + $0x8f8] sm:$0xff] }
  0x33   :  { %2934 = vmatpush1.bf16.msra.mxu1 %v2933_v17  ;;  %2729 = vmatprep.subr.msk.mxu0 %vm658_vm1, %v528_v18  ;;  %v233_v17 = vld [vmem:[%s6826_s1 + $0x5d0] sm:$0xff]  ;;  %v252_v18 = vld [vmem:[%s6826_s1 + $0x668] sm:$0xff]  ;;  %v354_v45 = vld [vmem:[%s6826_s1 + $0x998] sm:$0xff]  ;;  %v3009_v47 = vpack.c.bf16 %v313_v41, %v293_v39 }
  0x34   :  { %2732 = vmatprep.subr.msk.mxu1 %vm658_vm1, %v530_v19  ;;  %v272_v19 = vld [vmem:[%s6826_s1 + $0x708] sm:$0xff]  ;;  %v3001_v23 = vpack.c.bf16 %v233_v17, %v213_v15  ;;  %v333_v51 = vld [vmem:[%s6826_s1 + $0x8f0] sm:$0xff]  ;;  %v3011_v53 = vpack.c.bf16 %v354_v45, %v334_v44  ;;  %v374_v58 = vld [vmem:[%s6826_s1 + $0xa38] sm:$0xff] }
  0x35   :  { %v2955_v24 = vpack.c.bf16 %v272_v19, %v252_v18  ;;  %v353_v54 = vld [vmem:[%s6826_s1 + $0x990] sm:$0xff]  ;;  %v392_v56 = vld [vmem:[%s6826_s1 + $0xac8] sm:$0xff]  ;;  %v394_v59 = vld [vmem:[%s6826_s1 + $0xad8] sm:$0xff] }
  0x36   :  { %2730 = vmatpush1.msk.msra.mxu0 %vm658_vm1, %v527_v21  ;;  %v274_v21 = vld [vmem:[%s6826_s1 + $0x718] sm:$0xff]  ;;  %v3013_v61 = vpack.c.bf16 %v353_v54, %v333_v51  ;;  %v373_v1 = vld [vmem:[%s6826_s1 + $0xa30] sm:$0xff]  ;;  %v3015_v2 = vpack.c.bf16 %v394_v59, %v374_v58  ;;  %v432_v5 = vld [vmem:[%s6826_s1 + $0xc08] sm:$0xff] }
  0x37   :  { %2733 = vmatpush1.msk.msra.mxu1 %vm658_vm1, %v529_v31  ;;  %784 = vmatmul.mubr.f32.vlgmr.msra.gmra.mrb[0].mxu0 %v4154_v52  ;;  %v3003_v28 = vpack.c.bf16 %v274_v21, %v254_v20  ;;  %v312_v31 = vld [vmem:[%s6826_s1 + $0x848] sm:$0xff]  ;;  %v393_v3 = vld [vmem:[%s6826_s1 + $0xad0] sm:$0xff]  ;;  %v414_v6 = vld [vmem:[%s6826_s1 + $0xb78] sm:$0xff] }
  0x38   :  { %2936 = vmatprep.subr.bf16.mxu0 %v2935_v32  ;;  %2984 = vmatprep.subr.bf16.mxu1 %v2983_v33  ;;  %v294_v32 = vld [vmem:[%s6826_s1 + $0x7b8] sm:$0xff]  ;;  %v3017_v9 = vpack.c.bf16 %v393_v3, %v373_v1  ;;  %v413_v13 = vld [vmem:[%s6826_s1 + $0xb70] sm:$0xff]  ;;  %v472_v17 = vld [vmem:[%s6826_s1 + $0xd48] sm:$0xff] }
  0x39   :  { %855 = vmatmul.mubr.f32.vlgmr.msra.gmra.mrb[0].mxu1 %v4154_v52  ;;  %2938 = vmatpush1.bf16.msra.mxu0 %v2937_v36  ;;  %v314_v33 = vld [vmem:[%s6826_s1 + $0x858] sm:$0xff]  ;;  %v2959_v36 = vpack.c.bf16 %v312_v31, %v292_v30  ;;  %v433_v15 = vld [vmem:[%s6826_s1 + $0xc10] sm:$0xff]  ;;  %v512_v29 = vld [vmem:[%s6826_s1 + $0xe88] sm:$0xff] }
  0x3a   :  { %2986 = vmatpush1.bf16.msra.mxu1 %v2985_v37  ;;  %2940 = vmatprep.subr.bf16.mxu0 %v2939_v38  ;;  %v291_v37 = vld [vmem:[%s6826_s1 + $0x7a0] sm:$0xff]  ;;  %v3007_v40 = vpack.c.bf16 %v314_v33, %v294_v32  ;;  %v434_v7 = vld [vmem:[%s6826_s1 + $0xc18] sm:$0xff]  ;;  %v3021_v21 = vpack.c.bf16 %v433_v15, %v413_v13  ;;  %v453_v25 = vld [vmem:[%s6826_s1 + $0xcb0] sm:$0xff] }
  0x3b   :  { %2988 = vmatprep.subr.bf16.mxu1 %v2987_v42  ;;  %2737 = vmatprep.mubr.msk.f32.mxu0 %vm655_vm0, %v4167_v57  ;;  %v311_v38 = vld [vmem:[%s6826_s1 + $0x840] sm:$0xff]  ;;  %v332_v42 = vld [vmem:[%s6826_s1 + $0x8e8] sm:$0xff]  ;;  %v3019_v14 = vpack.c.bf16 %v434_v7, %v414_v6  ;;  %v454_v18 = vld [vmem:[%s6826_s1 + $0xcb8] sm:$0xff] }
  0x3c   :  { %2740 = vmatprep.mubr.msk.f32.mxu1 %vm655_vm0, %v4167_v57  ;;  %v2961_v46 = vpack.c.bf16 %v311_v38, %v291_v37  ;;  %v474_v19 = vld [vmem:[%s6826_s1 + $0xd58] sm:$0xff]  ;;  %v473_v27 = vld [vmem:[%s6826_s1 + $0xd50] sm:$0xff]  ;;  %v56_v44 = vld [vmem:[%s6826_s1 + $0x48] sm:$0xff] }
  0x3d   :  { %2942 = vmatpush1.bf16.msra.mxu0 %v2941_v48  ;;  %v2963_v48 = vpack.c.bf16 %v352_v43, %v332_v42  ;;  %v3023_v26 = vpack.c.bf16 %v474_v19, %v454_v18  ;;  %v494_v30 = vld [vmem:[%s6826_s1 + $0xdf8] sm:$0xff]  ;;  %v3025_v33 = vpack.c.bf16 %v473_v27, %v453_v25  ;;  %v493_v38 = vld [vmem:[%s6826_s1 + $0xdf0] sm:$0xff]  ;;  %v532_v42 = vld [vmem:[%s6826_s1 + $0xf28] sm:$0xf] }
  0x3e   :  { %2990 = vmatpush1.bf16.msra.mxu1 %v2989_v49  ;;  %2944 = vmatprep.subr.bf16.mxu0 %v2943_v50  ;;  %v331_v49 = vld [vmem:[%s6826_s1 + $0x8e0] sm:$0xff]  ;;  %v514_v31 = vld [vmem:[%s6826_s1 + $0xe98] sm:$0xff]  ;;  %v513_v39 = vld [vmem:[%s6826_s1 + $0xe90] sm:$0xff] }
  0x3f   :  { %2992 = vmatprep.subr.bf16.mxu1 %v2991_v55  ;;  %v351_v50 = vld [vmem:[%s6826_s1 + $0x980] sm:$0xff]  ;;  %v372_v55 = vld [vmem:[%s6826_s1 + $0xa28] sm:$0xff]  ;;  %v3027_v37 = vpack.c.bf16 %v514_v31, %v494_v30  ;;  %v3029_v41 = vpack.c.bf16 %v513_v39, %v493_v38  ;;  %v534_v43 = vld [vmem:[%s6826_s1 + $0xf38] sm:$0xf] }
  0x40   :  { %v2965_v60 = vpack.c.bf16 %v351_v50, %v331_v49  ;;  %v531_v45 = vld [vmem:[%s6826_s1 + $0xf20] sm:$0xf]  ;;  %v57_v51 = vld [vmem:[%s6826_s1 + $0x50] sm:$0xff]  ;;  %v96_v54 = vld [vmem:[%s6826_s1 + $0x188] sm:$0xff] }
  0x41   :  { %2946 = vmatpush1.bf16.msra.mxu0 %v2945_v62  ;;  %v2967_v62 = vpack.c.bf16 %v392_v56, %v372_v55  ;;  %v55_v49 = vld [vmem:[%s6826_s1 + $0x40] sm:$0xff]  ;;  %v116_v55 = vld [vmem:[%s6826_s1 + $0x228] sm:$0xff]  ;;  %v533_v56 = vld [vmem:[%s6826_s1 + $0xf30] sm:$0xf] }
  0x42   :  { %2994 = vmatpush1.bf16.msra.mxu1 %v2993_v63  ;;  %2948 = vmatprep.subr.bf16.mxu0 %v2947_v0  ;;  %v371_v63 = vld [vmem:[%s6826_s1 + $0xa20] sm:$0xff]  ;;  %v98_v59 = vld [vmem:[%s6826_s1 + $0x198] sm:$0xff]  ;;  %v97_v3 = vld [vmem:[%s6826_s1 + $0x190] sm:$0xff] }
  0x43   :  { %2996 = vmatprep.subr.bf16.mxu1 %v2995_v4  ;;  %v391_v0 = vld [vmem:[%s6826_s1 + $0xac0] sm:$0xff]  ;;  %v412_v4 = vld [vmem:[%s6826_s1 + $0xb68] sm:$0xff]  ;;  %v137_v15 = vld [vmem:[%s6826_s1 + $0x2d0] sm:$0xff] }
  0x44   :  { %v2969_v8 = vpack.c.bf16 %v391_v0, %v371_v63  ;;  %v75_v50 = vld [vmem:[%s6826_s1 + $0xe0] sm:$0xff]  ;;  %v3035_v0 = vpack.c.bf16 %v116_v55, %v96_v54  ;;  %v136_v6 = vld [vmem:[%s6826_s1 + $0x2c8] sm:$0xff]  ;;  %v177_v27 = vld [vmem:[%s6826_s1 + $0x410] sm:$0xff] }
  0x45   :  { %2950 = vmatpush1.bf16.msra.mxu0 %v2949_v10  ;;  %v2971_v10 = vpack.c.bf16 %v432_v5, %v412_v4  ;;  %v95_v1 = vld [vmem:[%s6826_s1 + $0x180] sm:$0xff]  ;;  %v117_v5 = vld [vmem:[%s6826_s1 + $0x230] sm:$0xff]  ;;  %v156_v7 = vld [vmem:[%s6826_s1 + $0x368] sm:$0xff] }
  0x46   :  { %2998 = vmatpush1.bf16.msra.mxu1 %v2997_v11  ;;  %2952 = vmatprep.subr.bf16.mxu0 %v2951_v12  ;;  %v411_v11 = vld [vmem:[%s6826_s1 + $0xb60] sm:$0xff]  ;;  %v176_v18 = vld [vmem:[%s6826_s1 + $0x408] sm:$0xff]  ;;  %v217_v39 = vld [vmem:[%s6826_s1 + $0x550] sm:$0xff] }
  0x47   :  { %3000 = vmatprep.subr.bf16.mxu1 %v2999_v16  ;;  %v431_v12 = vld [vmem:[%s6826_s1 + $0xc00] sm:$0xff]  ;;  %v452_v16 = vld [vmem:[%s6826_s1 + $0xca8] sm:$0xff]  ;;  %v277_v54 = vld [vmem:[%s6826_s1 + $0x730] sm:$0xff] }
  0x48   :  { %v2973_v20 = vpack.c.bf16 %v431_v12, %v411_v11  ;;  %v3085_v11 = vpack.c.bf16 %v117_v5, %v97_v3  ;;  %v3039_v12 = vpack.c.bf16 %v156_v7, %v136_v6  ;;  %v135_v13 = vld [vmem:[%s6826_s1 + $0x2c0] sm:$0xff]  ;;  %v196_v19 = vld [vmem:[%s6826_s1 + $0x4a8] sm:$0xff]  ;;  %v317_v3 = vld [vmem:[%s6826_s1 + $0x870] sm:$0xff] }
  0x49   :  { %2954 = vmatpush1.bf16.msra.mxu0 %v2953_v22  ;;  %v2975_v22 = vpack.c.bf16 %v472_v17, %v452_v16  ;;  %v157_v17 = vld [vmem:[%s6826_s1 + $0x370] sm:$0xff]  ;;  %v175_v25 = vld [vmem:[%s6826_s1 + $0x400] sm:$0xff]  ;;  %v216_v30 = vld [vmem:[%s6826_s1 + $0x548] sm:$0xff] }
  0x4a   :  { %3002 = vmatpush1.bf16.msra.mxu1 %v3001_v23  ;;  %2956 = vmatprep.subr.bf16.mxu0 %v2955_v24  ;;  %v451_v23 = vld [vmem:[%s6826_s1 + $0xca0] sm:$0xff]  ;;  %v236_v31 = vld [vmem:[%s6826_s1 + $0x5e8] sm:$0xff]  ;;  %v338_v6 = vld [vmem:[%s6826_s1 + $0x918] sm:$0xff] }
  0x4b   :  { %3004 = vmatprep.subr.bf16.mxu1 %v3003_v28  ;;  %v471_v24 = vld [vmem:[%s6826_s1 + $0xd40] sm:$0xff]  ;;  %v492_v28 = vld [vmem:[%s6826_s1 + $0xde8] sm:$0xff]  ;;  %v358_v7 = vld [vmem:[%s6826_s1 + $0x9b8] sm:$0xff] }
  0x4c   :  { %v2977_v32 = vpack.c.bf16 %v471_v24, %v451_v23  ;;  %v3089_v23 = vpack.c.bf16 %v157_v17, %v137_v15  ;;  %v3043_v24 = vpack.c.bf16 %v196_v19, %v176_v18  ;;  %v235_v38 = vld [vmem:[%s6826_s1 + $0x5e0] sm:$0xff]  ;;  %v296_v55 = vld [vmem:[%s6826_s1 + $0x7c8] sm:$0xff]  ;;  %v357_v15 = vld [vmem:[%s6826_s1 + $0x9b0] sm:$0xff] }
  0x4d   :  { %2958 = vmatpush1.bf16.msra.mxu0 %v2957_v34  ;;  %v2979_v34 = vpack.c.bf16 %v512_v29, %v492_v28  ;;  %v197_v29 = vld [vmem:[%s6826_s1 + $0x4b0] sm:$0xff]  ;;  %v356_v5 = vld [vmem:[%s6826_s1 + $0x9a8] sm:$0xff]  ;;  %v378_v18 = vld [vmem:[%s6826_s1 + $0xa58] sm:$0xff] }
  0x4e   :  { %3006 = vmatpush1.bf16.msra.mxu1 %v3005_v35  ;;  %2960 = vmatprep.subr.bf16.mxu0 %v2959_v36  ;;  %v491_v35 = vld [vmem:[%s6826_s1 + $0xde0] sm:$0xff]  ;;  %v396_v17 = vld [vmem:[%s6826_s1 + $0xae8] sm:$0xff]  ;;  %v398_v19 = vld [vmem:[%s6826_s1 + $0xaf8] sm:$0xff] }
  0x4f   :  { %3008 = vmatprep.subr.bf16.mxu1 %v3007_v40  ;;  %v511_v36 = vld [vmem:[%s6826_s1 + $0xe80] sm:$0xff] }
  0x50   :  { %v2981_v40 = vpack.c.bf16 %v511_v36, %v491_v35  ;;  %v3093_v35 = vpack.c.bf16 %v197_v29, %v177_v27  ;;  %v3047_v36 = vpack.c.bf16 %v236_v31, %v216_v30  ;;  %v397_v27 = vld [vmem:[%s6826_s1 + $0xaf0] sm:$0xff]  ;;  %v436_v29 = vld [vmem:[%s6826_s1 + $0xc28] sm:$0xff]  ;;  %v418_v30 = vld [vmem:[%s6826_s1 + $0xb98] sm:$0xff] }
  0x51   :  { %2962 = vmatpush1.bf16.msra.mxu0 %v2961_v46  ;;  %v76_v46 = vld [vmem:[%s6826_s1 + $0xe8] sm:$0xff]  ;;  %v438_v31 = vld [vmem:[%s6826_s1 + $0xc38] sm:$0xff] }
  0x52   :  { %3010 = vmatpush1.bf16.msra.mxu1 %v3009_v47  ;;  %2964 = vmatprep.subr.bf16.mxu0 %v2963_v48  ;;  %v58_v47 = vld [vmem:[%s6826_s1 + $0x58] sm:$0xff]  ;;  %v3031_v58 = vpack.c.bf16 %v76_v46, %v56_v44 }
  0x53   :  { %3012 = vmatprep.subr.bf16.mxu1 %v3011_v53  ;;  %v78_v48 = vld [vmem:[%s6826_s1 + $0xf8] sm:$0xff]  ;;  %v77_v53 = vld [vmem:[%s6826_s1 + $0xf0] sm:$0xff] }
  0x54   :  { %v3081_v63 = vpack.c.bf16 %v77_v53, %v57_v51  ;;  %v258_v44 = vld [vmem:[%s6826_s1 + $0x698] sm:$0xff]  ;;  %v257_v51 = vld [vmem:[%s6826_s1 + $0x690] sm:$0xff] }
  0x55   :  { %2966 = vmatpush1.bf16.msra.mxu0 %v2965_v60  ;;  %v118_v60 = vld [vmem:[%s6826_s1 + $0x238] sm:$0xff] }
  0x56   :  { %3014 = vmatpush1.bf16.msra.mxu1 %v3013_v61  ;;  %2968 = vmatprep.subr.bf16.mxu0 %v2967_v62  ;;  %v3079_v61 = vpack.c.bf16 %v78_v48, %v58_v47  ;;  %v3033_v62 = vpack.c.bf16 %v75_v50, %v55_v49  ;;  %v3083_v4 = vpack.c.bf16 %v118_v60, %v98_v59  ;;  %v255_v49 = vld [vmem:[%s6826_s1 + $0x680] sm:$0xff]  ;;  %v318_v59 = vld [vmem:[%s6826_s1 + $0x878] sm:$0xff] }
  0x57   :  { %3016 = vmatprep.subr.bf16.mxu1 %v3015_v2  ;;  %v115_v2 = vld [vmem:[%s6826_s1 + $0x220] sm:$0xff] }
  0x58   :  { %v275_v50 = vld [vmem:[%s6826_s1 + $0x720] sm:$0xff] }
  0x59   :  { %2970 = vmatpush1.bf16.msra.mxu0 %v2969_v8  ;;  %v138_v8 = vld [vmem:[%s6826_s1 + $0x2d8] sm:$0xff]  ;;  %v3053_v60 = vpack.c.bf16 %v275_v50, %v255_v49  ;;  %v457_v49 = vld [vmem:[%s6826_s1 + $0xcd0] sm:$0xff] }
  0x5a   :  { %3018 = vmatpush1.bf16.msra.mxu1 %v3017_v9  ;;  %2972 = vmatprep.subr.bf16.mxu0 %v2971_v10  ;;  %v158_v9 = vld [vmem:[%s6826_s1 + $0x378] sm:$0xff]  ;;  %v3037_v10 = vpack.c.bf16 %v115_v2, %v95_v1  ;;  %v297_v1 = vld [vmem:[%s6826_s1 + $0x7d0] sm:$0xff] }
  0x5b   :  { %3020 = vmatprep.subr.bf16.mxu1 %v3019_v14  ;;  %v155_v14 = vld [vmem:[%s6826_s1 + $0x360] sm:$0xff]  ;;  %v3087_v16 = vpack.c.bf16 %v158_v9, %v138_v8  ;;  %v3105_v9 = vpack.c.bf16 %v317_v3, %v297_v1  ;;  %v517_v1 = vld [vmem:[%s6826_s1 + $0xeb0] sm:$0xff] }
  0x5d   :  { %2974 = vmatpush1.bf16.msra.mxu0 %v2973_v20  ;;  %v178_v20 = vld [vmem:[%s6826_s1 + $0x418] sm:$0xff] }
  0x5e   :  { %3022 = vmatpush1.bf16.msra.mxu1 %v3021_v21  ;;  %2976 = vmatprep.subr.bf16.mxu0 %v2975_v22  ;;  %v198_v21 = vld [vmem:[%s6826_s1 + $0x4b8] sm:$0xff]  ;;  %v3041_v22 = vpack.c.bf16 %v155_v14, %v135_v13  ;;  %v337_v13 = vld [vmem:[%s6826_s1 + $0x910] sm:$0xff]  ;;  %v3107_v14 = vpack.c.bf16 %v358_v7, %v338_v6  ;;  %v60_v6 = vld [vmem:[%s6826_s1 + $0x68] sm:$0xff] }
  0x5f   :  { %3024 = vmatprep.subr.bf16.mxu1 %v3023_v26  ;;  %v195_v26 = vld [vmem:[%s6826_s1 + $0x4a0] sm:$0xff]  ;;  %v3091_v28 = vpack.c.bf16 %v198_v21, %v178_v20  ;;  %v3109_v21 = vpack.c.bf16 %v357_v15, %v337_v13  ;;  %v61_v13 = vld [vmem:[%s6826_s1 + $0x70] sm:$0xff]  ;;  %v100_v15 = vld [vmem:[%s6826_s1 + $0x1a8] sm:$0xff] }
  0x60   :  { %v535_v7 = vld [vmem:[%s6826_s1 + $0xf40] sm:$0xf] }
  0x61   :  { %2978 = vmatpush1.bf16.msra.mxu0 %v2977_v32  ;;  %v218_v32 = vld [vmem:[%s6826_s1 + $0x558] sm:$0xff] }
  0x62   :  { %3026 = vmatpush1.bf16.msra.mxu1 %v3025_v33  ;;  %2980 = vmatprep.subr.bf16.mxu0 %v2979_v34  ;;  %v238_v33 = vld [vmem:[%s6826_s1 + $0x5f8] sm:$0xff]  ;;  %v3045_v34 = vpack.c.bf16 %v195_v26, %v175_v25  ;;  %v377_v25 = vld [vmem:[%s6826_s1 + $0xa50] sm:$0xff]  ;;  %v3111_v26 = vpack.c.bf16 %v398_v19, %v378_v18 }
  0x63   :  { %3028 = vmatprep.subr.bf16.mxu1 %v3027_v37  ;;  %v215_v37 = vld [vmem:[%s6826_s1 + $0x540] sm:$0xff] }
  0x64   :  { %v3049_v46 = vpack.c.bf16 %v235_v38, %v215_v37  ;;  %v417_v37 = vld [vmem:[%s6826_s1 + $0xb90] sm:$0xff]  ;;  %v3115_v38 = vpack.c.bf16 %v438_v31, %v418_v30  ;;  %v140_v30 = vld [vmem:[%s6826_s1 + $0x2e8] sm:$0xff] }
  0x65   :  { %2982 = vmatpush1.bf16.msra.mxu0 %v2981_v40  ;;  %v3095_v40 = vpack.c.bf16 %v238_v33, %v218_v32  ;;  %v3113_v33 = vpack.c.bf16 %v397_v27, %v377_v25  ;;  %v99_v25 = vld [vmem:[%s6826_s1 + $0x1a0] sm:$0xff]  ;;  %v101_v27 = vld [vmem:[%s6826_s1 + $0x1b0] sm:$0xff]  ;;  %v160_v31 = vld [vmem:[%s6826_s1 + $0x388] sm:$0xff] }
  0x66   :  { %3030 = vmatpush1.bf16.msra.mxu1 %v3029_v41  ;;  %2735 = vmatprep.subr.msk.mxu0 %vm658_vm1, %v532_v42  ;;  %v237_v41 = vld [vmem:[%s6826_s1 + $0x5f0] sm:$0xff]  ;;  %v256_v42 = vld [vmem:[%s6826_s1 + $0x688] sm:$0xff] }
  0x67   :  { %2738 = vmatprep.subr.msk.mxu1 %vm658_vm1, %v534_v43  ;;  %v276_v43 = vld [vmem:[%s6826_s1 + $0x728] sm:$0xff]  ;;  %v3097_v47 = vpack.c.bf16 %v237_v41, %v217_v39  ;;  %v437_v39 = vld [vmem:[%s6826_s1 + $0xc30] sm:$0xff] }
  0x68   :  { %v3051_v48 = vpack.c.bf16 %v276_v43, %v256_v42  ;;  %v476_v41 = vld [vmem:[%s6826_s1 + $0xd68] sm:$0xff]  ;;  %v458_v42 = vld [vmem:[%s6826_s1 + $0xcd8] sm:$0xff] }
  0x69   :  { %2736 = vmatpush1.msk.msra.mxu0 %vm658_vm1, %v531_v45  ;;  %v278_v45 = vld [vmem:[%s6826_s1 + $0x738] sm:$0xff] }
  0x6a   :  { %2739 = vmatpush1.msk.msra.mxu1 %vm658_vm1, %v533_v56  ;;  %926 = vmatmul.mubr.f32.vlgmr.msra.gmra.mrb[2].mxu0 %v4154_v52  ;;  %v3099_v53 = vpack.c.bf16 %v278_v45, %v258_v44  ;;  %v316_v56 = vld [vmem:[%s6826_s1 + $0x868] sm:$0xff]  ;;  %v478_v43 = vld [vmem:[%s6826_s1 + $0xd78] sm:$0xff]  ;;  %v3117_v45 = vpack.c.bf16 %v437_v39, %v417_v37  ;;  %v139_v37 = vld [vmem:[%s6826_s1 + $0x2e0] sm:$0xff] }
  0x6b   :  { %997 = vmatmul.mubr.f32.vlgmr.msra.gmra.mrb[2].mxu1 %v4154_v52  ;;  %3032 = vmatprep.subr.bf16.mxu0 %v3031_v58  ;;  %v298_v58 = vld [vmem:[%s6826_s1 + $0x7d8] sm:$0xff]  ;;  %v3119_v50 = vpack.c.bf16 %v478_v43, %v458_v42  ;;  %v141_v39 = vld [vmem:[%s6826_s1 + $0x2f0] sm:$0xff]  ;;  %v200_v42 = vld [vmem:[%s6826_s1 + $0x4c8] sm:$0xff]  ;;  %v553_v43 = vlaneseq }
  0x6c   :  { %3080 = vmatprep.subr.bf16.mxu1 %v3079_v61  ;;  %3034 = vmatpush1.bf16.msra.mxu0 %v3033_v62  ;;  %v3101_v61 = vpack.c.bf16 %v277_v54, %v257_v51  ;;  %v3055_v62 = vpack.c.bf16 %v316_v56, %v296_v55  ;;  %v3103_v2 = vpack.c.bf16 %v318_v59, %v298_v58  ;;  %v477_v51 = vld [vmem:[%s6826_s1 + $0xd70] sm:$0xff]  ;;  %v516_v54 = vld [vmem:[%s6826_s1 + $0xea8] sm:$0xff]  ;;  %v498_v55 = vld [vmem:[%s6826_s1 + $0xe18] sm:$0xff] }
  0x6d   :  { %3082 = vmatpush1.bf16.msra.mxu1 %v3081_v63  ;;  %3036 = vmatprep.subr.bf16.mxu0 %v3035_v0  ;;  %v295_v63 = vld [vmem:[%s6826_s1 + $0x7c0] sm:$0xff]  ;;  %v518_v56 = vld [vmem:[%s6826_s1 + $0xeb8] sm:$0xff]  ;;  %v3121_v59 = vpack.c.bf16 %v477_v51, %v457_v49  ;;  %v181_v51 = vld [vmem:[%s6826_s1 + $0x430] sm:$0xff] }
  0x6e   :  { %3084 = vmatprep.subr.bf16.mxu1 %v3083_v4  ;;  %2743 = vmatprep.mubr.msk.f32.mxu0 %vm655_vm0, %v4167_v57  ;;  %v315_v0 = vld [vmem:[%s6826_s1 + $0x860] sm:$0xff]  ;;  %v336_v4 = vld [vmem:[%s6826_s1 + $0x908] sm:$0xff] }
  0x6f   :  { %2746 = vmatprep.mubr.msk.f32.mxu1 %vm655_vm0, %v4167_v57  ;;  %v3057_v8 = vpack.c.bf16 %v315_v0, %v295_v63  ;;  %v3123_v63 = vpack.c.bf16 %v518_v56, %v498_v55  ;;  %v497_v0 = vld [vmem:[%s6826_s1 + $0xe10] sm:$0xff]  ;;  %v179_v49 = vld [vmem:[%s6826_s1 + $0x420] sm:$0xff]  ;;  %v220_v55 = vld [vmem:[%s6826_s1 + $0x568] sm:$0xff] }
  0x70   :  { %3038 = vmatpush1.bf16.msra.mxu0 %v3037_v10  ;;  %v3059_v10 = vpack.c.bf16 %v356_v5, %v336_v4  ;;  %v3125_v3 = vpack.c.bf16 %v517_v1, %v497_v0  ;;  %v536_v4 = vld [vmem:[%s6826_s1 + $0xf48] sm:$0xf]  ;;  %v538_v5 = vld [vmem:[%s6826_s1 + $0xf58] sm:$0xf] }
  0x71   :  { %3086 = vmatpush1.bf16.msra.mxu1 %v3085_v11  ;;  %3040 = vmatprep.subr.bf16.mxu0 %v3039_v12  ;;  %v335_v11 = vld [vmem:[%s6826_s1 + $0x900] sm:$0xff]  ;;  %v240_v56 = vld [vmem:[%s6826_s1 + $0x608] sm:$0xff] }
  0x72   :  { %3088 = vmatprep.subr.bf16.mxu1 %v3087_v16  ;;  %v355_v12 = vld [vmem:[%s6826_s1 + $0x9a0] sm:$0xff]  ;;  %v376_v16 = vld [vmem:[%s6826_s1 + $0xa48] sm:$0xff]  ;;  %v3143_v1 = vpack.c.bf16 %v240_v56, %v220_v55 }
  0x73   :  { %v3061_v20 = vpack.c.bf16 %v355_v12, %v335_v11  ;;  %v59_v11 = vld [vmem:[%s6826_s1 + $0x60] sm:$0xff] }
  0x74   :  { %3042 = vmatpush1.bf16.msra.mxu0 %v3041_v22  ;;  %v3063_v22 = vpack.c.bf16 %v396_v17, %v376_v16  ;;  %v79_v12 = vld [vmem:[%s6826_s1 + $0x100] sm:$0xff]  ;;  %v120_v16 = vld [vmem:[%s6826_s1 + $0x248] sm:$0xff]  ;;  %v537_v17 = vld [vmem:[%s6826_s1 + $0xf50] sm:$0xf] }
  0x75   :  { %3090 = vmatpush1.bf16.msra.mxu1 %v3089_v23  ;;  %3044 = vmatprep.subr.bf16.mxu0 %v3043_v24  ;;  %v375_v23 = vld [vmem:[%s6826_s1 + $0xa40] sm:$0xff] }
  0x76   :  { %3092 = vmatprep.subr.bf16.mxu1 %v3091_v28  ;;  %v395_v24 = vld [vmem:[%s6826_s1 + $0xae0] sm:$0xff]  ;;  %v416_v28 = vld [vmem:[%s6826_s1 + $0xb88] sm:$0xff] }
  0x77   :  { %v3065_v32 = vpack.c.bf16 %v395_v24, %v375_v23  ;;  %v3131_v24 = vpack.c.bf16 %v120_v16, %v100_v15 }
  0x78   :  { %3046 = vmatpush1.bf16.msra.mxu0 %v3045_v34  ;;  %v3067_v34 = vpack.c.bf16 %v436_v29, %v416_v28  ;;  %v121_v29 = vld [vmem:[%s6826_s1 + $0x250] sm:$0xff] }
  0x79   :  { %3094 = vmatpush1.bf16.msra.mxu1 %v3093_v35  ;;  %3048 = vmatprep.subr.bf16.mxu0 %v3047_v36  ;;  %v415_v35 = vld [vmem:[%s6826_s1 + $0xb80] sm:$0xff] }
  0x7a   :  { %3096 = vmatprep.subr.bf16.mxu1 %v3095_v40  ;;  %v435_v36 = vld [vmem:[%s6826_s1 + $0xc20] sm:$0xff]  ;;  %v456_v40 = vld [vmem:[%s6826_s1 + $0xcc8] sm:$0xff] }
  0x7b   :  { %v3069_v44 = vpack.c.bf16 %v435_v36, %v415_v35  ;;  %v3181_v35 = vpack.c.bf16 %v121_v29, %v101_v27  ;;  %v3135_v36 = vpack.c.bf16 %v160_v31, %v140_v30 }
  0x7c   :  { %3050 = vmatpush1.bf16.msra.mxu0 %v3049_v46  ;;  %v3071_v46 = vpack.c.bf16 %v476_v41, %v456_v40  ;;  %v161_v40 = vld [vmem:[%s6826_s1 + $0x390] sm:$0xff]  ;;  %v180_v41 = vld [vmem:[%s6826_s1 + $0x428] sm:$0xff] }
  0x7d   :  { %3098 = vmatpush1.bf16.msra.mxu1 %v3097_v47  ;;  %3052 = vmatprep.subr.bf16.mxu0 %v3051_v48  ;;  %v455_v47 = vld [vmem:[%s6826_s1 + $0xcc0] sm:$0xff] }
  0x7e   :  { %3100 = vmatprep.subr.bf16.mxu1 %v3099_v53  ;;  %v475_v48 = vld [vmem:[%s6826_s1 + $0xd60] sm:$0xff]  ;;  %v496_v53 = vld [vmem:[%s6826_s1 + $0xe08] sm:$0xff] }
  0x7f   :  { %v3073_v58 = vpack.c.bf16 %v475_v48, %v455_v47  ;;  %v3185_v47 = vpack.c.bf16 %v161_v40, %v141_v39  ;;  %v3139_v48 = vpack.c.bf16 %v200_v42, %v180_v41 }
  0x80   :  { %3054 = vmatpush1.bf16.msra.mxu0 %v3053_v60  ;;  %v3075_v60 = vpack.c.bf16 %v516_v54, %v496_v53  ;;  %v201_v54 = vld [vmem:[%s6826_s1 + $0x4d0] sm:$0xff] }
  0x81   :  { %3102 = vmatpush1.bf16.msra.mxu1 %v3101_v61  ;;  %3056 = vmatprep.subr.bf16.mxu0 %v3055_v62  ;;  %v495_v61 = vld [vmem:[%s6826_s1 + $0xe00] sm:$0xff]  ;;  %v3189_v0 = vpack.c.bf16 %v201_v54, %v181_v51 }
  0x82   :  { %3104 = vmatprep.subr.bf16.mxu1 %v3103_v2  ;;  %v515_v62 = vld [vmem:[%s6826_s1 + $0xea0] sm:$0xff] }
  0x83   :  { %v3077_v2 = vpack.c.bf16 %v515_v62, %v495_v61  ;;  %v219_v62 = vld [vmem:[%s6826_s1 + $0x560] sm:$0xff] }
  0x84   :  { %3058 = vmatpush1.bf16.msra.mxu0 %v3057_v8  ;;  %v80_v8 = vld [vmem:[%s6826_s1 + $0x108] sm:$0xff] }
  0x85   :  { %3106 = vmatpush1.bf16.msra.mxu1 %v3105_v9  ;;  %3060 = vmatprep.subr.bf16.mxu0 %v3059_v10  ;;  %v62_v9 = vld [vmem:[%s6826_s1 + $0x78] sm:$0xff]  ;;  %v3127_v18 = vpack.c.bf16 %v80_v8, %v60_v6  ;;  %v260_v6 = vld [vmem:[%s6826_s1 + $0x6a8] sm:$0xff] }
  0x86   :  { %3108 = vmatprep.subr.bf16.mxu1 %v3107_v14  ;;  %v82_v10 = vld [vmem:[%s6826_s1 + $0x118] sm:$0xff]  ;;  %v81_v14 = vld [vmem:[%s6826_s1 + $0x110] sm:$0xff] }
  0x87   :  { %v3175_v19 = vpack.c.bf16 %v82_v10, %v62_v9  ;;  %v3177_v23 = vpack.c.bf16 %v81_v14, %v61_v13 }
  0x88   :  { %3062 = vmatpush1.bf16.msra.mxu0 %v3061_v20  ;;  %v102_v20 = vld [vmem:[%s6826_s1 + $0x1b8] sm:$0xff] }
  0x89   :  { %3110 = vmatpush1.bf16.msra.mxu1 %v3109_v21  ;;  %3064 = vmatprep.subr.bf16.mxu0 %v3063_v22  ;;  %v122_v21 = vld [vmem:[%s6826_s1 + $0x258] sm:$0xff]  ;;  %v3129_v22 = vpack.c.bf16 %v79_v12, %v59_v11 }
  0x8a   :  { %3112 = vmatprep.subr.bf16.mxu1 %v3111_v26  ;;  %v119_v26 = vld [vmem:[%s6826_s1 + $0x240] sm:$0xff]  ;;  %v3179_v28 = vpack.c.bf16 %v122_v21, %v102_v20 }
  0x8c   :  { %3066 = vmatpush1.bf16.msra.mxu0 %v3065_v32  ;;  %v142_v32 = vld [vmem:[%s6826_s1 + $0x2f8] sm:$0xff] }
  0x8d   :  { %3114 = vmatpush1.bf16.msra.mxu1 %v3113_v33  ;;  %3068 = vmatprep.subr.bf16.mxu0 %v3067_v34  ;;  %v162_v33 = vld [vmem:[%s6826_s1 + $0x398] sm:$0xff]  ;;  %v3133_v34 = vpack.c.bf16 %v119_v26, %v99_v25 }
  0x8e   :  { %3116 = vmatprep.subr.bf16.mxu1 %v3115_v38  ;;  %v159_v38 = vld [vmem:[%s6826_s1 + $0x380] sm:$0xff] }
  0x90   :  { %3070 = vmatpush1.bf16.msra.mxu0 %v3069_v44  ;;  %v182_v44 = vld [vmem:[%s6826_s1 + $0x438] sm:$0xff] }
  0x91   :  { %3118 = vmatpush1.bf16.msra.mxu1 %v3117_v45  ;;  %3072 = vmatprep.subr.bf16.mxu0 %v3071_v46  ;;  %v202_v45 = vld [vmem:[%s6826_s1 + $0x4d8] sm:$0xff]  ;;  %v3137_v46 = vpack.c.bf16 %v159_v38, %v139_v37 }
  0x92   :  { %3120 = vmatprep.subr.bf16.mxu1 %v3119_v50  ;;  %v199_v50 = vld [vmem:[%s6826_s1 + $0x4c0] sm:$0xff]  ;;  %v3187_v53 = vpack.c.bf16 %v202_v45, %v182_v44 }
  0x93   :  { %v3141_v61 = vpack.c.bf16 %v199_v50, %v179_v49 }
  0x94   :  { %3074 = vmatpush1.bf16.msra.mxu0 %v3073_v58  ;;  %v4959_v58 = vshrl.u32 %v553_v43, 7 }
  0x95   :  { %3122 = vmatpush1.bf16.msra.mxu1 %v3121_v59  ;;  %3076 = vmatprep.subr.bf16.mxu0 %v3075_v60  ;;  %v222_v59 = vld [vmem:[%s6826_s1 + $0x578] sm:$0xff] }
  0x96   :  { %3124 = vmatprep.subr.bf16.mxu1 %v3123_v63  ;;  %v242_v60 = vld [vmem:[%s6826_s1 + $0x618] sm:$0xff]  ;;  %v571_v63 = vsub.s32 4, %v4959_v58 }
  0x98   :  { %3078 = vmatpush1.bf16.msra.mxu0 %v3077_v2  ;;  %v239_v2 = vld [vmem:[%s6826_s1 + $0x600] sm:$0xff] }
  0x99   :  { %3126 = vmatpush1.bf16.msra.mxu1 %v3125_v3  ;;  %2741 = vmatprep.subr.msk.mxu0 %vm658_vm1, %v536_v4  ;;  %v221_v3 = vld [vmem:[%s6826_s1 + $0x570] sm:$0xff] }
  0x9a   :  { %2744 = vmatprep.subr.msk.mxu1 %vm658_vm1, %v538_v5  ;;  %v241_v4 = vld [vmem:[%s6826_s1 + $0x610] sm:$0xff]  ;;  %v3191_v5 = vpack.c.bf16 %v242_v60, %v222_v59 }
  0x9c   :  { %2742 = vmatpush1.msk.msra.mxu0 %vm658_vm1, %v535_v7  ;;  %v280_v7 = vld [vmem:[%s6826_s1 + $0x748] sm:$0xff] }
  0x9d   :  { %2745 = vmatpush1.msk.msra.mxu1 %vm658_vm1, %v537_v17  ;;  %1068 = vmatmul.mubr.f32.vlgmr.msra.gmra.mrb[4].mxu0 %v4154_v52 }
  0x9e   :  { %3128 = vmatprep.subr.bf16.mxu0 %v3127_v18  ;;  %3176 = vmatprep.subr.bf16.mxu1 %v3175_v19 }
  0x9f   :  { %1139 = vmatmul.mubr.f32.vlgmr.msra.gmra.mrb[4].mxu1 %v4154_v52  ;;  %3130 = vmatpush1.bf16.msra.mxu0 %v3129_v22  ;;  %v3183_v52 = vpack.c.bf16 %v162_v33, %v142_v32 }
  0xa0   :  { %3178 = vmatpush1.bf16.msra.mxu1 %v3177_v23  ;;  %3132 = vmatprep.subr.bf16.mxu0 %v3131_v24 }
  0xa1   :  { %3180 = vmatprep.subr.bf16.mxu1 %v3179_v28  ;;  %2749 = vmatprep.mubr.msk.f32.mxu0 %vm655_vm0, %v4167_v57 }
  0xa2   :  { %2752 = vmatprep.mubr.msk.f32.mxu1 %vm655_vm0, %v4167_v57 }
  0xa3   :  { %3134 = vmatpush1.bf16.msra.mxu0 %v3133_v34 }
  0xa4   :  { %3182 = vmatpush1.bf16.msra.mxu1 %v3181_v35  ;;  %3136 = vmatprep.subr.bf16.mxu0 %v3135_v36 }
  0xa5   :  { %3184 = vmatprep.subr.bf16.mxu1 %v3183_v52 }
  0xa7   :  { %3138 = vmatpush1.bf16.msra.mxu0 %v3137_v46 }
  0xa8   :  { %3186 = vmatpush1.bf16.msra.mxu1 %v3185_v47  ;;  %3140 = vmatprep.subr.bf16.mxu0 %v3139_v48 }
  0xa9   :  { %3188 = vmatprep.subr.bf16.mxu1 %v3187_v53 }
  0xaa   :  { %21 = vsyncpa [#allocation6], 0  ;;  %v262_v8 = vld [vmem:[%s6826_s1 + $0x6b8] sm:$0xff]  ;;  %v4995_v10 = vld [vmem:[%s6827_s2] sm:$0xff]  ;;  %v3145_v11 = vpack.c.bf16 %v239_v2, %v219_v62  ;;  %v3193_v13 = vpack.c.bf16 %v241_v4, %v221_v3  ;;  %v3147_v14 = vpack.c.bf16 %v280_v7, %v260_v6  ;;  %vm2282_vm2 = vcmask 392192  }
  0xab   :  { %v282_v9 = vld [vmem:[%s6826_s1 + $0x758] sm:$0xff]  ;;  %3142 = vmatpush1.bf16.msra.mxu0 %v3141_v61  ;;  %v5000_v12 = vrot.slane %v4995_v10, %v571_v63  ;;  %v259_v15 = vld [vmem:[%s6826_s1 + $0x6a0] sm:$0xff]  ;;  %v261_v17 = vld [vmem:[%s6826_s1 + $0x6b0] sm:$0xff]  ;;  %vm2442_vm3 = vcmask 1041408   ;;  %vm3834_vm4 = vmmov 1   ;;  %vm3835_vm6 = vmmov 0  }
  0xac   :  { %3190 = vmatpush1.bf16.msra.mxu1 %v3189_v0  ;;  %3144 = vmatprep.subr.bf16.mxu0 %v3143_v1  ;;  %v279_v16 = vld [vmem:[%s6826_s1 + $0x740] sm:$0xff]  ;;  %v3195_v18 = vpack.c.bf16 %v282_v9, %v262_v8  ;;  %v281_v19 = vld [vmem:[%s6826_s1 + $0x750] sm:$0xff]  ;;  %v300_v20 = vld [vmem:[%s6826_s1 + $0x7e8] sm:$0xff]  ;;  %vm2427_vm7 = vcmask 76800   ;;  %vm2438_vm8 = vcmask 80896   ;;  %vm2431_vm9 = vcmask 74752  }
  0xad   :  { %3192 = vmatprep.subr.bf16.mxu1 %v3191_v5  ;;  %v320_v21 = vld [vmem:[%s6826_s1 + $0x888] sm:$0xff]  ;;  %v302_v22 = vld [vmem:[%s6826_s1 + $0x7f8] sm:$0xff]  ;;  %v3149_v24 = vpack.c.bf16 %v279_v16, %v259_v15  ;;  %v3197_v25 = vpack.c.bf16 %v281_v19, %v261_v17  ;;  %v299_v27 = vld [vmem:[%s6826_s1 + $0x7e0] sm:$0xff]  ;;  %vm2612_vm10 = vcmask 261120  }
  0xae   :  { %v322_v23 = vld [vmem:[%s6826_s1 + $0x898] sm:$0xff]  ;;  %v3151_v26 = vpack.c.bf16 %v320_v21, %v300_v20  ;;  %v319_v28 = vld [vmem:[%s6826_s1 + $0x880] sm:$0xff]  ;;  %v301_v29 = vld [vmem:[%s6826_s1 + $0x7f0] sm:$0xff] }
  0xaf   :  { %3146 = vmatpush1.bf16.msra.mxu0 %v3145_v11  ;;  %v3199_v30 = vpack.c.bf16 %v322_v23, %v302_v22  ;;  %v321_v31 = vld [vmem:[%s6826_s1 + $0x890] sm:$0xff]  ;;  %v340_v32 = vld [vmem:[%s6826_s1 + $0x928] sm:$0xff]  ;;  %v342_v34 = vld [vmem:[%s6826_s1 + $0x938] sm:$0xff]  ;;  %v3153_v36 = vpack.c.bf16 %v319_v28, %v299_v27 }
  0xb0   :  { %3194 = vmatpush1.bf16.msra.mxu1 %v3193_v13  ;;  %3148 = vmatprep.subr.bf16.mxu0 %v3147_v14  ;;  %v360_v33 = vld [vmem:[%s6826_s1 + $0x9c8] sm:$0xff]  ;;  %v362_v35 = vld [vmem:[%s6826_s1 + $0x9d8] sm:$0xff]  ;;  %v3201_v37 = vpack.c.bf16 %v321_v31, %v301_v29  ;;  %v339_v39 = vld [vmem:[%s6826_s1 + $0x920] sm:$0xff]  ;;  %v583_v14 = vsub.s32 7, %v4959_v58 }
  0xb1   :  { %3196 = vmatprep.subr.bf16.mxu1 %v3195_v18  ;;  %v3155_v38 = vpack.c.bf16 %v360_v33, %v340_v32  ;;  %v359_v52 = vld [vmem:[%s6826_s1 + $0x9c0] sm:$0xff]  ;;  %v341_v40 = vld [vmem:[%s6826_s1 + $0x930] sm:$0xff]  ;;  %v3203_v41 = vpack.c.bf16 %v362_v35, %v342_v34  ;;  %v380_v43 = vld [vmem:[%s6826_s1 + $0xa68] sm:$0xff] }
  0xb2   :  { %v361_v42 = vld [vmem:[%s6826_s1 + $0x9d0] sm:$0xff]  ;;  %v400_v44 = vld [vmem:[%s6826_s1 + $0xb08] sm:$0xff]  ;;  %v382_v45 = vld [vmem:[%s6826_s1 + $0xa78] sm:$0xff]  ;;  %v3157_v47 = vpack.c.bf16 %v359_v52, %v339_v39 }
  0xb3   :  { %3150 = vmatpush1.bf16.msra.mxu0 %v3149_v24  ;;  %v402_v46 = vld [vmem:[%s6826_s1 + $0xb18] sm:$0xff]  ;;  %v3205_v48 = vpack.c.bf16 %v361_v42, %v341_v40  ;;  %v3159_v49 = vpack.c.bf16 %v400_v44, %v380_v43  ;;  %v379_v50 = vld [vmem:[%s6826_s1 + $0xa60] sm:$0xff]  ;;  %v381_v53 = vld [vmem:[%s6826_s1 + $0xa70] sm:$0xff]  ;;  %v5144_v24 = vrot.slane %v4995_v10, %v583_v14 }
  0xb4   :  { %3198 = vmatpush1.bf16.msra.mxu1 %v3197_v25  ;;  %3152 = vmatprep.subr.bf16.mxu0 %v3151_v26  ;;  %v399_v51 = vld [vmem:[%s6826_s1 + $0xb00] sm:$0xff]  ;;  %v3207_v54 = vpack.c.bf16 %v402_v46, %v382_v45  ;;  %v401_v55 = vld [vmem:[%s6826_s1 + $0xb10] sm:$0xff]  ;;  %v420_v56 = vld [vmem:[%s6826_s1 + $0xba8] sm:$0xff] }
  0xb5   :  { %3200 = vmatprep.subr.bf16.mxu1 %v3199_v30  ;;  %v440_v59 = vld [vmem:[%s6826_s1 + $0xc48] sm:$0xff]  ;;  %v422_v60 = vld [vmem:[%s6826_s1 + $0xbb8] sm:$0xff]  ;;  %v3161_v62 = vpack.c.bf16 %v399_v51, %v379_v50  ;;  %v3209_v0 = vpack.c.bf16 %v401_v55, %v381_v53  ;;  %v419_v2 = vld [vmem:[%s6826_s1 + $0xba0] sm:$0xff] }
  0xb6   :  { %v442_v61 = vld [vmem:[%s6826_s1 + $0xc58] sm:$0xff]  ;;  %v3163_v1 = vpack.c.bf16 %v440_v59, %v420_v56  ;;  %v439_v3 = vld [vmem:[%s6826_s1 + $0xc40] sm:$0xff]  ;;  %v421_v4 = vld [vmem:[%s6826_s1 + $0xbb0] sm:$0xff] }
  0xb7   :  { %3154 = vmatpush1.bf16.msra.mxu0 %v3153_v36  ;;  %v3211_v5 = vpack.c.bf16 %v442_v61, %v422_v60  ;;  %v441_v6 = vld [vmem:[%s6826_s1 + $0xc50] sm:$0xff]  ;;  %v460_v7 = vld [vmem:[%s6826_s1 + $0xce8] sm:$0xff]  ;;  %v462_v9 = vld [vmem:[%s6826_s1 + $0xcf8] sm:$0xff]  ;;  %v3165_v13 = vpack.c.bf16 %v439_v3, %v419_v2 }
  0xb8   :  { %3202 = vmatpush1.bf16.msra.mxu1 %v3201_v37  ;;  %3156 = vmatprep.subr.bf16.mxu0 %v3155_v38  ;;  %v480_v8 = vld [vmem:[%s6826_s1 + $0xd88] sm:$0xff]  ;;  %v482_v11 = vld [vmem:[%s6826_s1 + $0xd98] sm:$0xff]  ;;  %v3213_v15 = vpack.c.bf16 %v441_v6, %v421_v4  ;;  %v459_v17 = vld [vmem:[%s6826_s1 + $0xce0] sm:$0xff] }
  0xb9   :  { %3204 = vmatprep.subr.bf16.mxu1 %v3203_v41  ;;  %v3167_v16 = vpack.c.bf16 %v480_v8, %v460_v7  ;;  %v479_v18 = vld [vmem:[%s6826_s1 + $0xd80] sm:$0xff]  ;;  %v461_v19 = vld [vmem:[%s6826_s1 + $0xcf0] sm:$0xff]  ;;  %v3215_v20 = vpack.c.bf16 %v482_v11, %v462_v9  ;;  %v500_v22 = vld [vmem:[%s6826_s1 + $0xe28] sm:$0xff] }
  0xba   :  { %v481_v21 = vld [vmem:[%s6826_s1 + $0xd90] sm:$0xff]  ;;  %v520_v23 = vld [vmem:[%s6826_s1 + $0xec8] sm:$0xff]  ;;  %v502_v25 = vld [vmem:[%s6826_s1 + $0xe38] sm:$0xff]  ;;  %v3169_v27 = vpack.c.bf16 %v479_v18, %v459_v17 }
  0xbb   :  { %3158 = vmatpush1.bf16.msra.mxu0 %v3157_v47  ;;  %v522_v26 = vld [vmem:[%s6826_s1 + $0xed8] sm:$0xff]  ;;  %v3217_v28 = vpack.c.bf16 %v481_v21, %v461_v19  ;;  %v3171_v29 = vpack.c.bf16 %v520_v23, %v500_v22  ;;  %v499_v30 = vld [vmem:[%s6826_s1 + $0xe20] sm:$0xff]  ;;  %v501_v33 = vld [vmem:[%s6826_s1 + $0xe30] sm:$0xff] }
  0xbc   :  { %3206 = vmatpush1.bf16.msra.mxu1 %v3205_v48  ;;  %3160 = vmatprep.subr.bf16.mxu0 %v3159_v49  ;;  %v519_v31 = vld [vmem:[%s6826_s1 + $0xec0] sm:$0xff]  ;;  %v3219_v32 = vpack.c.bf16 %v522_v26, %v502_v25  ;;  %v521_v34 = vld [vmem:[%s6826_s1 + $0xed0] sm:$0xff]  ;;  %v540_v37 = vld [vmem:[%s6826_s1 + $0xf68] sm:$0xf] }
  0xbd   :  { %3208 = vmatprep.subr.bf16.mxu1 %v3207_v54  ;;  %v3173_v35 = vpack.c.bf16 %v519_v31, %v499_v30  ;;  %v3221_v36 = vpack.c.bf16 %v521_v34, %v501_v33  ;;  %v542_v38 = vld [vmem:[%s6826_s1 + $0xf78] sm:$0xf]  ;;  %v64_v39 = vld [vmem:[%s6826_s1 + $0x88] sm:$0xff]  ;;  %v539_v52 = vld [vmem:[%s6826_s1 + $0xf60] sm:$0xf] }
  0xbe   :  { %v84_v40 = vld [vmem:[%s6826_s1 + $0x128] sm:$0xff]  ;;  %v66_v41 = vld [vmem:[%s6826_s1 + $0x98] sm:$0xff]  ;;  %v63_v43 = vld [vmem:[%s6826_s1 + $0x80] sm:$0xff] }
  0xbf   :  { %3162 = vmatpush1.bf16.msra.mxu0 %v3161_v62  ;;  %v86_v42 = vld [vmem:[%s6826_s1 + $0x138] sm:$0xff]  ;;  %v83_v44 = vld [vmem:[%s6826_s1 + $0x120] sm:$0xff]  ;;  %v65_v45 = vld [vmem:[%s6826_s1 + $0x90] sm:$0xff]  ;;  %v3223_v50 = vpack.c.bf16 %v84_v40, %v64_v39 }
  0xc0   :  { %3210 = vmatpush1.bf16.msra.mxu1 %v3209_v0  ;;  %3164 = vmatprep.subr.bf16.mxu0 %v3163_v1  ;;  %v85_v46 = vld [vmem:[%s6826_s1 + $0x130] sm:$0xff]  ;;  %v104_v47 = vld [vmem:[%s6826_s1 + $0x1c8] sm:$0xff]  ;;  %v106_v51 = vld [vmem:[%s6826_s1 + $0x1d8] sm:$0xff]  ;;  %v3271_v54 = vpack.c.bf16 %v86_v42, %v66_v41  ;;  %v3225_v55 = vpack.c.bf16 %v83_v44, %v63_v43 }
  0xc1   :  { %3212 = vmatprep.subr.bf16.mxu1 %v3211_v5  ;;  %v124_v48 = vld [vmem:[%s6826_s1 + $0x268] sm:$0xff]  ;;  %v541_v49 = vld [vmem:[%s6826_s1 + $0xf70] sm:$0xf]  ;;  %v126_v53 = vld [vmem:[%s6826_s1 + $0x278] sm:$0xff]  ;;  %v3273_v56 = vpack.c.bf16 %v85_v46, %v65_v45 }
  0xc2   :  { %v3227_v59 = vpack.c.bf16 %v124_v48, %v104_v47  ;;  %v103_v60 = vld [vmem:[%s6826_s1 + $0x1c0] sm:$0xff]  ;;  %v105_v62 = vld [vmem:[%s6826_s1 + $0x1d0] sm:$0xff]  ;;  %v3275_v1 = vpack.c.bf16 %v126_v53, %v106_v51  ;;  %v144_v3 = vld [vmem:[%s6826_s1 + $0x308] sm:$0xff] }
  0xc3   :  { %3166 = vmatpush1.bf16.msra.mxu0 %v3165_v13  ;;  %v123_v61 = vld [vmem:[%s6826_s1 + $0x260] sm:$0xff]  ;;  %v125_v2 = vld [vmem:[%s6826_s1 + $0x270] sm:$0xff]  ;;  %v164_v4 = vld [vmem:[%s6826_s1 + $0x3a8] sm:$0xff] }
  0xc4   :  { %3214 = vmatpush1.bf16.msra.mxu1 %v3213_v15  ;;  %3168 = vmatprep.subr.bf16.mxu0 %v3167_v16  ;;  %v5228_v0 = vld [vmem:[%s6825_s0] sm:$0xff]  ;;  %v146_v5 = vld [vmem:[%s6826_s1 + $0x318] sm:$0xff]  ;;  %v3229_v7 = vpack.c.bf16 %v123_v61, %v103_v60  ;;  %v3277_v8 = vpack.c.bf16 %v125_v2, %v105_v62  ;;  %v3231_v9 = vpack.c.bf16 %v164_v4, %v144_v3  ;;  %v145_v15 = vld [vmem:[%s6826_s1 + $0x310] sm:$0xff] }
  0xc5   :  { %3216 = vmatprep.subr.bf16.mxu1 %v3215_v20  ;;  %v166_v6 = vld [vmem:[%s6826_s1 + $0x3b8] sm:$0xff]  ;;  %v143_v11 = vld [vmem:[%s6826_s1 + $0x300] sm:$0xff]  ;;  %v165_v17 = vld [vmem:[%s6826_s1 + $0x3b0] sm:$0xff] }
  0xc6   :  { %v163_v13 = vld [vmem:[%s6826_s1 + $0x3a0] sm:$0xff]  ;;  %v3279_v16 = vpack.c.bf16 %v166_v6, %v146_v5  ;;  %v184_v18 = vld [vmem:[%s6826_s1 + $0x448] sm:$0xff]  ;;  %v186_v20 = vld [vmem:[%s6826_s1 + $0x458] sm:$0xff]  ;;  %v3281_v23 = vpack.c.bf16 %v165_v17, %v145_v15 }
  0xc7   :  { %3170 = vmatpush1.bf16.msra.mxu0 %v3169_v27  ;;  %v204_v19 = vld [vmem:[%s6826_s1 + $0x4e8] sm:$0xff]  ;;  %v206_v21 = vld [vmem:[%s6826_s1 + $0x4f8] sm:$0xff]  ;;  %v3233_v22 = vpack.c.bf16 %v163_v13, %v143_v11  ;;  %v183_v26 = vld [vmem:[%s6826_s1 + $0x440] sm:$0xff] }
  0xc8   :  { %3218 = vmatpush1.bf16.msra.mxu1 %v3217_v28  ;;  %3172 = vmatprep.subr.bf16.mxu0 %v3171_v29  ;;  %v3235_v25 = vpack.c.bf16 %v204_v19, %v184_v18  ;;  %v203_v27 = vld [vmem:[%s6826_s1 + $0x4e0] sm:$0xff]  ;;  %v185_v28 = vld [vmem:[%s6826_s1 + $0x450] sm:$0xff]  ;;  %v224_v30 = vld [vmem:[%s6826_s1 + $0x588] sm:$0xff] }
  0xc9   :  { %3220 = vmatprep.subr.bf16.mxu1 %v3219_v32  ;;  %v205_v29 = vld [vmem:[%s6826_s1 + $0x4f0] sm:$0xff]  ;;  %v244_v31 = vld [vmem:[%s6826_s1 + $0x628] sm:$0xff]  ;;  %v226_v32 = vld [vmem:[%s6826_s1 + $0x598] sm:$0xff]  ;;  %v3237_v34 = vpack.c.bf16 %v203_v27, %v183_v26 }
  0xca   :  { %v246_v33 = vld [vmem:[%s6826_s1 + $0x638] sm:$0xff]  ;;  %v225_v39 = vld [vmem:[%s6826_s1 + $0x590] sm:$0xff]  ;;  %v264_v41 = vld [vmem:[%s6826_s1 + $0x6c8] sm:$0xff] }
  0xcb   :  { %3174 = vmatpush1.bf16.msra.mxu0 %v3173_v35  ;;  %v3285_v35 = vpack.c.bf16 %v205_v29, %v185_v28  ;;  %v245_v40 = vld [vmem:[%s6826_s1 + $0x630] sm:$0xff]  ;;  %v284_v42 = vld [vmem:[%s6826_s1 + $0x768] sm:$0xff]  ;;  %v266_v43 = vld [vmem:[%s6826_s1 + $0x6d8] sm:$0xff] }
  0xcc   :  { %3222 = vmatpush1.bf16.msra.mxu1 %v3221_v36  ;;  %2747 = vmatprep.subr.msk.mxu0 %vm658_vm1, %v540_v37  ;;  %v3239_v36 = vpack.c.bf16 %v244_v31, %v224_v30  ;;  %v223_v37 = vld [vmem:[%s6826_s1 + $0x580] sm:$0xff]  ;;  %v286_v44 = vld [vmem:[%s6826_s1 + $0x778] sm:$0xff]  ;;  %v3289_v46 = vpack.c.bf16 %v245_v40, %v225_v39  ;;  %v3243_v47 = vpack.c.bf16 %v284_v42, %v264_v41  ;;  %v285_v53 = vld [vmem:[%s6826_s1 + $0x770] sm:$0xff] }
  0xcd   :  { %2750 = vmatprep.subr.msk.mxu1 %vm658_vm1, %v542_v38  ;;  %v243_v38 = vld [vmem:[%s6826_s1 + $0x620] sm:$0xff]  ;;  %v3291_v51 = vpack.c.bf16 %v286_v44, %v266_v43  ;;  %v305_v3 = vld [vmem:[%s6826_s1 + $0x810] sm:$0xff]  ;;  %v344_v6 = vld [vmem:[%s6826_s1 + $0x948] sm:$0xff] }
  0xce   :  { %v3241_v45 = vpack.c.bf16 %v243_v38, %v223_v37  ;;  %v263_v48 = vld [vmem:[%s6826_s1 + $0x6c0] sm:$0xff]  ;;  %v325_v5 = vld [vmem:[%s6826_s1 + $0x8b0] sm:$0xff]  ;;  %v464_v44 = vld [vmem:[%s6826_s1 + $0xd08] sm:$0xff] }
  0xcf   :  { %2748 = vmatpush1.msk.msra.mxu0 %vm658_vm1, %v539_v52  ;;  %v3287_v52 = vpack.c.bf16 %v246_v33, %v226_v32  ;;  %v323_v2 = vld [vmem:[%s6826_s1 + $0x8a0] sm:$0xff]  ;;  %v3297_v13 = vpack.c.bf16 %v325_v5, %v305_v3  ;;  %v345_v18 = vld [vmem:[%s6826_s1 + $0x950] sm:$0xff]  ;;  %v424_v33 = vld [vmem:[%s6826_s1 + $0xbc8] sm:$0xff] }
  0xd0   :  { %2751 = vmatpush1.msk.msra.mxu1 %vm658_vm1, %v541_v49  ;;  %1210 = vmatmul.mubr.f32.vlgmr.msra.gmra.mrb[6].mxu0 %v5228_v0  ;;  %v283_v49 = vld [vmem:[%s6826_s1 + $0x760] sm:$0xff]  ;;  %v385_v30 = vld [vmem:[%s6826_s1 + $0xa90] sm:$0xff]  ;;  %vm6745_vm5 = vmpackc.low %vm2442_vm3, %vm3834_vm4 }
  0xd1   :  { %1281 = vmatmul.mubr.f32.vlgmr.msra.gmra.mrb[6].mxu1 %v5228_v0  ;;  %3224 = vmatprep.subr.bf16.mxu0 %v3223_v50  ;;  %v265_v50 = vld [vmem:[%s6826_s1 + $0x6d0] sm:$0xff]  ;;  %v3245_v60 = vpack.c.bf16 %v283_v49, %v263_v48  ;;  %v363_v17 = vld [vmem:[%s6826_s1 + $0x9e0] sm:$0xff] }
  0xd2   :  { %3272 = vmatprep.subr.bf16.mxu1 %v3271_v54  ;;  %3226 = vmatpush1.bf16.msra.mxu0 %v3225_v55  ;;  %v304_v54 = vld [vmem:[%s6826_s1 + $0x808] sm:$0xff]  ;;  %v3293_v61 = vpack.c.bf16 %v285_v53, %v265_v50  ;;  %v403_v29 = vld [vmem:[%s6826_s1 + $0xb20] sm:$0xff]  ;;  %v405_v32 = vld [vmem:[%s6826_s1 + $0xb30] sm:$0xff] }
  0xd3   :  { %3274 = vmatpush1.bf16.msra.mxu1 %v3273_v56  ;;  %3228 = vmatprep.subr.bf16.mxu0 %v3227_v59  ;;  %v324_v55 = vld [vmem:[%s6826_s1 + $0x8a8] sm:$0xff]  ;;  %v306_v56 = vld [vmem:[%s6826_s1 + $0x818] sm:$0xff]  ;;  %v3305_v38 = vpack.c.bf16 %v405_v32, %v385_v30  ;;  %v443_v40 = vld [vmem:[%s6826_s1 + $0xc60] sm:$0xff] }
  0xd4   :  { %3276 = vmatprep.subr.bf16.mxu1 %v3275_v1  ;;  %2755 = vmatprep.mubr.msk.f32.mxu0 %vm655_vm0, %v4167_v57  ;;  %v326_v59 = vld [vmem:[%s6826_s1 + $0x8b8] sm:$0xff]  ;;  %v3247_v62 = vpack.c.bf16 %v324_v55, %v304_v54  ;;  %v303_v1 = vld [vmem:[%s6826_s1 + $0x800] sm:$0xff]  ;;  %v425_v41 = vld [vmem:[%s6826_s1 + $0xbd0] sm:$0xff] }
  0xd5   :  { %2758 = vmatprep.mubr.msk.f32.mxu1 %vm655_vm0, %v4167_v57  ;;  %v3283_v57 = vpack.c.bf16 %v206_v21, %v186_v20  ;;  %v3295_v4 = vpack.c.bf16 %v326_v59, %v306_v56  ;;  %v3249_v11 = vpack.c.bf16 %v323_v2, %v303_v1  ;;  %v365_v20 = vld [vmem:[%s6826_s1 + $0x9f0] sm:$0xff]  ;;  %v384_v21 = vld [vmem:[%s6826_s1 + $0xa88] sm:$0xff]  ;;  %v483_v53 = vld [vmem:[%s6826_s1 + $0xda0] sm:$0xff] }
  0xd6   :  { %3230 = vmatpush1.bf16.msra.mxu0 %v3229_v7  ;;  %v364_v7 = vld [vmem:[%s6826_s1 + $0x9e8] sm:$0xff]  ;;  %v3301_v27 = vpack.c.bf16 %v365_v20, %v345_v18  ;;  %v445_v43 = vld [vmem:[%s6826_s1 + $0xc70] sm:$0xff]  ;;  %v523_v5 = vld [vmem:[%s6826_s1 + $0xee0] sm:$0xff]  ;;  %v5498_v18 = vsub.s32 2, %v4959_v58 }
  0xd7   :  { %3278 = vmatpush1.bf16.msra.mxu1 %v3277_v8  ;;  %3232 = vmatprep.subr.bf16.mxu0 %v3231_v9  ;;  %v346_v8 = vld [vmem:[%s6826_s1 + $0x958] sm:$0xff]  ;;  %v3251_v15 = vpack.c.bf16 %v364_v7, %v344_v6  ;;  %v3309_v49 = vpack.c.bf16 %v445_v43, %v425_v41  ;;  %v465_v54 = vld [vmem:[%s6826_s1 + $0xd10] sm:$0xff]  ;;  %v504_v59 = vld [vmem:[%s6826_s1 + $0xe48] sm:$0xff] }
  0xd8   :  { %3280 = vmatprep.subr.bf16.mxu1 %v3279_v16  ;;  %v366_v9 = vld [vmem:[%s6826_s1 + $0x9f8] sm:$0xff]  ;;  %v343_v16 = vld [vmem:[%s6826_s1 + $0x940] sm:$0xff]  ;;  %v485_v56 = vld [vmem:[%s6826_s1 + $0xdb0] sm:$0xff] }
  0xd9   :  { %v3299_v19 = vpack.c.bf16 %v366_v9, %v346_v8  ;;  %v3253_v26 = vpack.c.bf16 %v363_v17, %v343_v16  ;;  %v3313_v2 = vpack.c.bf16 %v485_v56, %v465_v54  ;;  %v505_v7 = vld [vmem:[%s6826_s1 + $0xe50] sm:$0xff]  ;;  %v543_v16 = vld [vmem:[%s6826_s1 + $0xf80] sm:$0xf] }
  0xda   :  { %3234 = vmatpush1.bf16.msra.mxu0 %v3233_v22  ;;  %v404_v22 = vld [vmem:[%s6826_s1 + $0xb28] sm:$0xff]  ;;  %v525_v8 = vld [vmem:[%s6826_s1 + $0xef0] sm:$0xff]  ;;  %v1453_v30 = vld [vmem:[%s6828_s3 + $0x20] sm:$0xff] }
  0xdb   :  { %3282 = vmatpush1.bf16.msra.mxu1 %v3281_v23  ;;  %3236 = vmatprep.subr.bf16.mxu0 %v3235_v25  ;;  %v386_v23 = vld [vmem:[%s6826_s1 + $0xa98] sm:$0xff]  ;;  %v3255_v28 = vpack.c.bf16 %v404_v22, %v384_v21  ;;  %v545_v17 = vld [vmem:[%s6826_s1 + $0xf90] sm:$0xf]  ;;  %v1461_v41 = vld [vmem:[%s6828_s3 + $0x60] sm:$0xff] }
  0xdc   :  { %3284 = vmatprep.subr.bf16.mxu1 %v3283_v57  ;;  %v406_v25 = vld [vmem:[%s6826_s1 + $0xb38] sm:$0xff]  ;;  %v383_v57 = vld [vmem:[%s6826_s1 + $0xa80] sm:$0xff]  ;;  %v1467_v56 = vld [vmem:[%s6828_s3 + $0x90] sm:$0xff] }
  0xdd   :  { %v3303_v31 = vpack.c.bf16 %v406_v25, %v386_v23  ;;  %v3257_v37 = vpack.c.bf16 %v403_v29, %v383_v57  ;;  %v1456_v57 = vld [vmem:[%s6828_s3 + $0x38] sm:$0xff]  ;;  %v1449_v29 = vld [vmem:[%s6828_s3] sm:$0xff] }
  0xde   :  { %3238 = vmatpush1.bf16.msra.mxu0 %v3237_v34  ;;  %v444_v34 = vld [vmem:[%s6826_s1 + $0xc68] sm:$0xff]  ;;  %v3321_v32 = vpack.c.bf16 %v1453_v30, %v1449_v29  ;;  %v1465_v54 = vld [vmem:[%s6828_s3 + $0x80] sm:$0xff]  ;;  %v5634_v30 = vsub.s32 0, %v4959_v58 }
  0xdf   :  { %3286 = vmatpush1.bf16.msra.mxu1 %v3285_v35  ;;  %3240 = vmatprep.subr.bf16.mxu0 %v3239_v36  ;;  %v426_v35 = vld [vmem:[%s6826_s1 + $0xbd8] sm:$0xff]  ;;  %v3259_v39 = vpack.c.bf16 %v444_v34, %v424_v33  ;;  %v1451_v33 = vld [vmem:[%s6828_s3 + $0x10] sm:$0xff]  ;;  %v1490_v29 = vld [vmem:[%s6828_s3 + $0x148] sm:$0xff] }
  0xe0   :  { %3288 = vmatprep.subr.bf16.mxu1 %v3287_v52  ;;  %v446_v36 = vld [vmem:[%s6826_s1 + $0xc78] sm:$0xff]  ;;  %v423_v52 = vld [vmem:[%s6826_s1 + $0xbc0] sm:$0xff]  ;;  %v1455_v34 = vld [vmem:[%s6828_s3 + $0x30] sm:$0xff] }
  0xe1   :  { %v3307_v42 = vpack.c.bf16 %v446_v36, %v426_v35  ;;  %v3261_v48 = vpack.c.bf16 %v443_v40, %v423_v52  ;;  %v3481_v35 = vpack.c.bf16 %v1455_v34, %v1451_v33  ;;  %v1458_v36 = vld [vmem:[%s6828_s3 + $0x48] sm:$0xff]  ;;  %v1464_v52 = vld [vmem:[%s6828_s3 + $0x78] sm:$0xff]  ;;  %v1457_v40 = vld [vmem:[%s6828_s3 + $0x40] sm:$0xff]  ;;  %v5646_v34 = vsub.s32 1, %v4959_v58 }
  0xe2   :  { %3242 = vmatpush1.bf16.msra.mxu0 %v3241_v45  ;;  %v484_v45 = vld [vmem:[%s6826_s1 + $0xda8] sm:$0xff]  ;;  %v3325_v43 = vpack.c.bf16 %v1461_v41, %v1457_v40  ;;  %v1496_v33 = vld [vmem:[%s6828_s3 + $0x178] sm:$0xff]  ;;  %v1493_v40 = vld [vmem:[%s6828_s3 + $0x160] sm:$0xff] }
  0xe3   :  { %3290 = vmatpush1.bf16.msra.mxu1 %v3289_v46  ;;  %3244 = vmatprep.subr.bf16.mxu0 %v3243_v47  ;;  %v466_v46 = vld [vmem:[%s6826_s1 + $0xd18] sm:$0xff]  ;;  %v3263_v50 = vpack.c.bf16 %v484_v45, %v464_v44  ;;  %v1459_v44 = vld [vmem:[%s6828_s3 + $0x50] sm:$0xff] }
  0xe4   :  { %3292 = vmatprep.subr.bf16.mxu1 %v3291_v51  ;;  %v486_v47 = vld [vmem:[%s6826_s1 + $0xdb8] sm:$0xff]  ;;  %v463_v51 = vld [vmem:[%s6826_s1 + $0xd00] sm:$0xff]  ;;  %v1463_v45 = vld [vmem:[%s6828_s3 + $0x70] sm:$0xff] }
  0xe5   :  { %v3311_v55 = vpack.c.bf16 %v486_v47, %v466_v46  ;;  %v3265_v1 = vpack.c.bf16 %v483_v53, %v463_v51  ;;  %v1466_v46 = vld [vmem:[%s6828_s3 + $0x88] sm:$0xff]  ;;  %v3485_v47 = vpack.c.bf16 %v1463_v45, %v1459_v44  ;;  %v1491_v41 = vld [vmem:[%s6828_s3 + $0x150] sm:$0xff] }
  0xe6   :  { %3246 = vmatpush1.bf16.msra.mxu0 %v3245_v60  ;;  %v524_v60 = vld [vmem:[%s6826_s1 + $0xee8] sm:$0xff] }
  0xe7   :  { %3294 = vmatpush1.bf16.msra.mxu1 %v3293_v61  ;;  %3248 = vmatprep.subr.bf16.mxu0 %v3247_v62  ;;  %v506_v61 = vld [vmem:[%s6826_s1 + $0xe58] sm:$0xff]  ;;  %v3267_v3 = vpack.c.bf16 %v524_v60, %v504_v59  ;;  %v1471_v60 = vld [vmem:[%s6828_s3 + $0xb0] sm:$0xff]  ;;  %v1498_v44 = vld [vmem:[%s6828_s3 + $0x188] sm:$0xff] }
  0xe8   :  { %3296 = vmatprep.subr.bf16.mxu1 %v3295_v4  ;;  %v526_v62 = vld [vmem:[%s6826_s1 + $0xef8] sm:$0xff]  ;;  %v503_v4 = vld [vmem:[%s6826_s1 + $0xe40] sm:$0xff]  ;;  %v1502_v45 = vld [vmem:[%s6828_s3 + $0x1a8] sm:$0xff] }
  0xe9   :  { %v3315_v6 = vpack.c.bf16 %v526_v62, %v506_v61  ;;  %v3269_v9 = vpack.c.bf16 %v523_v5, %v503_v4  ;;  %v1474_v61 = vld [vmem:[%s6828_s3 + $0xc8] sm:$0xff]  ;;  %v1480_v4 = vld [vmem:[%s6828_s3 + $0xf8] sm:$0xff]  ;;  %v1473_v5 = vld [vmem:[%s6828_s3 + $0xc0] sm:$0xff] }
  0xea   :  { %3250 = vmatpush1.bf16.msra.mxu0 %v3249_v11  ;;  %v3317_v11 = vpack.c.bf16 %v525_v8, %v505_v7  ;;  %v1478_v62 = vld [vmem:[%s6828_s3 + $0xe8] sm:$0xff]  ;;  %v1477_v7 = vld [vmem:[%s6828_s3 + $0xe0] sm:$0xff]  ;;  %v1475_v8 = vld [vmem:[%s6828_s3 + $0xd0] sm:$0xff] }
  0xeb   :  { %3298 = vmatpush1.bf16.msra.mxu1 %v3297_v13  ;;  %3252 = vmatprep.subr.bf16.mxu0 %v3251_v15  ;;  %v544_v13 = vld [vmem:[%s6826_s1 + $0xf88] sm:$0xf]  ;;  %v546_v15 = vld [vmem:[%s6826_s1 + $0xf98] sm:$0xf] }
  0xec   :  { %3300 = vmatprep.subr.bf16.mxu1 %v3299_v19  ;;  %v564_v19 = vrot.slane %v4995_v10, %v5498_v18 }
  0xee   :  { %3254 = vmatpush1.bf16.msra.mxu0 %v3253_v26  ;;  %v1450_v26 = vld [vmem:[%s6828_s3 + $0x8] sm:$0xff] }
  0xef   :  { %3302 = vmatpush1.bf16.msra.mxu1 %v3301_v27  ;;  %3256 = vmatprep.subr.bf16.mxu0 %v3255_v28  ;;  %v1452_v27 = vld [vmem:[%s6828_s3 + $0x18] sm:$0xff] }
  0xf0   :  { %3304 = vmatprep.subr.bf16.mxu1 %v3303_v31  ;;  %v3479_v31 = vpack.c.bf16 %v1456_v57, %v1452_v27  ;;  %v1487_v57 = vld [vmem:[%s6828_s3 + $0x130] sm:$0xff] }
  0xf2   :  { %3258 = vmatpush1.bf16.msra.mxu0 %v3257_v37  ;;  %v1462_v37 = vld [vmem:[%s6828_s3 + $0x68] sm:$0xff] }
  0xf3   :  { %3306 = vmatpush1.bf16.msra.mxu1 %v3305_v38  ;;  %3260 = vmatprep.subr.bf16.mxu0 %v3259_v39  ;;  %v1460_v38 = vld [vmem:[%s6828_s3 + $0x58] sm:$0xff]  ;;  %v3323_v39 = vpack.c.bf16 %v1462_v37, %v1458_v36  ;;  %v575_v37 = vsub.s32 5, %v4959_v58 }
  0xf4   :  { %3308 = vmatprep.subr.bf16.mxu1 %v3307_v42  ;;  %v3483_v42 = vpack.c.bf16 %v1464_v52, %v1460_v38  ;;  %v1489_v52 = vld [vmem:[%s6828_s3 + $0x140] sm:$0xff] }
  0xf6   :  { %3262 = vmatpush1.bf16.msra.mxu0 %v3261_v48  ;;  %v1470_v48 = vld [vmem:[%s6828_s3 + $0xa8] sm:$0xff] }
  0xf7   :  { %3310 = vmatpush1.bf16.msra.mxu1 %v3309_v49  ;;  %3264 = vmatprep.subr.bf16.mxu0 %v3263_v50  ;;  %v1468_v49 = vld [vmem:[%s6828_s3 + $0x98] sm:$0xff]  ;;  %v3327_v51 = vpack.c.bf16 %v1470_v48, %v1466_v46  ;;  %v556_v46 = vrot.slane %v4995_v10, %v5634_v30 }
  0xf8   :  { %3312 = vmatprep.subr.bf16.mxu1 %v3311_v55  ;;  %v1472_v50 = vld [vmem:[%s6828_s3 + $0xb8] sm:$0xff]  ;;  %v1469_v55 = vld [vmem:[%s6828_s3 + $0xa0] sm:$0xff] }
  0xf9   :  { %v3487_v53 = vpack.c.bf16 %v1472_v50, %v1468_v49  ;;  %v3329_v59 = vpack.c.bf16 %v1469_v55, %v1465_v54  ;;  %v1504_v48 = vld [vmem:[%s6828_s3 + $0x1b8] sm:$0xff]  ;;  %v560_v49 = vrot.slane %v4995_v10, %v5646_v34  ;;  %v576_v54 = vrot.slane %v4995_v10, %v575_v37 }
  0xfa   :  { %3266 = vmatpush1.bf16.msra.mxu0 %v3265_v1  ;;  %v3489_v1 = vpack.c.bf16 %v1471_v60, %v1467_v56  ;;  %v3343_v56 = vpack.c.bf16 %v1502_v45, %v1498_v44  ;;  %v1499_v60 = vld [vmem:[%s6828_s3 + $0x190] sm:$0xff]  ;;  %v1526_v44 = vld [vmem:[%s6828_s3 + $0x268] sm:$0xff]  ;;  %v1524_v45 = vld [vmem:[%s6828_s3 + $0x258] sm:$0xff] }
  0xfb   :  { %3314 = vmatpush1.bf16.msra.mxu1 %v3313_v2  ;;  %3268 = vmatprep.subr.bf16.mxu0 %v3267_v3  ;;  %v3331_v2 = vpack.c.bf16 %v1478_v62, %v1474_v61  ;;  %v1476_v3 = vld [vmem:[%s6828_s3 + $0xd8] sm:$0xff]  ;;  %v1503_v61 = vld [vmem:[%s6828_s3 + $0x1b0] sm:$0xff] }
  0xfc   :  { %3316 = vmatprep.subr.bf16.mxu1 %v3315_v6  ;;  %v3491_v6 = vpack.c.bf16 %v1480_v4, %v1476_v3  ;;  %v1508_v4 = vld [vmem:[%s6828_s3 + $0x1d8] sm:$0xff] }
  0xfe   :  { %3270 = vmatpush1.bf16.msra.mxu0 %v3269_v9  ;;  %v1479_v9 = vld [vmem:[%s6828_s3 + $0xf0] sm:$0xff] }
  0xff   :  { %3318 = vmatpush1.bf16.msra.mxu1 %v3317_v11  ;;  %2753 = vmatprep.subr.msk.mxu0 %vm658_vm1, %v544_v13  ;;  %v3333_v11 = vpack.c.bf16 %v1477_v7, %v1473_v5  ;;  %v1482_v13 = vld [vmem:[%s6828_s3 + $0x108] sm:$0xff]  ;;  %v1512_v5 = vld [vmem:[%s6828_s3 + $0x1f8] sm:$0xff] }
 0x100   :  { %2756 = vmatprep.subr.msk.mxu1 %vm658_vm1, %v546_v15  ;;  %v1486_v15 = vld [vmem:[%s6828_s3 + $0x128] sm:$0xff] }
 0x102   :  { %2754 = vmatpush1.msk.msra.mxu0 %vm658_vm1, %v543_v16  ;;  %v1484_v16 = vld [vmem:[%s6828_s3 + $0x118] sm:$0xff] }
 0x103   :  { %2757 = vmatpush1.msk.msra.mxu1 %vm658_vm1, %v545_v17  ;;  %1352 = vmatmul.mubr.f32.vlgmr.msra.gmra.mrb[8].mxu0 %v5228_v0  ;;  %v3493_v17 = vpack.c.bf16 %v1479_v9, %v1475_v8 }
 0x104   :  { %1423 = vmatmul.mubr.f32.vlgmr.msra.gmra.mrb[8].mxu1 %v5228_v0  ;;  %v1454_v0 = vld [vmem:[%s6828_s3 + $0x28] sm:$0xff]  ;;  %3480 = vmatprep.subr.bf16.mxu1 %v3479_v31 }
 0x105   :  { %v3319_v28 = vpack.c.bf16 %v1454_v0, %v1450_v26  ;;  %3482 = vmatpush1.bf16.msra.mxu1 %v3481_v35  ;;  %v1481_v26 = vld [vmem:[%s6828_s3 + $0x100] sm:$0xff]  ;;  %v1494_v31 = vld [vmem:[%s6828_s3 + $0x168] sm:$0xff]  ;;  %v579_v35 = vsub.s32 6, %v4959_v58 }
 0x106   :  { %3484 = vmatprep.subr.bf16.mxu1 %v3483_v42  ;;  %v1485_v0 = vld [vmem:[%s6828_s3 + $0x120] sm:$0xff] }
 0x107   :  { %3320 = vmatprep.subr.bf16.mxu0 %v3319_v28  ;;  %v1483_v28 = vld [vmem:[%s6828_s3 + $0x110] sm:$0xff]  ;;  %v3337_v36 = vpack.c.bf16 %v1485_v0, %v1481_v26  ;;  %v580_v50 = vrot.slane %v4995_v10, %v579_v35  ;;  %v1506_v10 = vld [vmem:[%s6828_s3 + $0x1c8] sm:$0xff]  ;;  %v3507_v26 = vpack.c.bf16 %v1512_v5, %v1508_v4  ;;  %v1533_v4 = vld [vmem:[%s6828_s3 + $0x2a0] sm:$0xff] }
 0x108   :  { %3322 = vmatpush1.bf16.msra.mxu0 %v3321_v32  ;;  %v1492_v32 = vld [vmem:[%s6828_s3 + $0x158] sm:$0xff]  ;;  %v3497_v38 = vpack.c.bf16 %v1487_v57, %v1483_v28  ;;  %v1511_v0 = vld [vmem:[%s6828_s3 + $0x1f0] sm:$0xff]  ;;  %v1518_v28 = vld [vmem:[%s6828_s3 + $0x228] sm:$0xff] }
 0x109   :  { %3324 = vmatprep.subr.bf16.mxu0 %v3323_v39  ;;  %3486 = vmatpush1.bf16.msra.mxu1 %v3485_v47  ;;  %v3339_v39 = vpack.c.bf16 %v1494_v31, %v1490_v29  ;;  %v3499_v42 = vpack.c.bf16 %v1496_v33, %v1492_v32  ;;  %v1500_v47 = vld [vmem:[%s6828_s3 + $0x198] sm:$0xff]  ;;  %v1531_v5 = vld [vmem:[%s6828_s3 + $0x290] sm:$0xff] }
 0x10a   :  { %v5502_v20 = vpop.f32.mrb[0].mxu0  ;;  %3488 = vmatprep.subr.bf16.mxu1 %v3487_v53  ;;  %v1497_v53 = vld [vmem:[%s6828_s3 + $0x180] sm:$0xff]  ;;  %v3503_v62 = vpack.c.bf16 %v1504_v48, %v1500_v47  ;;  %v1516_v29 = vld [vmem:[%s6828_s3 + $0x218] sm:$0xff] }
 0x10b   :  { %v5504_v21 = vpop.f32.mrb[1].mxu0  ;;  %v1520_v31 = vld [vmem:[%s6828_s3 + $0x238] sm:$0xff] }
 0x10c   :  { %v856_v22 = vpop.f32.mrb[0].mxu1  ;;  %3326 = vmatpush1.bf16.msra.mxu0 %v3325_v43  ;;  %v1495_v43 = vld [vmem:[%s6828_s3 + $0x170] sm:$0xff] }
 0x10d   :  { %v5506_v23 = vadd.f32 %v856_v22, %v564_v19  ;;  %v5508_v25 = vpop.f32.mrb[1].mxu1  ;;  %3328 = vmatprep.subr.bf16.mxu0 %v3327_v51  ;;  %3490 = vmatpush1.bf16.msra.mxu1 %v3489_v1  ;;  %v3335_v19 = vpack.c.bf16 %v1486_v15, %v1482_v13  ;;  %v1488_v22 = vld [vmem:[%s6828_s3 + $0x138] sm:$0xff]  ;;  %v3341_v51 = vpack.c.bf16 %v1493_v40, %v1489_v52  ;;  %v1510_v1 = vld [vmem:[%s6828_s3 + $0x1e8] sm:$0xff]  ;;  %v1517_v52 = vld [vmem:[%s6828_s3 + $0x220] sm:$0xff] }
 0x10e   :  { %3492 = vmatprep.subr.bf16.mxu1 %v3491_v6  ;;  %v3495_v27 = vpack.c.bf16 %v1488_v22, %v1484_v16  ;;  %v3501_v55 = vpack.c.bf16 %v1495_v43, %v1491_v41  ;;  %v5712_v6 = vadd.f32 %v5504_v21, %v560_v49  ;;  %v1505_v21 = vld [vmem:[%s6828_s3 + $0x1c0] sm:$0xff]  ;;  %v1515_v40 = vld [vmem:[%s6828_s3 + $0x210] sm:$0xff]  ;;  %v3511_v41 = vpack.c.bf16 %v1520_v31, %v1516_v29  ;;  %v1522_v43 = vld [vmem:[%s6828_s3 + $0x248] sm:$0xff] }
 0x10f   :  { %v3355_v49 = vpack.c.bf16 %v1526_v44, %v1522_v43  ;;  %v1543_v29 = vld [vmem:[%s6828_s3 + $0x2f0] sm:$0xff] }
 0x110   :  { %3330 = vmatpush1.bf16.msra.mxu0 %v3329_v59  ;;  %v1501_v59 = vld [vmem:[%s6828_s3 + $0x1a0] sm:$0xff] }
 0x111   :  { %3332 = vmatprep.subr.bf16.mxu0 %v3331_v2  ;;  %3494 = vmatpush1.bf16.msra.mxu1 %v3493_v17  ;;  %v5703_v2 = vadd.f32 %v5502_v20, %v556_v46  ;;  %v3345_v20 = vpack.c.bf16 %v1501_v59, %v1497_v53  ;;  %v3347_v17 = vpack.c.bf16 %v1510_v1, %v1506_v10  ;;  %v1528_v46 = vld [vmem:[%s6828_s3 + $0x278] sm:$0xff]  ;;  %v1523_v53 = vld [vmem:[%s6828_s3 + $0x250] sm:$0xff]  ;;  %v1534_v59 = vld [vmem:[%s6828_s3 + $0x2a8] sm:$0xff] }
 0x112   :  { %3496 = vmatprep.subr.bf16.mxu1 %v3495_v27  ;;  %v1514_v27 = vld [vmem:[%s6828_s3 + $0x208] sm:$0xff] }
 0x114   :  { %3334 = vmatpush1.bf16.msra.mxu0 %v3333_v11  ;;  %v3505_v11 = vpack.c.bf16 %v1503_v61, %v1499_v60  ;;  %v1532_v60 = vld [vmem:[%s6828_s3 + $0x298] sm:$0xff] }
 0x115   :  { %3336 = vmatprep.subr.bf16.mxu0 %v3335_v19  ;;  %3498 = vmatpush1.bf16.msra.mxu1 %v3497_v38  ;;  %v1507_v19 = vld [vmem:[%s6828_s3 + $0x1d0] sm:$0xff]  ;;  %v3351_v38 = vpack.c.bf16 %v1518_v28, %v1514_v27  ;;  %v1536_v61 = vld [vmem:[%s6828_s3 + $0x2b8] sm:$0xff] }
 0x116   :  { %3500 = vmatprep.subr.bf16.mxu1 %v3499_v42  ;;  %v1519_v42 = vld [vmem:[%s6828_s3 + $0x230] sm:$0xff] }
 0x117   :  { %v3513_v48 = vpack.c.bf16 %v1519_v42, %v1515_v40  ;;  %v1539_v28 = vld [vmem:[%s6828_s3 + $0x2d0] sm:$0xff]  ;;  %v1552_v40 = vld [vmem:[%s6828_s3 + $0x338] sm:$0xff]  ;;  %v1549_v42 = vld [vmem:[%s6828_s3 + $0x320] sm:$0xff] }
 0x118   :  { %3338 = vmatpush1.bf16.msra.mxu0 %v3337_v36  ;;  %v3509_v36 = vpack.c.bf16 %v1511_v0, %v1507_v19  ;;  %v1541_v0 = vld [vmem:[%s6828_s3 + $0x2e0] sm:$0xff] }
 0x119   :  { %3340 = vmatprep.subr.bf16.mxu0 %v3339_v39  ;;  %3502 = vmatpush1.bf16.msra.mxu1 %v3501_v55  ;;  %v1513_v39 = vld [vmem:[%s6828_s3 + $0x200] sm:$0xff]  ;;  %v1527_v55 = vld [vmem:[%s6828_s3 + $0x270] sm:$0xff] }
 0x11a   :  { %3504 = vmatprep.subr.bf16.mxu1 %v3503_v62  ;;  %v3353_v47 = vpack.c.bf16 %v1517_v52, %v1513_v39  ;;  %v3517_v10 = vpack.c.bf16 %v1527_v55, %v1523_v53  ;;  %v1548_v39 = vld [vmem:[%s6828_s3 + $0x318] sm:$0xff]  ;;  %v1557_v55 = vld [vmem:[%s6828_s3 + $0x360] sm:$0xff] }
 0x11b   :  { %v3527_v43 = vpack.c.bf16 %v1552_v40, %v1548_v39  ;;  %v1560_v53 = vld [vmem:[%s6828_s3 + $0x378] sm:$0xff]  ;;  %v1582_v40 = vld [vmem:[%s6828_s3 + $0x428] sm:$0xff] }
 0x11c   :  { %3342 = vmatpush1.bf16.msra.mxu0 %v3341_v51  ;;  %v1525_v51 = vld [vmem:[%s6828_s3 + $0x260] sm:$0xff] }
 0x11d   :  { %3344 = vmatprep.subr.bf16.mxu0 %v3343_v56  ;;  %3506 = vmatpush1.bf16.msra.mxu1 %v3505_v11  ;;  %v1530_v56 = vld [vmem:[%s6828_s3 + $0x288] sm:$0xff] }
 0x11e   :  { %3508 = vmatprep.subr.bf16.mxu1 %v3507_v26  ;;  %v3359_v1 = vpack.c.bf16 %v1534_v59, %v1530_v56  ;;  %v1542_v11 = vld [vmem:[%s6828_s3 + $0x2e8] sm:$0xff]  ;;  %v1537_v26 = vld [vmem:[%s6828_s3 + $0x2c0] sm:$0xff] }
 0x11f   :  { %v3365_v31 = vpack.c.bf16 %v1541_v0, %v1537_v26  ;;  %v1572_v26 = vld [vmem:[%s6828_s3 + $0x3d8] sm:$0xff] }
 0x120   :  { %3346 = vmatpush1.bf16.msra.mxu0 %v3345_v20  ;;  %v1538_v20 = vld [vmem:[%s6828_s3 + $0x2c8] sm:$0xff]  ;;  %v1576_v0 = vld [vmem:[%s6828_s3 + $0x3f8] sm:$0xff] }
 0x121   :  { %3348 = vmatprep.subr.bf16.mxu0 %v3347_v17  ;;  %3510 = vmatpush1.bf16.msra.mxu1 %v3509_v36  ;;  %v1544_v17 = vld [vmem:[%s6828_s3 + $0x2f8] sm:$0xff]  ;;  %v3363_v19 = vpack.c.bf16 %v1542_v11, %v1538_v20  ;;  %v1546_v36 = vld [vmem:[%s6828_s3 + $0x308] sm:$0xff] }
 0x122   :  { %3512 = vmatprep.subr.bf16.mxu1 %v3511_v41  ;;  %v1545_v41 = vld [vmem:[%s6828_s3 + $0x300] sm:$0xff] }
 0x123   :  { %v3369_v44 = vpack.c.bf16 %v1549_v42, %v1545_v41  ;;  %v1580_v41 = vld [vmem:[%s6828_s3 + $0x418] sm:$0xff] }
 0x125   :  { %3514 = vmatpush1.bf16.msra.mxu1 %v3513_v48  ;;  %v1554_v48 = vld [vmem:[%s6828_s3 + $0x348] sm:$0xff] }
 0x13d   :  { %v927_v3 = vpop.f32.mrb[2].mxu0 }
 0x13e   :  { %v5715_v7 = vadd.f32 %v927_v3, %v5000_v12  ;;  %v998_v8 = vpop.f32.mrb[2].mxu1  ;;  %v929_v9 = vpop.f32.mrb[3].mxu0  ;;  %v1509_v12 = vld [vmem:[%s6828_s3 + $0x1e0] sm:$0xff] }
 0x13f   :  { %v5717_v13 = vadd.f32 %v998_v8, %v580_v50  ;;  %v5719_v15 = vadd.f32 %v929_v9, %v576_v54  ;;  %v1000_v16 = vpop.f32.mrb[3].mxu1  ;;  %v3349_v33 = vpack.c.bf16 %v1509_v12, %v1505_v21  ;;  %v1521_v50 = vld [vmem:[%s6828_s3 + $0x240] sm:$0xff]  ;;  %v3515_v54 = vpack.c.bf16 %v1528_v46, %v1524_v45  ;;  %v1535_v9 = vld [vmem:[%s6828_s3 + $0x2b0] sm:$0xff] }
 0x140   :  { %v5731_v22 = vadd.f32 %v1000_v16, %v5144_v24  ;;  %v3357_v62 = vpack.c.bf16 %v1525_v51, %v1521_v50  ;;  %v1529_v3 = vld [vmem:[%s6828_s3 + $0x280] sm:$0xff]  ;;  %v3519_v8 = vpack.c.bf16 %v1536_v61, %v1532_v60  ;;  %v1540_v16 = vld [vmem:[%s6828_s3 + $0x2d8] sm:$0xff]  ;;  %v3521_v12 = vpack.c.bf16 %v1535_v9, %v1531_v5  ;;  %v1547_v45 = vld [vmem:[%s6828_s3 + $0x310] sm:$0xff] }
 0x141   :  { %v1430_v57 = vmax.f32 %v5712_v6, %v5717_v13  ;;  %v1429_v24 = vmax.f32 %v5703_v2, %v5719_v15  ;;  %3350 = vmatpush1.bf16.msra.mxu0 %v3349_v33  ;;  %3516 = vmatprep.subr.bf16.mxu1 %v3515_v54  ;;  %v3361_v21 = vpack.c.bf16 %v1533_v4, %v1529_v3  ;;  %v1551_v46 = vld [vmem:[%s6828_s3 + $0x330] sm:$0xff]  ;;  %v1556_v50 = vld [vmem:[%s6828_s3 + $0x358] sm:$0xff]  ;;  %v1553_v54 = vld [vmem:[%s6828_s3 + $0x340] sm:$0xff] }
 0x142   :  { %v1431_v32 = vmax.f32 %v5506_v23, %v5731_v22  ;;  %3352 = vmatprep.subr.bf16.mxu0 %v3351_v38  ;;  %3518 = vmatpush1.bf16.msra.mxu1 %v3517_v10  ;;  %v3523_v27 = vpack.c.bf16 %v1544_v17, %v1540_v16  ;;  %v3525_v33 = vpack.c.bf16 %v1543_v29, %v1539_v28  ;;  %v1550_v38 = vld [vmem:[%s6828_s3 + $0x328] sm:$0xff]  ;;  %v1555_v60 = vld [vmem:[%s6828_s3 + $0x350] sm:$0xff]  ;;  %v1564_v3 = vld [vmem:[%s6828_s3 + $0x398] sm:$0xff] }
 0x143   :  { %3520 = vmatprep.subr.bf16.mxu1 %v3519_v8  ;;  %v3367_v52 = vpack.c.bf16 %v1550_v38, %v1546_v36  ;;  %v3531_v56 = vpack.c.bf16 %v1560_v53, %v1556_v50  ;;  %v3373_v59 = vpack.c.bf16 %v1557_v55, %v1553_v54  ;;  %v1559_v61 = vld [vmem:[%s6828_s3 + $0x370] sm:$0xff]  ;;  %v1562_v10 = vld [vmem:[%s6828_s3 + $0x388] sm:$0xff]  ;;  %v1568_v5 = vld [vmem:[%s6828_s3 + $0x3b8] sm:$0xff]  ;;  %v3539_v28 = vpack.c.bf16 %v1576_v0, %v1572_v26 }
 0x144   :  { %v1561_v8 = vld [vmem:[%s6828_s3 + $0x380] sm:$0xff]  ;;  %v3535_v20 = vpack.c.bf16 %v1568_v5, %v1564_v3  ;;  %v1563_v16 = vld [vmem:[%s6828_s3 + $0x390] sm:$0xff]  ;;  %v1586_v22 = vld [vmem:[%s6828_s3 + $0x448] sm:$0xff] }
 0x145   :  { %3354 = vmatpush1.bf16.msra.mxu0 %v3353_v47  ;;  %v3529_v47 = vpack.c.bf16 %v1551_v46, %v1547_v45  ;;  %v1565_v9 = vld [vmem:[%s6828_s3 + $0x3a0] sm:$0xff]  ;;  %v1567_v17 = vld [vmem:[%s6828_s3 + $0x3b0] sm:$0xff]  ;;  %v548_v46 = vld [vmem:[%s6827_s2 + $0x8] sm:$0xff] }
 0x146   :  { %3356 = vmatprep.subr.bf16.mxu0 %v3355_v49  ;;  %3522 = vmatpush1.bf16.msra.mxu1 %v3521_v12  ;;  %v1558_v49 = vld [vmem:[%s6828_s3 + $0x368] sm:$0xff]  ;;  %v3377_v11 = vpack.c.bf16 %v1565_v9, %v1561_v8  ;;  %v3537_v12 = vpack.c.bf16 %v1567_v17, %v1563_v16  ;;  %v1569_v29 = vld [vmem:[%s6828_s3 + $0x3c0] sm:$0xff]  ;;  %v1575_v38 = vld [vmem:[%s6828_s3 + $0x3f0] sm:$0xff]  ;;  %v592_v50 = vrot.slane %v548_v46, %v5646_v34 }
 0x147   :  { %3524 = vmatprep.subr.bf16.mxu1 %v3523_v27  ;;  %v3371_v51 = vpack.c.bf16 %v1558_v49, %v1554_v48  ;;  %v588_v49 = vrot.slane %v548_v46, %v5634_v30  ;;  %v616_v3 = vrot.slane %v548_v46, %v583_v14  ;;  %v549_v17 = vld [vmem:[%s6827_s2 + $0x10] sm:$0xf]  ;;  %v612_v14 = vrot.slane %v548_v46, %v579_v35  ;;  %v1581_v6 = vld [vmem:[%s6828_s3 + $0x420] sm:$0xff] }
 0x148   :  { %v624_v26 = vrot.slane %v549_v17, %v5646_v34  ;;  %v1579_v13 = vld [vmem:[%s6828_s3 + $0x410] sm:$0xff] }
 0x149   :  { %3358 = vmatpush1.bf16.msra.mxu0 %v3357_v62  ;;  %v3533_v62 = vpack.c.bf16 %v1559_v61, %v1555_v60  ;;  %v1583_v23 = vld [vmem:[%s6828_s3 + $0x430] sm:$0xff] }
 0x14a   :  { %3360 = vmatprep.subr.bf16.mxu0 %v3359_v1  ;;  %3526 = vmatpush1.bf16.msra.mxu1 %v3525_v33  ;;  %v1566_v1 = vld [vmem:[%s6828_s3 + $0x3a8] sm:$0xff]  ;;  %v1571_v33 = vld [vmem:[%s6828_s3 + $0x3d0] sm:$0xff] }
 0x14b   :  { %3528 = vmatprep.subr.bf16.mxu1 %v3527_v43  ;;  %v3375_v4 = vpack.c.bf16 %v1566_v1, %v1562_v10  ;;  %v3541_v39 = vpack.c.bf16 %v1575_v38, %v1571_v33  ;;  %v1584_v43 = vld [vmem:[%s6828_s3 + $0x438] sm:$0xff]  ;;  %v596_v10 = vrot.slane %v548_v46, %v5498_v18  ;;  %v604_v1 = vrot.slane %v548_v46, %v571_v63 }
 0x14c   :  { %v3543_v45 = vpack.c.bf16 %v1584_v43, %v1580_v41 }
 0x14d   :  { %3362 = vmatpush1.bf16.msra.mxu0 %v3361_v21  ;;  %v1570_v21 = vld [vmem:[%s6828_s3 + $0x3c8] sm:$0xff] }
 0x14e   :  { %3364 = vmatprep.subr.bf16.mxu0 %v3363_v19  ;;  %3530 = vmatpush1.bf16.msra.mxu1 %v3529_v47  ;;  %v1574_v19 = vld [vmem:[%s6828_s3 + $0x3e8] sm:$0xff]  ;;  %v3761_v47 = vld [vmem:[%s6827_s2] sm:$0xff] }
 0x14f   :  { %3532 = vmatprep.subr.bf16.mxu1 %v3531_v56  ;;  %v3379_v27 = vpack.c.bf16 %v1574_v19, %v1570_v21  ;;  %v620_v21 = vrot.slane %v549_v17, %v5634_v30  ;;  %v628_v19 = vrot.slane %v549_v17, %v5498_v18 }
 0x151   :  { %3366 = vmatpush1.bf16.msra.mxu0 %v3365_v31  ;;  %v1573_v31 = vld [vmem:[%s6828_s3 + $0x3e0] sm:$0xff] }
 0x152   :  { %3368 = vmatprep.subr.bf16.mxu0 %v3367_v52  ;;  %3534 = vmatpush1.bf16.msra.mxu1 %v3533_v62  ;;  %v3381_v36 = vpack.c.bf16 %v1573_v31, %v1569_v29  ;;  %v1578_v52 = vld [vmem:[%s6828_s3 + $0x408] sm:$0xff] }
 0x153   :  { %3536 = vmatprep.subr.bf16.mxu1 %v3535_v20  ;;  %v3383_v42 = vpack.c.bf16 %v1582_v40, %v1578_v52 }
 0x155   :  { %3370 = vmatpush1.bf16.msra.mxu0 %v3369_v44  ;;  %v5947_v44 = vsub.s32 3, %v4959_v58 }
 0x156   :  { %3372 = vmatprep.subr.bf16.mxu0 %v3371_v51  ;;  %3538 = vmatpush1.bf16.msra.mxu1 %v3537_v12  ;;  %v608_v12 = vrot.slane %v548_v46, %v575_v37 }
 0x157   :  { %3540 = vmatprep.subr.bf16.mxu1 %v3539_v28  ;;  %v568_v48 = vrot.slane %v3761_v47, %v5947_v44  ;;  %v600_v63 = vrot.slane %v548_v46, %v5947_v44  ;;  %v632_v2 = vrot.slane %v549_v17, %v5947_v44  ;;  %v1592_v46 = vld [vmem:[%s6828_s3 + $0x478] sm:$0xff] }
 0x158   :  { %v1604_v17 = vld [vmem:[%s6828_s3 + $0x4d8] sm:$0xff] }
 0x159   :  { %3374 = vmatpush1.bf16.msra.mxu0 %v3373_v59  ;;  %v859_v53 = vadd.f32 %v5508_v25, %v568_v48  ;;  %v3545_v48 = vpack.c.bf16 %v1583_v23, %v1579_v13  ;;  %v1617_v23 = vld [vmem:[%s6828_s3 + $0x540] sm:$0xff] }
 0x15a   :  { %3376 = vmatprep.subr.bf16.mxu0 %v3375_v4  ;;  %3542 = vmatpush1.bf16.msra.mxu1 %v3541_v39 }
 0x15b   :  { %3544 = vmatprep.subr.bf16.mxu1 %v3543_v45  ;;  %v1577_v45 = vld [vmem:[%s6828_s3 + $0x400] sm:$0xff] }
 0x15c   :  { %v3385_v47 = vpack.c.bf16 %v1581_v6, %v1577_v45  ;;  %v1624_v45 = vld [vmem:[%s6828_s3 + $0x578] sm:$0xff] }
 0x15d   :  { %3378 = vmatpush1.bf16.msra.mxu0 %v3377_v11 }
 0x15e   :  { %3380 = vmatprep.subr.bf16.mxu0 %v3379_v27 }
 0x161   :  { %3382 = vmatpush1.bf16.msra.mxu0 %v3381_v36 }
 0x162   :  { %3384 = vmatprep.subr.bf16.mxu0 %v3383_v42 }
 0x170   :  { %v1069_v51 = vpop.f32.mrb[4].mxu0 }
 0x171   :  { %v1070_v54 = vadd.f32 %v1069_v51, %v588_v49  ;;  %v1071_v55 = vpop.f32.mrb[5].mxu0  ;;  %v1585_v49 = vld [vmem:[%s6828_s3 + $0x440] sm:$0xff] }
 0x172   :  { %v1072_v56 = vadd.f32 %v1071_v55, %v592_v50  ;;  %v1140_v59 = vpop.f32.mrb[4].mxu1  ;;  %v1589_v50 = vld [vmem:[%s6828_s3 + $0x460] sm:$0xff]  ;;  %v1594_v55 = vld [vmem:[%s6828_s3 + $0x488] sm:$0xff] }
 0x173   :  { %v1432_v60 = vmax.f32 %v859_v53, %v1070_v54  ;;  %v1142_v61 = vpop.f32.mrb[5].mxu1  ;;  %v1141_v5 = vadd.f32 %v1140_v59, %v596_v10  ;;  %v1587_v53 = vld [vmem:[%s6828_s3 + $0x450] sm:$0xff]  ;;  %v1600_v10 = vld [vmem:[%s6828_s3 + $0x4b8] sm:$0xff] }
 0x174   :  { %v1433_v62 = vmax.f32 %v5715_v7, %v1072_v56  ;;  %v1591_v54 = vld [vmem:[%s6828_s3 + $0x470] sm:$0xff] }
 0x1a3   :  { %v1211_v4 = vpop.f32.mrb[6].mxu0 }
 0x1a4   :  { %v1212_v8 = vadd.f32 %v1211_v4, %v604_v1  ;;  %v1282_v25 = vpop.f32.mrb[6].mxu1  ;;  %v1213_v9 = vpop.f32.mrb[7].mxu0  ;;  %v3549_v4 = vpack.c.bf16 %v1591_v54, %v1587_v53 }
 0x1a5   :  { %v1284_v20 = vpop.f32.mrb[7].mxu1  ;;  %v1283_v0 = vadd.f32 %v1282_v25, %v612_v14  ;;  %v1214_v31 = vadd.f32 %v1213_v9, %v608_v12  ;;  %v1601_v12 = vld [vmem:[%s6828_s3 + $0x4c0] sm:$0xff] }
 0x1a6   :  { %v1285_v11 = vadd.f32 %v1284_v20, %v616_v3  ;;  %v3389_v3 = vpack.c.bf16 %v1589_v50, %v1585_v49  ;;  %v1595_v20 = vld [vmem:[%s6828_s3 + $0x490] sm:$0xff]  ;;  %v1630_v49 = vld [vmem:[%s6828_s3 + $0x5a8] sm:$0xff]  ;;  %v1628_v50 = vld [vmem:[%s6828_s3 + $0x598] sm:$0xff] }
 0x1a8   :  { %v1434_v16 = vmax.f32 %v1141_v5, %v1285_v11  ;;  %v1593_v5 = vld [vmem:[%s6828_s3 + $0x480] sm:$0xff]  ;;  %v1599_v11 = vld [vmem:[%s6828_s3 + $0x4b0] sm:$0xff] }
 0x1aa   :  { %v1439_v7 = vmax.f32 %v1429_v24, %v1434_v16  ;;  %v1143_v24 = vadd.f32 %v1142_v61, %v600_v63  ;;  %v1598_v61 = vld [vmem:[%s6828_s3 + $0x4a8] sm:$0xff]  ;;  %v1608_v63 = vld [vmem:[%s6828_s3 + $0x4f8] sm:$0xff] }
 0x1ab   :  { %v3391_v25 = vpack.c.bf16 %v1598_v61, %v1594_v55  ;;  %v1602_v16 = vld [vmem:[%s6828_s3 + $0x4c8] sm:$0xff]  ;;  %v1625_v55 = vld [vmem:[%s6828_s3 + $0x580] sm:$0xff]  ;;  %v1627_v61 = vld [vmem:[%s6828_s3 + $0x590] sm:$0xff] }
 0x1d6   :  { %v1353_v15 = vpop.f32.mrb[8].mxu0 }
 0x1d7   :  { %v1354_v27 = vadd.f32 %v1353_v15, %v620_v21  ;;  %v1424_v28 = vpop.f32.mrb[8].mxu1  ;;  %v1355_v29 = vpop.f32.mrb[9].mxu0  ;;  %v3553_v21 = vpack.c.bf16 %v1599_v11, %v1595_v20  ;;  %v1603_v15 = vld [vmem:[%s6828_s3 + $0x4d0] sm:$0xff] }
 0x1d8   :  { %v1425_v33 = vadd.f32 %v1424_v28, %v628_v19  ;;  %v1356_v35 = vadd.f32 %v1355_v29, %v624_v26  ;;  %v1426_v36 = vpop.f32.mrb[9].mxu1  ;;  %v1605_v19 = vld [vmem:[%s6828_s3 + $0x4e0] sm:$0xff]  ;;  %v1612_v28 = vld [vmem:[%s6828_s3 + $0x518] sm:$0xff] }
 0x1d9   :  { %v1435_v38 = vmax.f32 %v1143_v24, %v1354_v27  ;;  %v1427_v39 = vadd.f32 %v1426_v36, %v632_v2  ;;  %v3555_v2 = vpack.c.bf16 %v1608_v63, %v1604_v17  ;;  %v1607_v24 = vld [vmem:[%s6828_s3 + $0x4f0] sm:$0xff]  ;;  %v1614_v27 = vld [vmem:[%s6828_s3 + $0x528] sm:$0xff]  ;;  %v1616_v29 = vld [vmem:[%s6828_s3 + $0x538] sm:$0xff] }
 0x1da   :  { %v1437_v58 = vmax.f32 %v1214_v31, %v1425_v33  ;;  %v1436_v37 = vmax.f32 %v1212_v8, %v1356_v35  ;;  %v1597_v8 = vld [vmem:[%s6828_s3 + $0x4a0] sm:$0xff]  ;;  %v3397_v31 = vpack.c.bf16 %v1605_v19, %v1601_v12  ;;  %v3557_v33 = vpack.c.bf16 %v1607_v24, %v1603_v15  ;;  %v1642_v17 = vld [vmem:[%s6828_s3 + $0x608] sm:$0xff] }
 0x1db   :  { %v1440_v52 = vmax.f32 %v1430_v57, %v1435_v38  ;;  %v1438_v40 = vmax.f32 %v1283_v0, %v1427_v39  ;;  %v1590_v57 = vld [vmem:[%s6828_s3 + $0x468] sm:$0xff]  ;;  %v3393_v14 = vpack.c.bf16 %v1597_v8, %v1593_v5  ;;  %v1609_v35 = vld [vmem:[%s6828_s3 + $0x500] sm:$0xff]  ;;  %v3559_v39 = vpack.c.bf16 %v1616_v29, %v1612_v28 }
 0x1dc   :  { %v1442_v41 = vmax.f32 %v1432_v60, %v1437_v58  ;;  %v5986_v42 = vmax.f32 %v1431_v32, %v1436_v37  ;;  %v1588_v32 = vld [vmem:[%s6828_s3 + $0x458] sm:$0xff]  ;;  %v3387_v59 = vpack.c.bf16 %v1590_v57, %v1586_v22  ;;  %v1610_v0 = vld [vmem:[%s6828_s3 + $0x508] sm:$0xff]  ;;  %v1613_v36 = vld [vmem:[%s6828_s3 + $0x520] sm:$0xff] }
 0x1dd   :  { %3738 = vtanh.f32 %v1440_v52  ;;  %v5988_v43 = vmax.f32 %v1433_v62, %v1438_v40  ;;  %v3547_v60 = vpack.c.bf16 %v1592_v46, %v1588_v32  ;;  %v1596_v62 = vld [vmem:[%s6828_s3 + $0x498] sm:$0xff]  ;;  %v3399_v38 = vpack.c.bf16 %v1614_v27, %v1610_v0  ;;  %v1611_v58 = vld [vmem:[%s6828_s3 + $0x510] sm:$0xff]  ;;  %v1618_v52 = vld [vmem:[%s6828_s3 + $0x548] sm:$0xff] }
 0x1de   :  { %3740 = vtanh.f32 %v1439_v7  ;;  %v3551_v9 = vpack.c.bf16 %v1600_v10, %v1596_v62  ;;  %v1606_v7 = vld [vmem:[%s6828_s3 + $0x4e8] sm:$0xff]  ;;  %v1615_v37 = vld [vmem:[%s6828_s3 + $0x530] sm:$0xff]  ;;  %v3401_v6 = vpack.c.bf16 %v1613_v36, %v1609_v35  ;;  %v1621_v22 = vld [vmem:[%s6828_s3 + $0x560] sm:$0xff] }
 0x1df   :  { %3742 = vtanh.f32 %v1442_v41  ;;  %v3395_v26 = vpack.c.bf16 %v1606_v7, %v1602_v16  ;;  %v1622_v40 = vld [vmem:[%s6828_s3 + $0x568] sm:$0xff]  ;;  %v1620_v41 = vld [vmem:[%s6828_s3 + $0x558] sm:$0xff]  ;;  %v3561_v13 = vpack.c.bf16 %v1615_v37, %v1611_v58  ;;  %v1619_v46 = vld [vmem:[%s6828_s3 + $0x550] sm:$0xff]  ;;  %v3405_v53 = vpack.c.bf16 %v1621_v22, %v1617_v23 }
 0x1e0   :  { %v3403_v57 = vpack.c.bf16 %v1622_v40, %v1618_v52  ;;  %v3563_v32 = vpack.c.bf16 %v1624_v45, %v1620_v41  ;;  %v1631_v62 = vld [vmem:[%s6828_s3 + $0x5b0] sm:$0xff]  ;;  %v1634_v10 = vld [vmem:[%s6828_s3 + $0x5c8] sm:$0xff]  ;;  %3744 = vtanh.f32 %v5986_v42 }
 0x1e1   :  { %v3569_v8 = vpack.c.bf16 %v1631_v62, %v1627_v61  ;;  %v1635_v16 = vld [vmem:[%s6828_s3 + $0x5d0] sm:$0xff]  ;;  %v1646_v63 = vld [vmem:[%s6828_s3 + $0x628] sm:$0xff]  ;;  %3746 = vtanh.f32 %v5988_v43 }
 0x1e2   :  { %v1639_v7 = vld [vmem:[%s6828_s3 + $0x5f0] sm:$0xff]  ;;  %v3415_v15 = vpack.c.bf16 %v1646_v63, %v1642_v17  ;;  %v1650_v28 = vld [vmem:[%s6828_s3 + $0x648] sm:$0xff] }
 0x1e3   :  { %v3573_v19 = vpack.c.bf16 %v1639_v7, %v1635_v16  ;;  %v1643_v0 = vld [vmem:[%s6828_s3 + $0x610] sm:$0xff]  ;;  %v1654_v29 = vld [vmem:[%s6828_s3 + $0x668] sm:$0xff] }
 0x1e4   :  { %v1647_v27 = vld [vmem:[%s6828_s3 + $0x630] sm:$0xff]  ;;  %v3419_v58 = vpack.c.bf16 %v1654_v29, %v1650_v28  ;;  %v1658_v41 = vld [vmem:[%s6828_s3 + $0x688] sm:$0xff] }
 0x1e5   :  { %v3577_v36 = vpack.c.bf16 %v1647_v27, %v1643_v0  ;;  %v1651_v52 = vld [vmem:[%s6828_s3 + $0x650] sm:$0xff]  ;;  %v1662_v45 = vld [vmem:[%s6828_s3 + $0x6a8] sm:$0xff] }
 0x1e6   :  { %v1655_v40 = vld [vmem:[%s6828_s3 + $0x670] sm:$0xff] }
 0x1e7   :  { %v3739_v51 = vpop.eup %3738  ;;  %v3581_v22 = vpack.c.bf16 %v1655_v40, %v1651_v52  ;;  %v1675_v17 = vld [vmem:[%s6828_s3 + $0x710] sm:$0xff] }
 0x1e8   :  { %v3741_v56 = vpop.eup %3740  ;;  %1855 = vmatprep.mubr.f32.mxu0 %v3739_v51  ;;  %2068 = vmatprep.mubr.f32.mxu1 %v3739_v51  ;;  %v1632_v51 = vld [vmem:[%s6828_s3 + $0x5b8] sm:$0xff]  ;;  %v1679_v63 = vld [vmem:[%s6828_s3 + $0x730] sm:$0xff] }
 0x1e9   :  { %1856 = vmatmul.mubr.f32.vlgmr.msra.gmra.mrb[10].mxu0 %v3741_v56  ;;  %2069 = vmatmul.mubr.f32.vlgmr.msra.gmra.mrb[10].mxu1 %v3741_v56  ;;  %v3743_v1 = vpop.eup %3742  ;;  %v1629_v56 = vld [vmem:[%s6828_s3 + $0x5a0] sm:$0xff]  ;;  %v1683_v28 = vld [vmem:[%s6828_s3 + $0x750] sm:$0xff] }
 0x1ea   :  { %3386 = vmatpush1.bf16.msra.mxu0 %v3385_v47  ;;  %3546 = vmatpush1.bf16.msra.mxu1 %v3545_v48  ;;  %v1623_v47 = vld [vmem:[%s6828_s3 + $0x570] sm:$0xff]  ;;  %v1626_v48 = vld [vmem:[%s6828_s3 + $0x588] sm:$0xff]  ;;  %v3409_v5 = vpack.c.bf16 %v1629_v56, %v1625_v55 }
 0x1eb   :  { %1926 = vmatprep.mubr.f32.mxu0 %v3743_v1  ;;  %2139 = vmatprep.mubr.f32.mxu1 %v3743_v1  ;;  %v3565_v54 = vpack.c.bf16 %v1623_v47, %v1619_v46  ;;  %v1638_v1 = vld [vmem:[%s6828_s3 + $0x5e8] sm:$0xff]  ;;  %v3423_v46 = vpack.c.bf16 %v1662_v45, %v1658_v41  ;;  %v1687_v29 = vld [vmem:[%s6828_s3 + $0x770] sm:$0xff] }
 0x1ec   :  { %3388 = vmatprep.subr.bf16.mxu0 %v3387_v59  ;;  %3548 = vmatprep.subr.bf16.mxu1 %v3547_v60  ;;  %v3407_v59 = vpack.c.bf16 %v1630_v49, %v1626_v48  ;;  %v3567_v60 = vpack.c.bf16 %v1632_v51, %v1628_v50  ;;  %v3411_v20 = vpack.c.bf16 %v1638_v1, %v1634_v10  ;;  %v1659_v48 = vld [vmem:[%s6828_s3 + $0x690] sm:$0xff]  ;;  %v1666_v50 = vld [vmem:[%s6828_s3 + $0x6c8] sm:$0xff] }
 0x1ed   :  { %v1663_v49 = vld [vmem:[%s6828_s3 + $0x6b0] sm:$0xff]  ;;  %v1670_v51 = vld [vmem:[%s6828_s3 + $0x6e8] sm:$0xff] }
 0x1ee   :  { %3390 = vmatpush1.bf16.msra.mxu0 %v3389_v3  ;;  %3550 = vmatpush1.bf16.msra.mxu1 %v3549_v4  ;;  %v1636_v3 = vld [vmem:[%s6828_s3 + $0x5d8] sm:$0xff]  ;;  %v3585_v56 = vpack.c.bf16 %v1663_v49, %v1659_v48  ;;  %v3427_v61 = vpack.c.bf16 %v1670_v51, %v1666_v50  ;;  %v1667_v10 = vld [vmem:[%s6828_s3 + $0x6d0] sm:$0xff]  ;;  %v1706_v51 = vld [vmem:[%s6828_s3 + $0x808] sm:$0xff] }
 0x1ef   :  { %3392 = vmatprep.subr.bf16.mxu0 %v3391_v25  ;;  %3552 = vmatprep.subr.bf16.mxu1 %v3551_v9  ;;  %v1640_v4 = vld [vmem:[%s6828_s3 + $0x5f8] sm:$0xff]  ;;  %v1633_v25 = vld [vmem:[%s6828_s3 + $0x5c0] sm:$0xff]  ;;  %v1671_v1 = vld [vmem:[%s6828_s3 + $0x6f0] sm:$0xff] }
 0x1f0   :  { %v1637_v9 = vld [vmem:[%s6828_s3 + $0x5e0] sm:$0xff]  ;;  %v3571_v11 = vpack.c.bf16 %v1640_v4, %v1636_v3  ;;  %v1674_v3 = vld [vmem:[%s6828_s3 + $0x708] sm:$0xff]  ;;  %v1691_v41 = vld [vmem:[%s6828_s3 + $0x790] sm:$0xff] }
 0x1f1   :  { %v3413_v12 = vpack.c.bf16 %v1637_v9, %v1633_v25  ;;  %v1678_v4 = vld [vmem:[%s6828_s3 + $0x728] sm:$0xff]  ;;  %v3589_v9 = vpack.c.bf16 %v1671_v1, %v1667_v10  ;;  %v1695_v45 = vld [vmem:[%s6828_s3 + $0x7b0] sm:$0xff] }
 0x1f2   :  { %3394 = vmatpush1.bf16.msra.mxu0 %v3393_v14  ;;  %3554 = vmatpush1.bf16.msra.mxu1 %v3553_v21  ;;  %v1644_v14 = vld [vmem:[%s6828_s3 + $0x618] sm:$0xff]  ;;  %v3431_v16 = vpack.c.bf16 %v1678_v4, %v1674_v3  ;;  %v1699_v42 = vld [vmem:[%s6828_s3 + $0x7d0] sm:$0xff]  ;;  %v1714_v4 = vld [vmem:[%s6828_s3 + $0x848] sm:$0xff] }
 0x1f3   :  { %3396 = vmatprep.subr.bf16.mxu0 %v3395_v26  ;;  %3556 = vmatprep.subr.bf16.mxu1 %v3555_v2  ;;  %v1648_v21 = vld [vmem:[%s6828_s3 + $0x638] sm:$0xff]  ;;  %v1641_v26 = vld [vmem:[%s6828_s3 + $0x600] sm:$0xff]  ;;  %v1703_v50 = vld [vmem:[%s6828_s3 + $0x7f0] sm:$0xff] }
 0x1f4   :  { %v1645_v2 = vld [vmem:[%s6828_s3 + $0x620] sm:$0xff]  ;;  %v3575_v24 = vpack.c.bf16 %v1648_v21, %v1644_v14  ;;  %v1682_v14 = vld [vmem:[%s6828_s3 + $0x748] sm:$0xff]  ;;  %v1707_v1 = vld [vmem:[%s6828_s3 + $0x810] sm:$0xff] }
 0x1f5   :  { %v3417_v35 = vpack.c.bf16 %v1645_v2, %v1641_v26  ;;  %v1686_v21 = vld [vmem:[%s6828_s3 + $0x768] sm:$0xff]  ;;  %v3593_v2 = vpack.c.bf16 %v1679_v63, %v1675_v17  ;;  %v1711_v3 = vld [vmem:[%s6828_s3 + $0x830] sm:$0xff] }
 0x1f6   :  { %3398 = vmatpush1.bf16.msra.mxu0 %v3397_v31  ;;  %3558 = vmatpush1.bf16.msra.mxu1 %v3557_v33  ;;  %v1652_v31 = vld [vmem:[%s6828_s3 + $0x658] sm:$0xff]  ;;  %v3435_v0 = vpack.c.bf16 %v1686_v21, %v1682_v14  ;;  %v1715_v63 = vld [vmem:[%s6828_s3 + $0x850] sm:$0xff]  ;;  %v1722_v21 = vld [vmem:[%s6828_s3 + $0x888] sm:$0xff] }
 0x1f7   :  { %3400 = vmatprep.subr.bf16.mxu0 %v3399_v38  ;;  %3560 = vmatprep.subr.bf16.mxu1 %v3559_v39  ;;  %v1656_v33 = vld [vmem:[%s6828_s3 + $0x678] sm:$0xff]  ;;  %v1649_v38 = vld [vmem:[%s6828_s3 + $0x640] sm:$0xff]  ;;  %v1719_v14 = vld [vmem:[%s6828_s3 + $0x870] sm:$0xff] }
 0x1f8   :  { %v1653_v39 = vld [vmem:[%s6828_s3 + $0x660] sm:$0xff]  ;;  %v3579_v37 = vpack.c.bf16 %v1656_v33, %v1652_v31  ;;  %v1690_v31 = vld [vmem:[%s6828_s3 + $0x788] sm:$0xff]  ;;  %v1763_v43 = vld [vmem:[%s6828_s3 + $0x9d0] sm:$0xff] }
 0x1f9   :  { %v3421_v23 = vpack.c.bf16 %v1653_v39, %v1649_v38  ;;  %v1694_v33 = vld [vmem:[%s6828_s3 + $0x7a8] sm:$0xff]  ;;  %v3597_v39 = vpack.c.bf16 %v1687_v29, %v1683_v28 }
 0x1fa   :  { %3402 = vmatpush1.bf16.msra.mxu0 %v3401_v6  ;;  %3562 = vmatpush1.bf16.msra.mxu1 %v3561_v13  ;;  %v1660_v6 = vld [vmem:[%s6828_s3 + $0x698] sm:$0xff]  ;;  %v3439_v52 = vpack.c.bf16 %v1694_v33, %v1690_v31  ;;  %v1723_v31 = vld [vmem:[%s6828_s3 + $0x890] sm:$0xff] }
 0x1fb   :  { %3404 = vmatprep.subr.bf16.mxu0 %v3403_v57  ;;  %3564 = vmatprep.subr.bf16.mxu1 %v3563_v32  ;;  %v1664_v13 = vld [vmem:[%s6828_s3 + $0x6b8] sm:$0xff]  ;;  %v1657_v57 = vld [vmem:[%s6828_s3 + $0x680] sm:$0xff]  ;;  %v1727_v33 = vld [vmem:[%s6828_s3 + $0x8b0] sm:$0xff] }
 0x1fc   :  { %v1661_v32 = vld [vmem:[%s6828_s3 + $0x6a0] sm:$0xff]  ;;  %v3583_v47 = vpack.c.bf16 %v1664_v13, %v1660_v6  ;;  %v1698_v6 = vld [vmem:[%s6828_s3 + $0x7c8] sm:$0xff] }
 0x1fd   :  { %v3425_v55 = vpack.c.bf16 %v1661_v32, %v1657_v57  ;;  %v1702_v13 = vld [vmem:[%s6828_s3 + $0x7e8] sm:$0xff]  ;;  %v3601_v32 = vpack.c.bf16 %v1695_v45, %v1691_v41  ;;  %v1733_v41 = vld [vmem:[%s6828_s3 + $0x8e0] sm:$0xff] }
 0x1fe   :  { %3406 = vmatpush1.bf16.msra.mxu0 %v3405_v53  ;;  %3566 = vmatpush1.bf16.msra.mxu1 %v3565_v54  ;;  %v1668_v53 = vld [vmem:[%s6828_s3 + $0x6d8] sm:$0xff]  ;;  %v3443_v48 = vpack.c.bf16 %v1702_v13, %v1698_v6  ;;  %v1731_v13 = vld [vmem:[%s6828_s3 + $0x8d0] sm:$0xff] }
 0x1ff   :  { %3408 = vmatprep.subr.bf16.mxu0 %v3407_v59  ;;  %3568 = vmatprep.subr.bf16.mxu1 %v3567_v60  ;;  %v1672_v54 = vld [vmem:[%s6828_s3 + $0x6f8] sm:$0xff]  ;;  %v1665_v59 = vld [vmem:[%s6828_s3 + $0x6c0] sm:$0xff] }
 0x200   :  { %v1669_v60 = vld [vmem:[%s6828_s3 + $0x6e0] sm:$0xff]  ;;  %v3587_v62 = vpack.c.bf16 %v1672_v54, %v1668_v53  ;;  %v1710_v53 = vld [vmem:[%s6828_s3 + $0x828] sm:$0xff]  ;;  %v1708_v54 = vld [vmem:[%s6828_s3 + $0x818] sm:$0xff] }
 0x201   :  { %v3429_v25 = vpack.c.bf16 %v1669_v60, %v1665_v59  ;;  %v3605_v59 = vpack.c.bf16 %v1703_v50, %v1699_v42  ;;  %v1705_v60 = vld [vmem:[%s6828_s3 + $0x800] sm:$0xff] }
 0x202   :  { %3410 = vmatpush1.bf16.msra.mxu0 %v3409_v5  ;;  %3570 = vmatpush1.bf16.msra.mxu1 %v3569_v8  ;;  %v1676_v5 = vld [vmem:[%s6828_s3 + $0x718] sm:$0xff]  ;;  %v1741_v42 = vld [vmem:[%s6828_s3 + $0x920] sm:$0xff] }
 0x203   :  { %3412 = vmatprep.subr.bf16.mxu0 %v3411_v20  ;;  %3572 = vmatprep.subr.bf16.mxu1 %v3571_v11  ;;  %v1680_v8 = vld [vmem:[%s6828_s3 + $0x738] sm:$0xff]  ;;  %v1673_v20 = vld [vmem:[%s6828_s3 + $0x700] sm:$0xff] }
 0x204   :  { %v1677_v11 = vld [vmem:[%s6828_s3 + $0x720] sm:$0xff]  ;;  %v3591_v7 = vpack.c.bf16 %v1680_v8, %v1676_v5  ;;  %v1718_v5 = vld [vmem:[%s6828_s3 + $0x868] sm:$0xff]  ;;  %v1716_v8 = vld [vmem:[%s6828_s3 + $0x858] sm:$0xff] }
 0x205   :  { %v3433_v26 = vpack.c.bf16 %v1677_v11, %v1673_v20  ;;  %v3609_v20 = vpack.c.bf16 %v1711_v3, %v1707_v1  ;;  %v1713_v11 = vld [vmem:[%s6828_s3 + $0x840] sm:$0xff] }
 0x206   :  { %3414 = vmatpush1.bf16.msra.mxu0 %v3413_v12  ;;  %3574 = vmatpush1.bf16.msra.mxu1 %v3573_v19  ;;  %v1684_v12 = vld [vmem:[%s6828_s3 + $0x758] sm:$0xff]  ;;  %v1749_v1 = vld [vmem:[%s6828_s3 + $0x960] sm:$0xff] }
 0x207   :  { %3416 = vmatprep.subr.bf16.mxu0 %v3415_v15  ;;  %3576 = vmatprep.subr.bf16.mxu1 %v3575_v24  ;;  %v1688_v19 = vld [vmem:[%s6828_s3 + $0x778] sm:$0xff]  ;;  %v1681_v15 = vld [vmem:[%s6828_s3 + $0x740] sm:$0xff] }
 0x208   :  { %v1685_v24 = vld [vmem:[%s6828_s3 + $0x760] sm:$0xff]  ;;  %v3595_v27 = vpack.c.bf16 %v1688_v19, %v1684_v12  ;;  %v3745_v12 = vpop.eup %3744  ;;  %v1726_v19 = vld [vmem:[%s6828_s3 + $0x8a8] sm:$0xff] }
 0x209   :  { %v3437_v38 = vpack.c.bf16 %v1685_v24, %v1681_v15  ;;  %v3613_v24 = vpack.c.bf16 %v1719_v14, %v1715_v63  ;;  %v3455_v28 = vpack.c.bf16 %v1726_v19, %v1722_v21  ;;  %v1757_v63 = vld [vmem:[%s6828_s3 + $0x9a0] sm:$0xff]  ;;  %v1759_v19 = vld [vmem:[%s6828_s3 + $0x9b0] sm:$0xff] }
 0x20a   :  { %3418 = vmatpush1.bf16.msra.mxu0 %v3417_v35  ;;  %3578 = vmatpush1.bf16.msra.mxu1 %v3577_v36  ;;  %v1692_v35 = vld [vmem:[%s6828_s3 + $0x798] sm:$0xff] }
 0x20b   :  { %3420 = vmatprep.subr.bf16.mxu0 %v3419_v58  ;;  %3580 = vmatprep.subr.bf16.mxu1 %v3579_v37  ;;  %v1696_v36 = vld [vmem:[%s6828_s3 + $0x7b8] sm:$0xff]  ;;  %v1689_v58 = vld [vmem:[%s6828_s3 + $0x780] sm:$0xff] }
 0x20c   :  { %v1693_v37 = vld [vmem:[%s6828_s3 + $0x7a0] sm:$0xff]  ;;  %v3599_v40 = vpack.c.bf16 %v1696_v36, %v1692_v35  ;;  %v1730_v35 = vld [vmem:[%s6828_s3 + $0x8c8] sm:$0xff] }
 0x20d   :  { %v3441_v57 = vpack.c.bf16 %v1693_v37, %v1689_v58  ;;  %v1734_v36 = vld [vmem:[%s6828_s3 + $0x8e8] sm:$0xff]  ;;  %v3832_v58 = vmov 0.0  }
 0x20e   :  { %3422 = vmatpush1.bf16.msra.mxu0 %v3421_v23  ;;  %3582 = vmatpush1.bf16.msra.mxu1 %v3581_v22  ;;  %v1700_v23 = vld [vmem:[%s6828_s3 + $0x7d8] sm:$0xff]  ;;  %v3459_v45 = vpack.c.bf16 %v1734_v36, %v1730_v35  ;;  %v1767_v35 = vld [vmem:[%s6828_s3 + $0x9f0] sm:$0xff]  ;;  %v2237_v36 = vld [vmem:[%s6830_s5 + $0x80] sm:$0xff] }
 0x20f   :  { %3424 = vmatprep.subr.bf16.mxu0 %v3423_v46  ;;  %3584 = vmatprep.subr.bf16.mxu1 %v3583_v47  ;;  %v1704_v22 = vld [vmem:[%s6828_s3 + $0x7f8] sm:$0xff]  ;;  %v1697_v46 = vld [vmem:[%s6828_s3 + $0x7c0] sm:$0xff] }
 0x210   :  { %v1701_v47 = vld [vmem:[%s6828_s3 + $0x7e0] sm:$0xff]  ;;  %v3603_v49 = vpack.c.bf16 %v1704_v22, %v1700_v23  ;;  %v1735_v23 = vld [vmem:[%s6828_s3 + $0x8f0] sm:$0xff]  ;;  %v1738_v22 = vld [vmem:[%s6828_s3 + $0x908] sm:$0xff] }
 0x212   :  { %3426 = vmatpush1.bf16.msra.mxu0 %v3425_v55  ;;  %3586 = vmatpush1.bf16.msra.mxu1 %v3585_v56  ;;  %v1712_v55 = vld [vmem:[%s6828_s3 + $0x838] sm:$0xff]  ;;  %v3445_v56 = vpack.c.bf16 %v1701_v47, %v1697_v46 }
 0x213   :  { %3428 = vmatprep.subr.bf16.mxu0 %v3427_v61  ;;  %3588 = vmatprep.subr.bf16.mxu1 %v3587_v62  ;;  %v1709_v61 = vld [vmem:[%s6828_s3 + $0x820] sm:$0xff]  ;;  %v3447_v62 = vpack.c.bf16 %v1710_v53, %v1706_v51  ;;  %v3607_v10 = vpack.c.bf16 %v1712_v55, %v1708_v54  ;;  %v1744_v46 = vld [vmem:[%s6828_s3 + $0x938] sm:$0xff]  ;;  %v1739_v53 = vld [vmem:[%s6828_s3 + $0x910] sm:$0xff] }
 0x214   :  { %v1743_v54 = vld [vmem:[%s6828_s3 + $0x930] sm:$0xff]  ;;  %v1746_v55 = vld [vmem:[%s6828_s3 + $0x948] sm:$0xff] }
 0x216   :  { %3430 = vmatpush1.bf16.msra.mxu0 %v3429_v25  ;;  %3590 = vmatpush1.bf16.msra.mxu1 %v3589_v9  ;;  %v1720_v25 = vld [vmem:[%s6828_s3 + $0x878] sm:$0xff]  ;;  %v3449_v9 = vpack.c.bf16 %v1709_v61, %v1705_v60 }
 0x217   :  { %3432 = vmatprep.subr.bf16.mxu0 %v3431_v16  ;;  %3592 = vmatprep.subr.bf16.mxu1 %v3591_v7  ;;  %v1717_v16 = vld [vmem:[%s6828_s3 + $0x860] sm:$0xff]  ;;  %v3451_v7 = vpack.c.bf16 %v1718_v5, %v1714_v4  ;;  %v3611_v17 = vpack.c.bf16 %v1720_v25, %v1716_v8  ;;  %v1752_v60 = vld [vmem:[%s6828_s3 + $0x978] sm:$0xff]  ;;  %v1747_v5 = vld [vmem:[%s6828_s3 + $0x950] sm:$0xff] }
 0x218   :  { %v3453_v15 = vpack.c.bf16 %v1717_v16, %v1713_v11  ;;  %v1751_v8 = vld [vmem:[%s6828_s3 + $0x970] sm:$0xff]  ;;  %v1754_v25 = vld [vmem:[%s6828_s3 + $0x988] sm:$0xff]  ;;  %v1760_v11 = vld [vmem:[%s6828_s3 + $0x9b8] sm:$0xff] }
 0x21a   :  { %3434 = vmatpush1.bf16.msra.mxu0 %v3433_v26  ;;  %3594 = vmatpush1.bf16.msra.mxu1 %v3593_v2  ;;  %v1724_v26 = vld [vmem:[%s6828_s3 + $0x898] sm:$0xff] }
 0x21b   :  { %3436 = vmatprep.subr.bf16.mxu0 %v3435_v0  ;;  %3596 = vmatprep.subr.bf16.mxu1 %v3595_v27  ;;  %v1728_v2 = vld [vmem:[%s6828_s3 + $0x8b8] sm:$0xff]  ;;  %v1721_v0 = vld [vmem:[%s6828_s3 + $0x880] sm:$0xff] }
 0x21c   :  { %v1725_v27 = vld [vmem:[%s6828_s3 + $0x8a0] sm:$0xff]  ;;  %v3615_v29 = vpack.c.bf16 %v1728_v2, %v1724_v26  ;;  %v1762_v26 = vld [vmem:[%s6828_s3 + $0x9c8] sm:$0xff] }
 0x21d   :  { %v3457_v37 = vpack.c.bf16 %v1725_v27, %v1721_v0  ;;  %v1766_v2 = vld [vmem:[%s6828_s3 + $0x9e8] sm:$0xff] }
 0x21e   :  { %3438 = vmatpush1.bf16.msra.mxu0 %v3437_v38  ;;  %3598 = vmatpush1.bf16.msra.mxu1 %v3597_v39  ;;  %v1732_v38 = vld [vmem:[%s6828_s3 + $0x8d8] sm:$0xff] }
 0x21f   :  { %3440 = vmatprep.subr.bf16.mxu0 %v3439_v52  ;;  %3600 = vmatprep.subr.bf16.mxu1 %v3599_v40  ;;  %v1736_v39 = vld [vmem:[%s6828_s3 + $0x8f8] sm:$0xff]  ;;  %v3617_v52 = vpack.c.bf16 %v1727_v33, %v1723_v31  ;;  %v1729_v40 = vld [vmem:[%s6828_s3 + $0x8c0] sm:$0xff] }
 0x220   :  { %v3619_v6 = vpack.c.bf16 %v1736_v39, %v1732_v38  ;;  %v3461_v47 = vpack.c.bf16 %v1733_v41, %v1729_v40  ;;  %v1765_v33 = vld [vmem:[%s6828_s3 + $0x9e0] sm:$0xff]  ;;  %v2238_v38 = vld [vmem:[%s6830_s5 + $0x88] sm:$0xff] }
 0x221   :  { %v2254_v40 = vld [vmem:[%s6830_s5 + $0x108] sm:$0xff]  ;;  %v3639_v41 = vpack.c.bf16 %v2238_v38, %v2237_v36  ;;  %v2248_v36 = vld [vmem:[%s6830_s5 + $0xd8] sm:$0xff] }
 0x222   :  { %3442 = vmatpush1.bf16.msra.mxu0 %v3441_v57  ;;  %3602 = vmatpush1.bf16.msra.mxu1 %v3601_v32  ;;  %v1742_v57 = vld [vmem:[%s6828_s3 + $0x928] sm:$0xff]  ;;  %v1740_v32 = vld [vmem:[%s6828_s3 + $0x918] sm:$0xff] }
 0x223   :  { %3444 = vmatprep.subr.bf16.mxu0 %v3443_v48  ;;  %3604 = vmatprep.subr.bf16.mxu1 %v3603_v49  ;;  %v3621_v48 = vpack.c.bf16 %v1735_v23, %v1731_v13  ;;  %v1737_v49 = vld [vmem:[%s6828_s3 + $0x900] sm:$0xff]  ;;  %v3463_v50 = vpack.c.bf16 %v1742_v57, %v1738_v22  ;;  %v3623_v51 = vpack.c.bf16 %v1744_v46, %v1740_v32  ;;  %v2239_v13 = vld [vmem:[%s6830_s5 + $0x90] sm:$0xff]  ;;  %v2240_v23 = vld [vmem:[%s6830_s5 + $0x98] sm:$0xff]  ;;  %v3833_v46 = vmov 0.0|0.0  }
 0x224   :  { %v3465_v61 = vpack.c.bf16 %v1741_v42, %v1737_v49  ;;  %v2255_v57 = vld [vmem:[%s6830_s5 + $0x110] sm:$0xff]  ;;  %v2224_v42 = vld [vmem:[%s6830_s5 + $0x18] sm:$0xff] }
 0x225   :  { %v2223_v49 = vld [vmem:[%s6830_s5 + $0x10] sm:$0xff] }
 0x226   :  { %3446 = vmatpush1.bf16.msra.mxu0 %v3445_v56  ;;  %3606 = vmatpush1.bf16.msra.mxu1 %v3605_v59  ;;  %v1750_v56 = vld [vmem:[%s6828_s3 + $0x968] sm:$0xff]  ;;  %v1748_v59 = vld [vmem:[%s6828_s3 + $0x958] sm:$0xff] }
 0x227   :  { %3448 = vmatprep.subr.bf16.mxu0 %v3447_v62  ;;  %3608 = vmatprep.subr.bf16.mxu1 %v3607_v10  ;;  %v3625_v62 = vpack.c.bf16 %v1743_v54, %v1739_v53  ;;  %v1745_v10 = vld [vmem:[%s6828_s3 + $0x940] sm:$0xff]  ;;  %v3467_v3 = vpack.c.bf16 %v1750_v56, %v1746_v55  ;;  %v3627_v4 = vpack.c.bf16 %v1752_v60, %v1748_v59  ;;  %v2242_v53 = vld [vmem:[%s6830_s5 + $0xa8] sm:$0xff] }
 0x228   :  { %v3469_v16 = vpack.c.bf16 %v1749_v1, %v1745_v10  ;;  %v2257_v55 = vld [vmem:[%s6830_s5 + $0x120] sm:$0xff]  ;;  %v3645_v56 = vpack.c.bf16 %v2224_v42, %v2223_v49  ;;  %v2258_v59 = vld [vmem:[%s6830_s5 + $0x128] sm:$0xff]  ;;  %v2243_v10 = vld [vmem:[%s6830_s5 + $0xb0] sm:$0xff] }
 0x229   :  { %1927 = vmatmul.mubr.f32.vlgmr.msra.gmra.mrb[10].mxu0 %v3745_v12  ;;  %2140 = vmatmul.mubr.f32.vlgmr.msra.gmra.mrb[10].mxu1 %v3745_v12  ;;  %v1755_v12 = vld [vmem:[%s6828_s3 + $0x990] sm:$0xff]  ;;  %v2244_v1 = vld [vmem:[%s6830_s5 + $0xb8] sm:$0xff] }
 0x22a   :  { %3450 = vmatpush1.bf16.msra.mxu0 %v3449_v9  ;;  %3610 = vmatpush1.bf16.msra.mxu1 %v3609_v20  ;;  %v1758_v9 = vld [vmem:[%s6828_s3 + $0x9a8] sm:$0xff]  ;;  %v1756_v20 = vld [vmem:[%s6828_s3 + $0x998] sm:$0xff]  ;;  %v3633_v27 = vpack.c.bf16 %v1759_v19, %v1755_v12  ;;  %v2265_v19 = vld [vmem:[%s6830_s5 + $0x160] sm:$0xff] }
 0x22b   :  { %3452 = vmatprep.subr.bf16.mxu0 %v3451_v7  ;;  %3612 = vmatprep.subr.bf16.mxu1 %v3611_v17  ;;  %v3629_v7 = vpack.c.bf16 %v1751_v8, %v1747_v5  ;;  %v1753_v17 = vld [vmem:[%s6828_s3 + $0x980] sm:$0xff]  ;;  %v3471_v14 = vpack.c.bf16 %v1758_v9, %v1754_v25  ;;  %v3631_v21 = vpack.c.bf16 %v1760_v11, %v1756_v20  ;;  %v2260_v8 = vld [vmem:[%s6830_s5 + $0x138] sm:$0xff]  ;;  %v2227_v9 = vld [vmem:[%s6830_s5 + $0x30] sm:$0xff] }
 0x22c   :  { %1997 = vmatprep.mubr.f32.mxu0 %v3832_v58  ;;  %2210 = vmatprep.mubr.f32.mxu1 %v3832_v58  ;;  %v3473_v0 = vpack.c.bf16 %v1757_v63, %v1753_v17  ;;  %v3651_v25 = vpack.c.bf16 %v2244_v1, %v2243_v10  ;;  %v2228_v20 = vld [vmem:[%s6830_s5 + $0x38] sm:$0xff]  ;;  %v2262_v17 = vld [vmem:[%s6830_s5 + $0x148] sm:$0xff]  ;;  %v2251_v42 = vld [vmem:[%s6830_s5 + $0xf0] sm:$0xff] }
 0x22e   :  { %3454 = vmatpush1.bf16.msra.mxu0 %v3453_v15  ;;  %3614 = vmatpush1.bf16.msra.mxu1 %v3613_v24  ;;  %v1764_v15 = vld [vmem:[%s6828_s3 + $0x9d8] sm:$0xff] }
 0x22f   :  { %3456 = vmatprep.subr.bf16.mxu0 %v3455_v28  ;;  %3616 = vmatprep.subr.bf16.mxu1 %v3615_v29  ;;  %v1768_v24 = vld [vmem:[%s6828_s3 + $0x9f8] sm:$0xff]  ;;  %v1761_v28 = vld [vmem:[%s6828_s3 + $0x9c0] sm:$0xff]  ;;  %v3475_v29 = vpack.c.bf16 %v1766_v2, %v1762_v26  ;;  %v2266_v26 = vld [vmem:[%s6830_s5 + $0x168] sm:$0xff] }
 0x230   :  { %v3635_v31 = vpack.c.bf16 %v1768_v24, %v1764_v15  ;;  %v3477_v39 = vpack.c.bf16 %v1765_v33, %v1761_v28  ;;  %v3690_v2 = vpack.c.bf16 %v2266_v26, %v2265_v19  ;;  %v2245_v15 = vld [vmem:[%s6830_s5 + $0xc0] sm:$0xff]  ;;  %v2246_v24 = vld [vmem:[%s6830_s5 + $0xc8] sm:$0xff]  ;;  %v2268_v33 = vld [vmem:[%s6830_s5 + $0x178] sm:$0xff] }
 0x231   :  { %v2230_v28 = vld [vmem:[%s6830_s5 + $0x48] sm:$0xff]  ;;  %v2759_v19 = vld [vmem:[%s6831_s6] ss:$0 sm:$0xff] }
 0x232   :  { %3458 = vmatpush1.bf16.msra.mxu0 %v3457_v37  ;;  %3618 = vmatpush1.bf16.msra.mxu1 %v3617_v52  ;;  %v3637_v37 = vpack.c.bf16 %v1767_v35, %v1763_v43  ;;  %v2253_v52 = vld [vmem:[%s6830_s5 + $0x100] sm:$0xff]  ;;  %v2247_v35 = vld [vmem:[%s6830_s5 + $0xd0] sm:$0xff] }
 0x233   :  { %3460 = vmatprep.subr.bf16.mxu0 %v3459_v45  ;;  %3620 = vmatprep.subr.bf16.mxu1 %v3619_v6  ;;  %v2221_v45 = vld [vmem:[%s6830_s5] sm:$0xff]  ;;  %v2222_v6 = vld [vmem:[%s6830_s5 + $0x8] sm:$0xff]  ;;  %v3672_v22 = vpack.c.bf16 %v2254_v40, %v2253_v52  ;;  %v3659_v38 = vpack.c.bf16 %v2248_v36, %v2247_v35 }
 0x234   :  { %v3641_v32 = vpack.c.bf16 %v2222_v6, %v2221_v45  ;;  %v2269_v52 = vld [vmem:[%s6830_s5 + $0x180] sm:$0xff]  ;;  %v2602_v36 = vld [vmem:[%s6835_s10 + $0x8] sm:$0xff] }
 0x235   :  { %v2249_v6 = vld [vmem:[%s6830_s5 + $0xe0] sm:$0xff] }
 0x236   :  { %3462 = vmatpush1.bf16.msra.mxu0 %v3461_v47  ;;  %3622 = vmatpush1.bf16.msra.mxu1 %v3621_v48  ;;  %v2256_v47 = vld [vmem:[%s6830_s5 + $0x118] sm:$0xff]  ;;  %v3643_v48 = vpack.c.bf16 %v2240_v23, %v2239_v13  ;;  %v2250_v13 = vld [vmem:[%s6830_s5 + $0xe8] sm:$0xff]  ;;  %v2233_v23 = vld [vmem:[%s6830_s5 + $0x60] sm:$0xff] }
 0x237   :  { %3464 = vmatprep.subr.bf16.mxu0 %v3463_v50  ;;  %3624 = vmatprep.subr.bf16.mxu1 %v3623_v51  ;;  %v3747_v50 = vpop.eup %3746  ;;  %v2241_v51 = vld [vmem:[%s6830_s5 + $0xa0] sm:$0xff]  ;;  %v3675_v54 = vpack.c.bf16 %v2256_v47, %v2255_v57  ;;  %v2234_v57 = vld [vmem:[%s6830_s5 + $0x68] sm:$0xff]  ;;  %v2272_v47 = vld [vmem:[%s6830_s5 + $0x198] sm:$0xff] }
 0x238   :  { %v3647_v60 = vpack.c.bf16 %v2242_v53, %v2241_v51  ;;  %v2235_v51 = vld [vmem:[%s6830_s5 + $0x70] sm:$0xff]  ;;  %v2601_v35 = vld [vmem:[%s6835_s10] sm:$0xff] }
 0x23a   :  { %3466 = vmatpush1.bf16.msra.mxu0 %v3465_v61  ;;  %3626 = vmatpush1.bf16.msra.mxu1 %v3625_v62  ;;  %v2225_v61 = vld [vmem:[%s6830_s5 + $0x20] sm:$0xff]  ;;  %v2226_v62 = vld [vmem:[%s6830_s5 + $0x28] sm:$0xff] }
 0x23b   :  { %3468 = vmatprep.subr.bf16.mxu0 %v3467_v3  ;;  %3628 = vmatprep.subr.bf16.mxu1 %v3627_v4  ;;  %v3678_v3 = vpack.c.bf16 %v2258_v59, %v2257_v55  ;;  %v2259_v4 = vld [vmem:[%s6830_s5 + $0x130] sm:$0xff]  ;;  %v3649_v5 = vpack.c.bf16 %v2226_v62, %v2225_v61  ;;  %v2273_v55 = vld [vmem:[%s6830_s5 + $0x1a0] sm:$0xff] }
 0x23c   :  { %v3681_v11 = vpack.c.bf16 %v2260_v8, %v2259_v4  ;;  %v1769_v61 = vld [vmem:[%s6829_s4] sm:$0xf] }
 0x23d   :  { %v1774_v62 = vrot.slane %v1769_v61, %v5634_v30  ;;  %v1778_v10 = vrot.slane %v1769_v61, %v5646_v34  ;;  %v1786_v1 = vrot.slane %v1769_v61, %v5947_v44 }
 0x23e   :  { %3470 = vmatpush1.bf16.msra.mxu0 %v3469_v16  ;;  %3630 = vmatpush1.bf16.msra.mxu1 %v3629_v7  ;;  %v3653_v16 = vpack.c.bf16 %v2228_v20, %v2227_v9  ;;  %v2261_v7 = vld [vmem:[%s6830_s5 + $0x140] sm:$0xff] }
 0x23f   :  { %3472 = vmatprep.subr.bf16.mxu0 %v3471_v14  ;;  %3632 = vmatprep.subr.bf16.mxu1 %v3631_v21  ;;  %v3684_v63 = vpack.c.bf16 %v2262_v17, %v2261_v7  ;;  %v2263_v14 = vld [vmem:[%s6830_s5 + $0x150] sm:$0xff]  ;;  %v2264_v21 = vld [vmem:[%s6830_s5 + $0x158] sm:$0xff]  ;;  %v2437_v17 = vld [vmem:[%s6833_s8 + $0x8] sm:$0x3] }
 0x240   :  { %v3687_v12 = vpack.c.bf16 %v2264_v21, %v2263_v14 }
 0x242   :  { %3474 = vmatpush1.bf16.msra.mxu0 %v3473_v0  ;;  %3634 = vmatpush1.bf16.msra.mxu1 %v3633_v27  ;;  %v3655_v0 = vpack.c.bf16 %v2246_v24, %v2245_v15  ;;  %v2229_v27 = vld [vmem:[%s6830_s5 + $0x40] sm:$0xff] }
 0x243   :  { %3476 = vmatprep.subr.bf16.mxu0 %v3475_v29  ;;  %3636 = vmatprep.subr.bf16.mxu1 %v3635_v31  ;;  %v2267_v29 = vld [vmem:[%s6830_s5 + $0x170] sm:$0xff]  ;;  %v3657_v31 = vpack.c.bf16 %v2230_v28, %v2229_v27  ;;  %v2434_v28 = vld [vmem:[%s6832_s7] sm:$0xff] }
 0x244   :  { %v3693_v43 = vpack.c.bf16 %v2268_v33, %v2267_v29  ;;  %v2435_v29 = vld [vmem:[%s6832_s7 + $0x8] sm:$0x3] }
 0x246   :  { %3478 = vmatpush1.bf16.msra.mxu0 %v3477_v39  ;;  %3638 = vmatpush1.bf16.msra.mxu1 %v3637_v37  ;;  %v2231_v39 = vld [vmem:[%s6830_s5 + $0x50] sm:$0xff]  ;;  %v2232_v37 = vld [vmem:[%s6830_s5 + $0x58] sm:$0xff] }
 0x247   :  { %3671 = vmatprep.subr.bf16.mxu1 %v3833_v46  ;;  %3640 = vmatprep.subr.bf16.mxu0 %v3639_v41  ;;  %v3661_v40 = vpack.c.bf16 %v2232_v37, %v2231_v39  ;;  %v2270_v41 = vld [vmem:[%s6830_s5 + $0x188] sm:$0xff]  ;;  %v3713_v39 = vpack.c.bf16 %v2602_v36, %v2601_v35  ;;  %v2604_v37 = vld [vmem:[%s6835_s10 + $0x18] sm:$0xff] }
 0x248   :  { %v3696_v45 = vpack.c.bf16 %v2270_v41, %v2269_v52 }
 0x249   :  { %1998 = vmatmul.mubr.f32.vlgmr.msra.gmra.mrb[10].mxu0 %v3747_v50  ;;  %2211 = vmatmul.mubr.f32.vlgmr.msra.gmra.mrb[10].mxu1 %v3747_v50  ;;  %v2252_v50 = vld [vmem:[%s6830_s5 + $0xf8] sm:$0xff] }
 0x24a   :  { %3673 = vmatpush1.bf16.msra.mxu1 %v3672_v22  ;;  %3642 = vmatpush3.bf16.msra.mxu0 %v3641_v32  ;;  %v3663_v22 = vpack.c.bf16 %v2250_v13, %v2249_v6  ;;  %v2271_v32 = vld [vmem:[%s6830_s5 + $0x190] sm:$0xff]  ;;  %v3667_v53 = vpack.c.bf16 %v2252_v50, %v2251_v42 }
 0x24b   :  { %3674 = vmatprep.subr.bf16.mxu1 %v3833_v46  ;;  %3644 = vmatprep.subr.bf16.mxu0 %v3643_v48  ;;  %v3665_v48 = vpack.c.bf16 %v2234_v57, %v2233_v23  ;;  %v3699_v49 = vpack.c.bf16 %v2272_v47, %v2271_v32 }
 0x24e   :  { %3676 = vmatpush1.bf16.msra.mxu1 %v3675_v54  ;;  %3646 = vmatpush3.bf16.msra.mxu0 %v3645_v56  ;;  %v2236_v54 = vld [vmem:[%s6830_s5 + $0x78] sm:$0xff]  ;;  %v2274_v56 = vld [vmem:[%s6830_s5 + $0x1a8] sm:$0xff] }
 0x24f   :  { %3677 = vmatprep.subr.bf16.mxu1 %v3833_v46  ;;  %3648 = vmatprep.subr.bf16.mxu0 %v3647_v60  ;;  %v3669_v59 = vpack.c.bf16 %v2236_v54, %v2235_v51  ;;  %v3702_v60 = vpack.c.bf16 %v2274_v56, %v2273_v55 }
 0x252   :  { %3679 = vmatpush1.bf16.msra.mxu1 %v3678_v3  ;;  %3650 = vmatpush3.bf16.msra.mxu0 %v3649_v5  ;;  %v1782_v3 = vrot.slane %v1769_v61, %v5498_v18  ;;  %v2436_v18 = vld [vmem:[%s6833_s8] sm:$0xff] }
 0x253   :  { %3680 = vmatprep.subr.bf16.mxu1 %v3833_v46  ;;  %3652 = vmatprep.subr.bf16.mxu0 %v3651_v25 }
 0x256   :  { %3682 = vmatpush1.bf16.msra.mxu1 %v3681_v11  ;;  %3654 = vmatpush3.bf16.msra.mxu0 %v3653_v16 }
 0x257   :  { %3683 = vmatprep.subr.bf16.mxu1 %v3833_v46  ;;  %3656 = vmatprep.subr.bf16.mxu0 %v3655_v0 }
 0x25a   :  { %3685 = vmatpush1.bf16.msra.mxu1 %v3684_v63  ;;  %3658 = vmatpush3.bf16.msra.mxu0 %v3657_v31  ;;  %v3705_v63 = vpack.c.bf16 %v2437_v17, %v2436_v18  ;;  %v3709_v31 = vpack.c.bf16 %v2435_v29, %v2434_v28 }
 0x25b   :  { %3686 = vmatprep.subr.bf16.mxu1 %v3833_v46  ;;  %3660 = vmatprep.subr.bf16.mxu0 %v3659_v38  ;;  %v2603_v38 = vld [vmem:[%s6835_s10 + $0x10] sm:$0xff]  ;;  %s3836_s10 = smov [#allocation5]  }
 0x25c   :  { %v3716_v52 = vpack.c.bf16 %v2604_v37, %v2603_v38  ;;  %s2704_s1 = sshll.u32 %s3836_s10, 4  ;;  %s2705_s1 = int_to_ptr.vmem [resolvable:$true] %s2704_s1 }
 0x25d   :  { %s3762_s17 = scalar_lea.vmem %s2705_s1, 32  ;;  %p3767_p1 = scmp.lt.s32.totalorder %s2705_s1, %s2705_s1 }
 0x25e   :  { %3688 = vmatpush1.bf16.msra.mxu1 %v3687_v12  ;;  %3662 = vmatpush3.bf16.msra.mxu0 %v3661_v40  ;;  %p3763_p0 = scmp.ne.s32.totalorder %s2705_s1, %s3762_s17  ;;  %p3768_p2 = scmp.lt.s32.totalorder %s3762_s17, %s3762_s17 }
 0x25f   :  { %3689 = vmatprep.subr.bf16.mxu1 %v3833_v46  ;;  %3664 = vmatprep.subr.bf16.mxu0 %v3663_v22 }
 0x260   :  { %p3769_p3 = por %p3768_p2, %p3767_p1 }
 0x262   :  { %3691 = vmatpush1.bf16.msra.mxu1 %v3690_v2  ;;  %3666 = vmatpush3.bf16.msra.mxu0 %v3665_v48  ;;  %p3770_p4 = pnand %p3769_p3, %p3763_p0 }
 0x263   :  { %3692 = vmatprep.subr.bf16.mxu1 %v3833_v46  ;;  %3668 = vmatprep.subr.bf16.mxu0 %v3667_v53 }
 0x266   :  { %3694 = vmatpush1.bf16.msra.mxu1 %v3693_v43  ;;  %3670 = vmatpush3.bf16.msra.mxu0 %v3669_v59 }
 0x267   :  { %3695 = vmatprep.subr.bf16.mxu1 %v3833_v46  ;;  %3704 = vmatprep.subr.bf16.mxu0 %v3833_v46 }
 0x26a   :  { %3697 = vmatpush1.bf16.msra.mxu1 %v3696_v45  ;;  %v2765_v45 = vld [vmem:[%s6834_s9] ss:$0 sm:$0xff] }
 0x26b   :  { %3698 = vmatprep.subr.bf16.mxu1 %v3833_v46 }
 0x26e   :  { %3700 = vmatpush1.bf16.msra.mxu1 %v3699_v49 }
 0x26f   :  { %3701 = vmatprep.subr.bf16.mxu1 %v3833_v46 }
 0x272   :  { %3703 = vmatpush1.bf16.msra.mxu1 %v3702_v60 }
 0x31c   :  { %v1999_v4 = vpop.f32.mrb[10].mxu0  ;;  %v2212_v5 = vpop.f32.mrb[10].mxu1 }
 0x31d   :  { %v3718_v8 = vadd.f32 %v1999_v4, %v1774_v62  ;;  %v2001_v25 = vpop.f32.mrb[11].mxu0  ;;  %v2214_v9 = vpop.f32.mrb[11].mxu1  ;;  %v3720_v16 = vadd.f32 %v2212_v5, %v1782_v3 }
 0x31e   :  { %v3719_v20 = vadd.f32 %v2001_v25, %v1778_v10  ;;  %v3721_v11 = vadd.f32 %v2214_v9, %v1786_v1 }
 0x31f   :  { %3748 = vtanh.f32 %v3718_v8 }
 0x320   :  { %3750 = vtanh.f32 %v3719_v20 }
 0x321   :  { %3752 = vtanh.f32 %v3721_v11 }
 0x322   :  { %3754 = vtanh.f32 %v3720_v16 }
 0x329   :  { %v3749_v7 = vpop.eup %3748 }
 0x32a   :  { %v3751_v30 = vpop.eup %3750 }
 0x32b   :  { %v3753_v34 = vpop.eup %3752  ;;  %2350 = vmatprep.mubr.f32.mxu0 %v3751_v30 }
 0x32c   :  { %v3755_v44 = vpop.eup %3754  ;;  %2760 = vmatprep.mubr.msk.f32.mxu1 %vm2282_vm2, %v3753_v34  ;;  %2351 = vmatmul.mubr.f32.vlgmr.msra.gmra.mrb[12].mxu0 %v3749_v7 }
 0x32d   :  { %2421 = vmatmul.mubr.f32.vlgmr.msra.gmra.mrb[12].mxu1 %v3755_v44  ;;  %2818 = vmatprep.mubr.msk.f32.mxu0 %vm3835_vm6, %v3832_v58 }
 0x32e   :  { %3707 = vmatpush3.bf16.msk.msra.mxu0 %vm6745_vm5, %v3705_v63 }
 0x32f   :  { %3708 = vmatprep.subr.bf16.mxu0 %v3833_v46 }
 0x3ff   :  { %v2800_v21 = vpop.f32.mrb[12].mxu0 }
 0x400   :  { %v2422_v12 = vpop.f32.mrb[12].mxu1  ;;  %v2801_v26 = vpop.f32.mrb[13].mxu0 }
 0x401   :  { %v2802_v2 = vadd.f32 %v2801_v26, %v2800_v21  ;;  %v2424_v15 = vpop.f32.mrb[13].mxu1 }
 0x403   :  { %v2353_v24 = vadd.f32 %v2802_v2, %v2759_v19 }
 0x405   :  { %v2423_v0 = vadd.f32 %v2422_v12, %v2353_v24 }
 0x407   :  { %3756 = vtanh.f32 %v2423_v0 }
 0x411   :  { %v3757_v27 = vpop.eup %3756 }
 0x412   :  { %2428 = vst.msk [vmem:[#allocation2] sm:$0xf] %vm2427_vm7, %v3757_v27 }
 0x419   :  { %v2430_v33 = vld [vmem:[#allocation2 + $0x2] sm:$0x3]  ;;  %v2429_v43 = vld [vmem:[#allocation2] sm:$0x3] }
 0x41a   :  { %2819 = vmatmul.mubr.msk.f32.vlgmr.msra.gmra.mrb[14].mxu0 %vm2438_vm8, %v2430_v33  ;;  %2432 = vst.msk [vmem:[#allocation5] sm:$0x3] %vm2431_vm9, %v2429_v43  ;;  %2433 = vst.msk [vmem:[#allocation7] sm:$0x3] %vm2431_vm9, %v2430_v33 }
 0x41b   :  { %3711 = vmatpush3.bf16.msk.msra.mxu0 %vm6745_vm5, %v3709_v31  ;;  %2825 = vmatprep.mubr.msk.f32.mxu0 %vm3835_vm6, %v3832_v58 }
 0x41c   :  { %3712 = vmatprep.subr.bf16.mxu0 %v3833_v46 }
 0x41e   :  { %2826 = vmatmul.mubr.msk.f32.vlgmr.msra.gmra.mrb[16].mxu0 %vm2438_vm8, %v2429_v43 }
 0x41f   :  { %2836 = vmatprep.mubr.msk.f32.mxu0 %vm3835_vm6, %v3832_v58  ;;  %3714 = vmatpush3.bf16.msra.mxu0 %v3713_v39 }
 0x420   :  { %3715 = vmatprep.subr.bf16.mxu0 %v3833_v46 }
 0x423   :  { %3717 = vmatpush3.bf16.msra.mxu0 %v3716_v52 }
 0x4ed   :  { %v2512_v58 = vpop.f32.mrb[14].mxu0 }
 0x4ee   :  { %v2820_v40 = vpop.f32.mrb[15].mxu0 }
 0x4f1   :  { %v2588_v41 = vpop.f32.mrb[16].mxu0 }
 0x4f2   :  { %v2589_v6 = vadd.f32 %v2588_v41, %v2512_v58  ;;  %v2827_v13 = vpop.f32.mrb[17].mxu0 }
 0x4f4   :  { %v2599_v23 = vadd.f32 %v2765_v45, %v2589_v6 }
 0x4f6   :  { %3758 = vtanh.f32 %v2599_v23 }
 0x500   :  { %v3759_v22 = vpop.eup %3758 }
 0x501   :  { %2837 = vmatmul.mubr.msk.f32.vlgmr.msra.gmra.mrb[18].mxu0 %vm2612_vm10, %v3759_v22 }
 0x502   :  { %3773 = shalt.err (!%p3770_p4)
}
 0x503   :  { %s3774_s9 = scalar_lea.hbm %s6838_s13, 32 }
 0x504   :  { %p3775_p5 = scmp.ne.s32.totalorder %s6838_s13, %s3774_s9  ;;  %p3778_p6 = scmp.lt.u32.totalorder %s3774_s9, %s6838_s13 }
 0x506   :  { %p3780_p7 = pnand %p3778_p6, %p3775_p5 }
 0x508   :  { %3783 = shalt.err (!%p3780_p7)
}
 0x509   :  { %2707 = dma.vmem_to_hbm [thread:$0]  %s2705_s1, 32, %s6838_s13, [#allocation6]  }
 0x50a   :  { %s3837_s8 = smov [#allocation7]  }
 0x50b   :  { %s2714_s0 = sshll.u32 %s3837_s8, 4  ;;  %s2715_s0 = int_to_ptr.vmem [resolvable:$true] %s2714_s0 }
 0x50c   :  { %s3784_s23 = scalar_lea.vmem %s2715_s0, 32  ;;  %p3789_p9 = scmp.lt.s32.totalorder %s2715_s0, %s2715_s0 }
 0x50d   :  { %p3785_p8 = scmp.ne.s32.totalorder %s2715_s0, %s3784_s23  ;;  %p3790_p10 = scmp.lt.s32.totalorder %s3784_s23, %s3784_s23 }
 0x50f   :  { %p3791_p11 = por %p3790_p10, %p3789_p9 }
 0x511   :  { %p3792_p12 = pnand %p3791_p11, %p3785_p8 }
 0x513   :  { %3795 = shalt.err (!%p3792_p12)
}
 0x514   :  { %s3796_s6 = scalar_lea.hbm %s6839_s14, 32 }
 0x515   :  { %p3797_p13 = scmp.ne.s32.totalorder %s6839_s14, %s3796_s6  ;;  %p3800_p0 = scmp.lt.u32.totalorder %s3796_s6, %s6839_s14 }
 0x517   :  { %p3802_p1 = pnand %p3800_p0, %p3797_p13 }
 0x519   :  { %3805 = shalt.err (!%p3802_p1)
}
 0x51a   :  { %2717 = dma.vmem_to_hbm [thread:$0]  %s2715_s0, 32, %s6839_s14, [#allocation6]   ;;  %v2766_v46 = vld [vmem:[%s6836_s11] ss:$0 sm:$0xff]  ;;  %vm2686_vm11 = vcmask 9216  }
 0x51b   :  { %s3838_s16 = smov [#allocation3]  }
 0x51c   :  { %s2694_s2 = sshll.u32 %s3838_s16, 4  ;;  %s2695_s2 = int_to_ptr.vmem [resolvable:$true] %s2694_s2 }
 0x51d   :  { %s3806_s10 = scalar_lea.vmem %s2695_s2, 32  ;;  %p3811_p3 = scmp.lt.s32.totalorder %s2695_s2, %s2695_s2 }
 0x51e   :  { %p3807_p2 = scmp.ne.s32.totalorder %s2695_s2, %s3806_s10  ;;  %p3812_p4 = scmp.lt.s32.totalorder %s3806_s10, %s3806_s10 }
 0x520   :  { %p3813_p5 = por %p3812_p4, %p3811_p3 }
 0x522   :  { %p3814_p6 = pnand %p3813_p5, %p3807_p2 }
 0x5d4   :  { %v2682_v57 = vpop.f32.mrb[18].mxu0 }
 0x5d5   :  { %v2683_v32 = vadd.f32 %v2766_v46, %v2682_v57  ;;  %v2838_v47 = vpop.f32.mrb[19].mxu0 }
 0x5d7   :  { %2687 = vst.msk [vmem:[#allocation3] sm:$0x3] %vm2686_vm11, %v2683_v32 }
 0x5d8   :  { %3817 = shalt.err (!%p3814_p6)
}
 0x5d9   :  { %s3818_s17 = scalar_lea.hbm %s6837_s12, 32 }
 0x5da   :  { %p3819_p7 = scmp.ne.s32.totalorder %s6837_s12, %s3818_s17  ;;  %p3822_p8 = scmp.lt.u32.totalorder %s3818_s17, %s6837_s12 }
 0x5dc   :  { %p3824_p9 = pnand %p3822_p8, %p3819_p7 }
 0x5de   :  { %3827 = shalt.err (!%p3824_p9)
}
 0x5df   :  { %2697 = dma.vmem_to_hbm [thread:$0]  %s2695_s2, 32, %s6837_s12, [#allocation4]  }
 0x5e0   :  { %3828 = dma.done.wait [#allocation4], 32  }
 0x5e1   :  { %3829 = vsyncadd [#allocation4], 4294967264 }
 0x5e2   :  { %3830 = dma.done.wait [#allocation6], 64  }
 0x5e3   :  { %3831 = vsyncadd [#allocation6], 4294967232 }
 0x5e4   :  { %2727 = vsyncpa [#allocation4], 1 }
 0x5e5   :  { %2728 = vsyncpa [#allocation6], 1 }

</bundles_post_ra>
